<compile_context>
chip_gen: v7x
topology: tpu7x:2x2x1
jax: 0.10.0
libtpu: 0.0.40
codegen_flags: <defaults>
</compile_context>

<pallas_src>
import jax
import jax.numpy as jnp
from jax import lax
from jax.experimental import pallas as pl
from jax.experimental.pallas import tpu as pltpu


# ---------------------------------------------------------------------------
# Layout helpers (plain-JAX glue, only at the block boundary)
# ---------------------------------------------------------------------------
def _to_w9(w_oihw):
    """PyTorch Conv2d weight (Cout, Cin, 3, 3) -> (9, Cin, Cout), k = 3*dy + dx."""
    Cout, Cin = w_oihw.shape[0], w_oihw.shape[1]
    return jnp.transpose(w_oihw, (2, 3, 1, 0)).reshape(9, Cin, Cout)


def _pad_flat(x_nhwc):
    """(N,H,W,C) -> zero-padded flattened layout (N, (H+2)*(W+2) + 2, C).

    Element [n, 1 + r*(W+2) + c, :] is padded pixel (r, c); the +-1 slack elements
    keep every 3x3 tap a contiguous slice of the flat pixel axis."""
    N, H, W, C = x_nhwc.shape
    xp = jnp.pad(x_nhwc, ((0, 0), (1, 1), (1, 1), (0, 0)))
    flat = xp.reshape(N, (H + 2) * (W + 2), C)
    return jnp.pad(flat, ((0, 0), (1, 1), (0, 0)))


def _unpad_flat(y_flat, H, W):
    """(N, (H+2)*(W+2)+2, C) -> (N, H, W, C)."""
    N, _, C = y_flat.shape
    Hp, Wp = H + 2, W + 2
    y = y_flat[:, 1:1 + Hp * Wp, :].reshape(N, Hp, Wp, C)
    return y[:, 1:H + 1, 1:W + 1, :]


def _col_mask(H, W, C):
    """(H*(W+2), C) f32: 1 on valid image columns, 0 on the two pad columns."""
    Wp = W + 2
    col = jnp.tile(jnp.arange(Wp), H)
    valid = ((col >= 1) & (col <= W)).astype(jnp.float32)
    return jnp.tile(valid[:, None], (1, C))


# ---------------------------------------------------------------------------
# Kernel 1: conv3x3 (stride 1, pad 1) + bias + MaxPool2d(3, 2, pad 1), fused
# ---------------------------------------------------------------------------
def _make_conv_pool_kernel(H, W, Cin, Cout, Ho, Wo):
    Wp = W + 2                       # padded row stride of the input
    Wpo = Wo + 2                     # padded row stride of the pooled output
    P = H * Wp                       # conv computed for H interior rows x Wp cols
    Lout = (Ho + 2) * Wpo + 2

    def kernel(x_ref, w_ref, b_ref, m_ref, o_ref, conv_scr):
        # ---- conv: 9 shifted GEMMs over contiguous tap slices (no edge mask) ----
        acc = jnp.zeros((P, Cout), jnp.float32)
        for k in range(9):
            dy, dx = k // 3 - 1, k % 3 - 1
            off = 1 + Wp + dy * Wp + dx
            patch = x_ref[0, pl.ds(off, P), :].astype(jnp.bfloat16)
            acc = acc + jnp.dot(patch, w_ref[k],
                                preferred_element_type=jnp.float32)
        acc = acc + b_ref[...]
        # pad columns hold wrapped-row garbage -> push them to -inf for the pool
        mask = m_ref[...]
        conv_scr[...] = acc * mask - (1.0 - mask) * 1e30

        # ---- fused MaxPool2d(3, stride 2, pad 1); output kept in padded layout ----
        o_ref[0] = jnp.zeros((Lout, Cout), jnp.float32)
        for po in range(Ho):
            m = None
            for a in (-1, 0, 1):
                r = 2 * po + a
                if 0 <= r < H:
                    for b in range(3):
                        cand = conv_scr[pl.ds(r * Wp + b, Wo, stride=2), :]
                        m = cand if m is None else jnp.maximum(m, cand)
            o_ref[0, pl.ds((po + 1) * Wpo + 2, Wo), :] = m

    return kernel


def conv_pool(xpad, w9_bf16, b, cmask, H, W, Ho, Wo):
    N, L, Cin = xpad.shape
    Cout = w9_bf16.shape[-1]
    P = H * (W + 2)
    Lout = (Ho + 2) * (Wo + 2) + 2
    kernel = _make_conv_pool_kernel(H, W, Cin, Cout, Ho, Wo)
    return pl.pallas_call(
        kernel,
        grid=(N,),
        in_specs=[
            pl.BlockSpec((1, L, Cin), lambda n: (n, 0, 0)),
            pl.BlockSpec((9, Cin, Cout), lambda n: (0, 0, 0)),
            pl.BlockSpec((1, Cout), lambda n: (0, 0)),
            pl.BlockSpec((P, Cout), lambda n: (0, 0)),
        ],
        out_specs=pl.BlockSpec((1, Lout, Cout), lambda n: (n, 0, 0)),
        out_shape=jax.ShapeDtypeStruct((N, Lout, Cout), jnp.float32),
        scratch_shapes=[pltpu.VMEM((P, Cout), jnp.float32)],
        compiler_params=pltpu.CompilerParams(dimension_semantics=("parallel",)),
    )(xpad, w9_bf16, b.reshape(1, Cout), cmask)


# ---------------------------------------------------------------------------
# Kernel 2: one ImpalaResidual (ReLU -> conv -> ReLU -> conv -> + x), fully fused
# ---------------------------------------------------------------------------
def _make_residual_kernel(Ho, Wo, C):
    Wp = Wo + 2
    P = Ho * Wp
    L = (Ho + 2) * Wp + 2

    def kernel(x_ref, w0_ref, b0_ref, w1_ref, b1_ref, m_ref, o_ref, a_scr, t_scr):
        x = x_ref[0]                                   # (L, C) f32, zero-padded layout
        # hoisted input ReLU: one pass over the whole buffer (ReLU(0)=0 keeps padding)
        a_scr[...] = jnp.maximum(x, 0.0)
        mask = m_ref[...]                              # (P, C): 1 on valid columns

        # ---- conv_0 ----
        acc = jnp.zeros((P, C), jnp.float32)
        for k in range(9):
            dy, dx = k // 3 - 1, k % 3 - 1
            off = 1 + Wp + dy * Wp + dx
            acc = acc + jnp.dot(a_scr[pl.ds(off, P), :].astype(jnp.bfloat16),
                                w0_ref[k], preferred_element_type=jnp.float32)
        acc = acc + b0_ref[...]

        # intermediate activation stays in VMEM: ReLU + re-zero the pad columns
        t_scr[...] = jnp.zeros((L, C), jnp.float32)
        t_scr[pl.ds(1 + Wp, P), :] = jnp.maximum(acc, 0.0) * mask

        # ---- conv_1 ----
        acc2 = jnp.zeros((P, C), jnp.float32)
        for k in range(9):
            dy, dx = k // 3 - 1, k % 3 - 1
            off = 1 + Wp + dy * Wp + dx
            acc2 = acc2 + jnp.dot(t_scr[pl.ds(off, P), :].astype(jnp.bfloat16),
                                  w1_ref[k], preferred_element_type=jnp.float32)
        acc2 = acc2 + b1_ref[...]

        # residual add; keep the zero border so the next kernel needs no re-padding
        o_ref[0] = x
        o_ref[0, pl.ds(1 + Wp, P), :] = x_ref[0, pl.ds(1 + Wp, P), :] + acc2 * mask

    return kernel


def residual_block(y, w0, b0, w1, b1, cmask, Ho, Wo):
    N, L, C = y.shape
    P = Ho * (Wo + 2)
    kernel = _make_residual_kernel(Ho, Wo, C)
    return pl.pallas_call(
        kernel,
        grid=(N,),
        in_specs=[
            pl.BlockSpec((1, L, C), lambda n: (n, 0, 0)),
            pl.BlockSpec((9, C, C), lambda n: (0, 0, 0)),
            pl.BlockSpec((1, C), lambda n: (0, 0)),
            pl.BlockSpec((9, C, C), lambda n: (0, 0, 0)),
            pl.BlockSpec((1, C), lambda n: (0, 0)),
            pl.BlockSpec((P, C), lambda n: (0, 0)),
        ],
        out_specs=pl.BlockSpec((1, L, C), lambda n: (n, 0, 0)),
        out_shape=jax.ShapeDtypeStruct((N, L, C), jnp.float32),
        scratch_shapes=[pltpu.VMEM((L, C), jnp.float32),
                        pltpu.VMEM((L, C), jnp.float32)],
        compiler_params=pltpu.CompilerParams(dimension_semantics=("parallel",)),
    )(y, w0, b0.reshape(1, C), w1, b1.reshape(1, C), cmask)


# ---------------------------------------------------------------------------
# ImpalaBlock forward: 3 fused pallas_calls total
# ---------------------------------------------------------------------------
def impala_block_forward(x_nchw, params):
    N, Cin, H, W = x_nchw.shape
    Cout = params["conv_w"].shape[0]
    Ho = (H - 1) // 2 + 1
    Wo = (W - 1) // 2 + 1

    xf = jnp.transpose(x_nchw, (0, 2, 3, 1))           # NCHW -> NHWC (glue)
    xpad = _pad_flat(xf)

    w9 = _to_w9(params["conv_w"]).astype(jnp.bfloat16)
    y = conv_pool(xpad, w9, params["conv_b"], _col_mask(H, W, Cout), H, W, Ho, Wo)

    cmask = _col_mask(Ho, Wo, Cout)
    for i in (0, 1):
        y = residual_block(
            y,
            _to_w9(params[f"res{i}_w0"]).astype(jnp.bfloat16), params[f"res{i}_b0"],
            _to_w9(params[f"res{i}_w1"]).astype(jnp.bfloat16), params[f"res{i}_b1"],
            cmask, Ho, Wo)

    return jnp.transpose(_unpad_flat(y, Ho, Wo), (0, 3, 1, 2))   # back to NCHW


# ---------------------------------------------------------------------------
# Pure-JAX reference for verification
# ---------------------------------------------------------------------------
def _ref_conv(x, w, b):
    y = lax.conv_general_dilated(x, w, window_strides=(1, 1),
                                 padding=((1, 1), (1, 1)),
                                 dimension_numbers=("NCHW", "OIHW", "NCHW"))
    return y + b[None, :, None, None]


def ref_forward(x, p):
    y = _ref_conv(x, p["conv_w"], p["conv_b"])
    y = lax.reduce_window(y, -jnp.inf, lax.max, (1, 1, 3, 3), (1, 1, 2, 2),
                          ((0, 0), (0, 0), (1, 1), (1, 1)))
    for i in (0, 1):
        t = _ref_conv(jax.nn.relu(y), p[f"res{i}_w0"], p[f"res{i}_b0"])
        t = _ref_conv(jax.nn.relu(t), p[f"res{i}_w1"], p[f"res{i}_b1"])
        y = y + t
    return y


if __name__ == "__main__":
    key = jax.random.PRNGKey(0)
    N, Cin, H, W = 2, 4, 16, 16
    Cout = 16

    ks = jax.random.split(key, 12)
    x = jax.random.normal(ks[0], (N, Cin, H, W), jnp.float32)

    def conv_params(kw, kb, cin, cout):
        return (0.1 * jax.random.normal(kw, (cout, cin, 3, 3), jnp.float32),
                0.1 * jax.random.normal(kb, (cout,), jnp.float32))

    params = {}
    params["conv_w"], params["conv_b"] = conv_params(ks[1], ks[2], Cin, Cout)
    params["res0_w0"], params["res0_b0"] = conv_params(ks[3], ks[4], Cout, Cout)
    params["res0_w1"], params["res0_b1"] = conv_params(ks[5], ks[6], Cout, Cout)
    params["res1_w0"], params["res1_b0"] = conv_params(ks[7], ks[8], Cout, Cout)
    params["res1_w1"], params["res1_b1"] = conv_params(ks[9], ks[10], Cout, Cout)

    fwd = jax.jit(impala_block_forward)
    out = jax.block_until_ready(fwd(x, params))
    ref = ref_forward(x, params)

    assert out.shape == (N, Cout, (H - 1) // 2 + 1, (W - 1) // 2 + 1), out.shape
    assert out.shape == ref.shape
    max_err = float(jnp.max(jnp.abs(out - ref)))
    # bf16 MXU inputs with f32 accumulation vs the pure-f32 reference.
    assert max_err < 1e-1, f"max abs error vs reference: {max_err}"
    print("KERNEL_OK")
</pallas_src>

<mosaic_0001>
module attributes {stable_mosaic.version = 11 : i64} {
  func.func @kernel(%arg0: i32, %arg1: memref<1x326x4xf32, #tpu.memory_space<vmem>>, %arg2: memref<9x4x16xbf16, #tpu.memory_space<vmem>>, %arg3: memref<1x16xf32, #tpu.memory_space<vmem>>, %arg4: memref<288x16xf32, #tpu.memory_space<vmem>>, %arg5: memref<1x102x16xf32, #tpu.memory_space<vmem>>, %arg6: memref<288x16xf32, #tpu.memory_space<vmem>>) attributes {dimension_semantics = [#tpu.dimension_semantics<parallel>], iteration_bounds = array<i64: 2>, scalar_prefetch = 0 : i64, scratch_operands = 1 : i64, tpu.core_type = #tpu.core_type<tc>, window_params = [{transform_indices = @transform_0, window_bounds = array<i64: 1, 326, 4>}, {pipeline_mode = #tpu.pipeline_mode<synchronous>, transform_indices = @transform_1, window_bounds = array<i64: 9, 4, 16>}, {pipeline_mode = #tpu.pipeline_mode<synchronous>, transform_indices = @transform_2, window_bounds = array<i64: 1, 16>}, {pipeline_mode = #tpu.pipeline_mode<synchronous>, transform_indices = @transform_3, window_bounds = array<i64: 288, 16>}, {transform_indices = @transform_4, window_bounds = array<i64: 1, 102, 16>}]} {
    %cst = arith.constant 0.000000e+00 : f32
    %0 = vector.broadcast %cst : f32 to vector<288x16xf32>
    %c0 = arith.constant 0 : index
    %c0_0 = arith.constant 0 : index
    %c0_1 = arith.constant 0 : index
    %1 = vector.load %arg1[%c0, %c0_0, %c0_1] : memref<1x326x4xf32, #tpu.memory_space<vmem>>, vector<1x288x4xf32>
    %2 = vector.shape_cast %1 : vector<1x288x4xf32> to vector<288x4xf32>
    %3 = arith.truncf %2 : vector<288x4xf32> to vector<288x4xbf16>
    %c0_2 = arith.constant 0 : index
    %c0_3 = arith.constant 0 : index
    %c0_4 = arith.constant 0 : index
    %4 = vector.load %arg2[%c0_2, %c0_3, %c0_4] : memref<9x4x16xbf16, #tpu.memory_space<vmem>>, vector<1x4x16xbf16>
    %5 = vector.shape_cast %4 : vector<1x4x16xbf16> to vector<4x16xbf16>
    %cst_5 = arith.constant dense<0.000000e+00> : vector<288x16xf32>
    %6 = tpu.matmul %3, %5, %cst_5 {dimension_numbers = #tpu.dot_dimension_numbers<[1], [0], [0], [1], [0, 0, 1, 1], [], []>} : vector<288x4xbf16>, vector<4x16xbf16>, vector<288x16xf32> -> vector<288x16xf32>
    %7 = arith.addf %0, %6 : vector<288x16xf32>
    %c0_6 = arith.constant 0 : index
    %c1 = arith.constant 1 : index
    %c0_7 = arith.constant 0 : index
    %8 = vector.load %arg1[%c0_6, %c1, %c0_7] : memref<1x326x4xf32, #tpu.memory_space<vmem>>, vector<1x288x4xf32>
    %9 = vector.shape_cast %8 : vector<1x288x4xf32> to vector<288x4xf32>
    %10 = arith.truncf %9 : vector<288x4xf32> to vector<288x4xbf16>
    %c1_8 = arith.constant 1 : index
    %c0_9 = arith.constant 0 : index
    %c0_10 = arith.constant 0 : index
    %11 = vector.load %arg2[%c1_8, %c0_9, %c0_10] : memref<9x4x16xbf16, #tpu.memory_space<vmem>>, vector<1x4x16xbf16>
    %12 = vector.shape_cast %11 : vector<1x4x16xbf16> to vector<4x16xbf16>
    %cst_11 = arith.constant dense<0.000000e+00> : vector<288x16xf32>
    %13 = tpu.matmul %10, %12, %cst_11 {dimension_numbers = #tpu.dot_dimension_numbers<[1], [0], [0], [1], [0, 0, 1, 1], [], []>} : vector<288x4xbf16>, vector<4x16xbf16>, vector<288x16xf32> -> vector<288x16xf32>
    %14 = arith.addf %7, %13 : vector<288x16xf32>
    %c0_12 = arith.constant 0 : index
    %c2 = arith.constant 2 : index
    %c0_13 = arith.constant 0 : index
    %15 = vector.load %arg1[%c0_12, %c2, %c0_13] : memref<1x326x4xf32, #tpu.memory_space<vmem>>, vector<1x288x4xf32>
    %16 = vector.shape_cast %15 : vector<1x288x4xf32> to vector<288x4xf32>
    %17 = arith.truncf %16 : vector<288x4xf32> to vector<288x4xbf16>
    %c2_14 = arith.constant 2 : index
    %c0_15 = arith.constant 0 : index
    %c0_16 = arith.constant 0 : index
    %18 = vector.load %arg2[%c2_14, %c0_15, %c0_16] : memref<9x4x16xbf16, #tpu.memory_space<vmem>>, vector<1x4x16xbf16>
    %19 = vector.shape_cast %18 : vector<1x4x16xbf16> to vector<4x16xbf16>
    %cst_17 = arith.constant dense<0.000000e+00> : vector<288x16xf32>
    %20 = tpu.matmul %17, %19, %cst_17 {dimension_numbers = #tpu.dot_dimension_numbers<[1], [0], [0], [1], [0, 0, 1, 1], [], []>} : vector<288x4xbf16>, vector<4x16xbf16>, vector<288x16xf32> -> vector<288x16xf32>
    %21 = arith.addf %14, %20 : vector<288x16xf32>
    %c0_18 = arith.constant 0 : index
    %c18 = arith.constant 18 : index
    %c0_19 = arith.constant 0 : index
    %22 = vector.load %arg1[%c0_18, %c18, %c0_19] : memref<1x326x4xf32, #tpu.memory_space<vmem>>, vector<1x288x4xf32>
    %23 = vector.shape_cast %22 : vector<1x288x4xf32> to vector<288x4xf32>
    %24 = arith.truncf %23 : vector<288x4xf32> to vector<288x4xbf16>
    %c3 = arith.constant 3 : index
    %c0_20 = arith.constant 0 : index
    %c0_21 = arith.constant 0 : index
    %25 = vector.load %arg2[%c3, %c0_20, %c0_21] : memref<9x4x16xbf16, #tpu.memory_space<vmem>>, vector<1x4x16xbf16>
    %26 = vector.shape_cast %25 : vector<1x4x16xbf16> to vector<4x16xbf16>
    %cst_22 = arith.constant dense<0.000000e+00> : vector<288x16xf32>
    %27 = tpu.matmul %24, %26, %cst_22 {dimension_numbers = #tpu.dot_dimension_numbers<[1], [0], [0], [1], [0, 0, 1, 1], [], []>} : vector<288x4xbf16>, vector<4x16xbf16>, vector<288x16xf32> -> vector<288x16xf32>
    %28 = arith.addf %21, %27 : vector<288x16xf32>
    %c0_23 = arith.constant 0 : index
    %c19 = arith.constant 19 : index
    %c0_24 = arith.constant 0 : index
    %29 = vector.load %arg1[%c0_23, %c19, %c0_24] : memref<1x326x4xf32, #tpu.memory_space<vmem>>, vector<1x288x4xf32>
    %30 = vector.shape_cast %29 : vector<1x288x4xf32> to vector<288x4xf32>
    %31 = arith.truncf %30 : vector<288x4xf32> to vector<288x4xbf16>
    %c4 = arith.constant 4 : index
    %c0_25 = arith.constant 0 : index
    %c0_26 = arith.constant 0 : index
    %32 = vector.load %arg2[%c4, %c0_25, %c0_26] : memref<9x4x16xbf16, #tpu.memory_space<vmem>>, vector<1x4x16xbf16>
    %33 = vector.shape_cast %32 : vector<1x4x16xbf16> to vector<4x16xbf16>
    %cst_27 = arith.constant dense<0.000000e+00> : vector<288x16xf32>
    %34 = tpu.matmul %31, %33, %cst_27 {dimension_numbers = #tpu.dot_dimension_numbers<[1], [0], [0], [1], [0, 0, 1, 1], [], []>} : vector<288x4xbf16>, vector<4x16xbf16>, vector<288x16xf32> -> vector<288x16xf32>
    %35 = arith.addf %28, %34 : vector<288x16xf32>
    %c0_28 = arith.constant 0 : index
    %c20 = arith.constant 20 : index
    %c0_29 = arith.constant 0 : index
    %36 = vector.load %arg1[%c0_28, %c20, %c0_29] : memref<1x326x4xf32, #tpu.memory_space<vmem>>, vector<1x288x4xf32>
    %37 = vector.shape_cast %36 : vector<1x288x4xf32> to vector<288x4xf32>
    %38 = arith.truncf %37 : vector<288x4xf32> to vector<288x4xbf16>
    %c5 = arith.constant 5 : index
    %c0_30 = arith.constant 0 : index
    %c0_31 = arith.constant 0 : index
    %39 = vector.load %arg2[%c5, %c0_30, %c0_31] : memref<9x4x16xbf16, #tpu.memory_space<vmem>>, vector<1x4x16xbf16>
    %40 = vector.shape_cast %39 : vector<1x4x16xbf16> to vector<4x16xbf16>
    %cst_32 = arith.constant dense<0.000000e+00> : vector<288x16xf32>
    %41 = tpu.matmul %38, %40, %cst_32 {dimension_numbers = #tpu.dot_dimension_numbers<[1], [0], [0], [1], [0, 0, 1, 1], [], []>} : vector<288x4xbf16>, vector<4x16xbf16>, vector<288x16xf32> -> vector<288x16xf32>
    %42 = arith.addf %35, %41 : vector<288x16xf32>
    %c0_33 = arith.constant 0 : index
    %c36 = arith.constant 36 : index
    %c0_34 = arith.constant 0 : index
    %43 = vector.load %arg1[%c0_33, %c36, %c0_34] : memref<1x326x4xf32, #tpu.memory_space<vmem>>, vector<1x288x4xf32>
    %44 = vector.shape_cast %43 : vector<1x288x4xf32> to vector<288x4xf32>
    %45 = arith.truncf %44 : vector<288x4xf32> to vector<288x4xbf16>
    %c6 = arith.constant 6 : index
    %c0_35 = arith.constant 0 : index
    %c0_36 = arith.constant 0 : index
    %46 = vector.load %arg2[%c6, %c0_35, %c0_36] : memref<9x4x16xbf16, #tpu.memory_space<vmem>>, vector<1x4x16xbf16>
    %47 = vector.shape_cast %46 : vector<1x4x16xbf16> to vector<4x16xbf16>
    %cst_37 = arith.constant dense<0.000000e+00> : vector<288x16xf32>
    %48 = tpu.matmul %45, %47, %cst_37 {dimension_numbers = #tpu.dot_dimension_numbers<[1], [0], [0], [1], [0, 0, 1, 1], [], []>} : vector<288x4xbf16>, vector<4x16xbf16>, vector<288x16xf32> -> vector<288x16xf32>
    %49 = arith.addf %42, %48 : vector<288x16xf32>
    %c0_38 = arith.constant 0 : index
    %c37 = arith.constant 37 : index
    %c0_39 = arith.constant 0 : index
    %50 = vector.load %arg1[%c0_38, %c37, %c0_39] : memref<1x326x4xf32, #tpu.memory_space<vmem>>, vector<1x288x4xf32>
    %51 = vector.shape_cast %50 : vector<1x288x4xf32> to vector<288x4xf32>
    %52 = arith.truncf %51 : vector<288x4xf32> to vector<288x4xbf16>
    %c7 = arith.constant 7 : index
    %c0_40 = arith.constant 0 : index
    %c0_41 = arith.constant 0 : index
    %53 = vector.load %arg2[%c7, %c0_40, %c0_41] : memref<9x4x16xbf16, #tpu.memory_space<vmem>>, vector<1x4x16xbf16>
    %54 = vector.shape_cast %53 : vector<1x4x16xbf16> to vector<4x16xbf16>
    %cst_42 = arith.constant dense<0.000000e+00> : vector<288x16xf32>
    %55 = tpu.matmul %52, %54, %cst_42 {dimension_numbers = #tpu.dot_dimension_numbers<[1], [0], [0], [1], [0, 0, 1, 1], [], []>} : vector<288x4xbf16>, vector<4x16xbf16>, vector<288x16xf32> -> vector<288x16xf32>
    %56 = arith.addf %49, %55 : vector<288x16xf32>
    %c0_43 = arith.constant 0 : index
    %c38 = arith.constant 38 : index
    %c0_44 = arith.constant 0 : index
    %57 = vector.load %arg1[%c0_43, %c38, %c0_44] : memref<1x326x4xf32, #tpu.memory_space<vmem>>, vector<1x288x4xf32>
    %58 = vector.shape_cast %57 : vector<1x288x4xf32> to vector<288x4xf32>
    %59 = arith.truncf %58 : vector<288x4xf32> to vector<288x4xbf16>
    %c8 = arith.constant 8 : index
    %c0_45 = arith.constant 0 : index
    %c0_46 = arith.constant 0 : index
    %60 = vector.load %arg2[%c8, %c0_45, %c0_46] : memref<9x4x16xbf16, #tpu.memory_space<vmem>>, vector<1x4x16xbf16>
    %61 = vector.shape_cast %60 : vector<1x4x16xbf16> to vector<4x16xbf16>
    %cst_47 = arith.constant dense<0.000000e+00> : vector<288x16xf32>
    %62 = tpu.matmul %59, %61, %cst_47 {dimension_numbers = #tpu.dot_dimension_numbers<[1], [0], [0], [1], [0, 0, 1, 1], [], []>} : vector<288x4xbf16>, vector<4x16xbf16>, vector<288x16xf32> -> vector<288x16xf32>
    %63 = arith.addf %56, %62 : vector<288x16xf32>
    %c0_48 = arith.constant 0 : index
    %c0_49 = arith.constant 0 : index
    %64 = vector.load %arg3[%c0_48, %c0_49] : memref<1x16xf32, #tpu.memory_space<vmem>>, vector<1x16xf32>
    %65 = vector.broadcast %64 : vector<1x16xf32> to vector<288x16xf32>
    %66 = arith.addf %63, %65 : vector<288x16xf32>
    %c0_50 = arith.constant 0 : index
    %c0_51 = arith.constant 0 : index
    %67 = vector.load %arg4[%c0_50, %c0_51] : memref<288x16xf32, #tpu.memory_space<vmem>>, vector<288x16xf32>
    %68 = arith.mulf %66, %67 : vector<288x16xf32>
    %cst_52 = arith.constant 1.000000e+00 : f32
    %69 = vector.broadcast %cst_52 : f32 to vector<288x16xf32>
    %70 = arith.subf %69, %67 : vector<288x16xf32>
    %cst_53 = arith.constant 1.000000e+30 : f32
    %71 = vector.broadcast %cst_53 : f32 to vector<288x16xf32>
    %72 = arith.mulf %70, %71 : vector<288x16xf32>
    %73 = arith.subf %68, %72 : vector<288x16xf32>
    %c0_54 = arith.constant 0 : index
    %c0_55 = arith.constant 0 : index
    %74 = vector.load %arg6[%c0_54, %c0_55] : memref<288x16xf32, #tpu.memory_space<vmem>>, vector<288x16xf32>
    tpu.vector_store %arg6[%c0_54, %c0_55], %73 {strides = array<i32>} : memref<288x16xf32, #tpu.memory_space<vmem>>, vector<288x16xf32>,
    %cst_56 = arith.constant 0.000000e+00 : f32
    %75 = vector.broadcast %cst_56 : f32 to vector<102x16xf32>
    %c0_57 = arith.constant 0 : index
    %c0_58 = arith.constant 0 : index
    %c0_59 = arith.constant 0 : index
    %76 = vector.load %arg5[%c0_57, %c0_58, %c0_59] : memref<1x102x16xf32, #tpu.memory_space<vmem>>, vector<1x102x16xf32>
    %77 = vector.shape_cast %76 : vector<1x102x16xf32> to vector<102x16xf32>
    %78 = vector.shape_cast %75 : vector<102x16xf32> to vector<1x102x16xf32>
    tpu.vector_store %arg5[%c0_57, %c0_58, %c0_59], %78 {strides = array<i32>} : memref<1x102x16xf32, #tpu.memory_space<vmem>>, vector<1x102x16xf32>,
    %c0_60 = arith.constant 0 : index
    %c0_61 = arith.constant 0 : index
    %79 = tpu.strided_load %arg6[%c0_60, %c0_61] {strides = array<i32: 2, 1>} : memref<288x16xf32, #tpu.memory_space<vmem>>, vector<8x16xf32>
    %c1_62 = arith.constant 1 : index
    %c0_63 = arith.constant 0 : index
    %80 = tpu.strided_load %arg6[%c1_62, %c0_63] {strides = array<i32: 2, 1>} : memref<288x16xf32, #tpu.memory_space<vmem>>, vector<8x16xf32>
    %81 = arith.maximumf %79, %80 : vector<8x16xf32>
    %c2_64 = arith.constant 2 : index
    %c0_65 = arith.constant 0 : index
    %82 = tpu.strided_load %arg6[%c2_64, %c0_65] {strides = array<i32: 2, 1>} : memref<288x16xf32, #tpu.memory_space<vmem>>, vector<8x16xf32>
    %83 = arith.maximumf %81, %82 : vector<8x16xf32>
    %c18_66 = arith.constant 18 : index
    %c0_67 = arith.constant 0 : index
    %84 = tpu.strided_load %arg6[%c18_66, %c0_67] {strides = array<i32: 2, 1>} : memref<288x16xf32, #tpu.memory_space<vmem>>, vector<8x16xf32>
    %85 = arith.maximumf %83, %84 : vector<8x16xf32>
    %c19_68 = arith.constant 19 : index
    %c0_69 = arith.constant 0 : index
    %86 = tpu.strided_load %arg6[%c19_68, %c0_69] {strides = array<i32: 2, 1>} : memref<288x16xf32, #tpu.memory_space<vmem>>, vector<8x16xf32>
    %87 = arith.maximumf %85, %86 : vector<8x16xf32>
    %c20_70 = arith.constant 20 : index
    %c0_71 = arith.constant 0 : index
    %88 = tpu.strided_load %arg6[%c20_70, %c0_71] {strides = array<i32: 2, 1>} : memref<288x16xf32, #tpu.memory_space<vmem>>, vector<8x16xf32>
    %89 = arith.maximumf %87, %88 : vector<8x16xf32>
    %c0_72 = arith.constant 0 : index
    %c12 = arith.constant 12 : index
    %c0_73 = arith.constant 0 : index
    %90 = vector.load %arg5[%c0_72, %c12, %c0_73] : memref<1x102x16xf32, #tpu.memory_space<vmem>>, vector<1x8x16xf32>
    %91 = vector.shape_cast %90 : vector<1x8x16xf32> to vector<8x16xf32>
    %92 = vector.shape_cast %89 : vector<8x16xf32> to vector<1x8x16xf32>
    tpu.vector_store %arg5[%c0_72, %c12, %c0_73], %92 {strides = array<i32>} : memref<1x102x16xf32, #tpu.memory_space<vmem>>, vector<1x8x16xf32>,
    %c18_74 = arith.constant 18 : index
    %c0_75 = arith.constant 0 : index
    %93 = tpu.strided_load %arg6[%c18_74, %c0_75] {strides = array<i32: 2, 1>} : memref<288x16xf32, #tpu.memory_space<vmem>>, vector<8x16xf32>
    %c19_76 = arith.constant 19 : index
    %c0_77 = arith.constant 0 : index
    %94 = tpu.strided_load %arg6[%c19_76, %c0_77] {strides = array<i32: 2, 1>} : memref<288x16xf32, #tpu.memory_space<vmem>>, vector<8x16xf32>
    %95 = arith.maximumf %93, %94 : vector<8x16xf32>
    %c20_78 = arith.constant 20 : index
    %c0_79 = arith.constant 0 : index
    %96 = tpu.strided_load %arg6[%c20_78, %c0_79] {strides = array<i32: 2, 1>} : memref<288x16xf32, #tpu.memory_space<vmem>>, vector<8x16xf32>
    %97 = arith.maximumf %95, %96 : vector<8x16xf32>
    %c36_80 = arith.constant 36 : index
    %c0_81 = arith.constant 0 : index
    %98 = tpu.strided_load %arg6[%c36_80, %c0_81] {strides = array<i32: 2, 1>} : memref<288x16xf32, #tpu.memory_space<vmem>>, vector<8x16xf32>
    %99 = arith.maximumf %97, %98 : vector<8x16xf32>
    %c37_82 = arith.constant 37 : index
    %c0_83 = arith.constant 0 : index
    %100 = tpu.strided_load %arg6[%c37_82, %c0_83] {strides = array<i32: 2, 1>} : memref<288x16xf32, #tpu.memory_space<vmem>>, vector<8x16xf32>
    %101 = arith.maximumf %99, %100 : vector<8x16xf32>
    %c38_84 = arith.constant 38 : index
    %c0_85 = arith.constant 0 : index
    %102 = tpu.strided_load %arg6[%c38_84, %c0_85] {strides = array<i32: 2, 1>} : memref<288x16xf32, #tpu.memory_space<vmem>>, vector<8x16xf32>
    %103 = arith.maximumf %101, %102 : vector<8x16xf32>
    %c54 = arith.constant 54 : index
    %c0_86 = arith.constant 0 : index
    %104 = tpu.strided_load %arg6[%c54, %c0_86] {strides = array<i32: 2, 1>} : memref<288x16xf32, #tpu.memory_space<vmem>>, vector<8x16xf32>
    %105 = arith.maximumf %103, %104 : vector<8x16xf32>
    %c55 = arith.constant 55 : index
    %c0_87 = arith.constant 0 : index
    %106 = tpu.strided_load %arg6[%c55, %c0_87] {strides = array<i32: 2, 1>} : memref<288x16xf32, #tpu.memory_space<vmem>>, vector<8x16xf32>
    %107 = arith.maximumf %105, %106 : vector<8x16xf32>
    %c56 = arith.constant 56 : index
    %c0_88 = arith.constant 0 : index
    %108 = tpu.strided_load %arg6[%c56, %c0_88] {strides = array<i32: 2, 1>} : memref<288x16xf32, #tpu.memory_space<vmem>>, vector<8x16xf32>
    %109 = arith.maximumf %107, %108 : vector<8x16xf32>
    %c0_89 = arith.constant 0 : index
    %c22 = arith.constant 22 : index
    %c0_90 = arith.constant 0 : index
    %110 = vector.load %arg5[%c0_89, %c22, %c0_90] : memref<1x102x16xf32, #tpu.memory_space<vmem>>, vector<1x8x16xf32>
    %111 = vector.shape_cast %110 : vector<1x8x16xf32> to vector<8x16xf32>
    %112 = vector.shape_cast %109 : vector<8x16xf32> to vector<1x8x16xf32>
    tpu.vector_store %arg5[%c0_89, %c22, %c0_90], %112 {strides = array<i32>} : memref<1x102x16xf32, #tpu.memory_space<vmem>>, vector<1x8x16xf32>,
    %c54_91 = arith.constant 54 : index
    %c0_92 = arith.constant 0 : index
    %113 = tpu.strided_load %arg6[%c54_91, %c0_92] {strides = array<i32: 2, 1>} : memref<288x16xf32, #tpu.memory_space<vmem>>, vector<8x16xf32>
    %c55_93 = arith.constant 55 : index
    %c0_94 = arith.constant 0 : index
    %114 = tpu.strided_load %arg6[%c55_93, %c0_94] {strides = array<i32: 2, 1>} : memref<288x16xf32, #tpu.memory_space<vmem>>, vector<8x16xf32>
    %115 = arith.maximumf %113, %114 : vector<8x16xf32>
    %c56_95 = arith.constant 56 : index
    %c0_96 = arith.constant 0 : index
    %116 = tpu.strided_load %arg6[%c56_95, %c0_96] {strides = array<i32: 2, 1>} : memref<288x16xf32, #tpu.memory_space<vmem>>, vector<8x16xf32>
    %117 = arith.maximumf %115, %116 : vector<8x16xf32>
    %c72 = arith.constant 72 : index
    %c0_97 = arith.constant 0 : index
    %118 = tpu.strided_load %arg6[%c72, %c0_97] {strides = array<i32: 2, 1>} : memref<288x16xf32, #tpu.memory_space<vmem>>, vector<8x16xf32>
    %119 = arith.maximumf %117, %118 : vector<8x16xf32>
    %c73 = arith.constant 73 : index
    %c0_98 = arith.constant 0 : index
    %120 = tpu.strided_load %arg6[%c73, %c0_98] {strides = array<i32: 2, 1>} : memref<288x16xf32, #tpu.memory_space<vmem>>, vector<8x16xf32>
    %121 = arith.maximumf %119, %120 : vector<8x16xf32>
    %c74 = arith.constant 74 : index
    %c0_99 = arith.constant 0 : index
    %122 = tpu.strided_load %arg6[%c74, %c0_99] {strides = array<i32: 2, 1>} : memref<288x16xf32, #tpu.memory_space<vmem>>, vector<8x16xf32>
    %123 = arith.maximumf %121, %122 : vector<8x16xf32>
    %c90 = arith.constant 90 : index
    %c0_100 = arith.constant 0 : index
    %124 = tpu.strided_load %arg6[%c90, %c0_100] {strides = array<i32: 2, 1>} : memref<288x16xf32, #tpu.memory_space<vmem>>, vector<8x16xf32>
    %125 = arith.maximumf %123, %124 : vector<8x16xf32>
    %c91 = arith.constant 91 : index
    %c0_101 = arith.constant 0 : index
    %126 = tpu.strided_load %arg6[%c91, %c0_101] {strides = array<i32: 2, 1>} : memref<288x16xf32, #tpu.memory_space<vmem>>, vector<8x16xf32>
    %127 = arith.maximumf %125, %126 : vector<8x16xf32>
    %c92 = arith.constant 92 : index
    %c0_102 = arith.constant 0 : index
    %128 = tpu.strided_load %arg6[%c92, %c0_102] {strides = array<i32: 2, 1>} : memref<288x16xf32, #tpu.memory_space<vmem>>, vector<8x16xf32>
    %129 = arith.maximumf %127, %128 : vector<8x16xf32>
    %c0_103 = arith.constant 0 : index
    %c32 = arith.constant 32 : index
    %c0_104 = arith.constant 0 : index
    %130 = vector.load %arg5[%c0_103, %c32, %c0_104] : memref<1x102x16xf32, #tpu.memory_space<vmem>>, vector<1x8x16xf32>
    %131 = vector.shape_cast %130 : vector<1x8x16xf32> to vector<8x16xf32>
    %132 = vector.shape_cast %129 : vector<8x16xf32> to vector<1x8x16xf32>
    tpu.vector_store %arg5[%c0_103, %c32, %c0_104], %132 {strides = array<i32>} : memref<1x102x16xf32, #tpu.memory_space<vmem>>, vector<1x8x16xf32>,
    %c90_105 = arith.constant 90 : index
    %c0_106 = arith.constant 0 : index
    %133 = tpu.strided_load %arg6[%c90_105, %c0_106] {strides = array<i32: 2, 1>} : memref<288x16xf32, #tpu.memory_space<vmem>>, vector<8x16xf32>
    %c91_107 = arith.constant 91 : index
    %c0_108 = arith.constant 0 : index
    %134 = tpu.strided_load %arg6[%c91_107, %c0_108] {strides = array<i32: 2, 1>} : memref<288x16xf32, #tpu.memory_space<vmem>>, vector<8x16xf32>
    %135 = arith.maximumf %133, %134 : vector<8x16xf32>
    %c92_109 = arith.constant 92 : index
    %c0_110 = arith.constant 0 : index
    %136 = tpu.strided_load %arg6[%c92_109, %c0_110] {strides = array<i32: 2, 1>} : memref<288x16xf32, #tpu.memory_space<vmem>>, vector<8x16xf32>
    %137 = arith.maximumf %135, %136 : vector<8x16xf32>
    %c108 = arith.constant 108 : index
    %c0_111 = arith.constant 0 : index
    %138 = tpu.strided_load %arg6[%c108, %c0_111] {strides = array<i32: 2, 1>} : memref<288x16xf32, #tpu.memory_space<vmem>>, vector<8x16xf32>
    %139 = arith.maximumf %137, %138 : vector<8x16xf32>
    %c109 = arith.constant 109 : index
    %c0_112 = arith.constant 0 : index
    %140 = tpu.strided_load %arg6[%c109, %c0_112] {strides = array<i32: 2, 1>} : memref<288x16xf32, #tpu.memory_space<vmem>>, vector<8x16xf32>
    %141 = arith.maximumf %139, %140 : vector<8x16xf32>
    %c110 = arith.constant 110 : index
    %c0_113 = arith.constant 0 : index
    %142 = tpu.strided_load %arg6[%c110, %c0_113] {strides = array<i32: 2, 1>} : memref<288x16xf32, #tpu.memory_space<vmem>>, vector<8x16xf32>
    %143 = arith.maximumf %141, %142 : vector<8x16xf32>
    %c126 = arith.constant 126 : index
    %c0_114 = arith.constant 0 : index
    %144 = tpu.strided_load %arg6[%c126, %c0_114] {strides = array<i32: 2, 1>} : memref<288x16xf32, #tpu.memory_space<vmem>>, vector<8x16xf32>
    %145 = arith.maximumf %143, %144 : vector<8x16xf32>
    %c127 = arith.constant 127 : index
    %c0_115 = arith.constant 0 : index
    %146 = tpu.strided_load %arg6[%c127, %c0_115] {strides = array<i32: 2, 1>} : memref<288x16xf32, #tpu.memory_space<vmem>>, vector<8x16xf32>
    %147 = arith.maximumf %145, %146 : vector<8x16xf32>
    %c128 = arith.constant 128 : index
    %c0_116 = arith.constant 0 : index
    %148 = tpu.strided_load %arg6[%c128, %c0_116] {strides = array<i32: 2, 1>} : memref<288x16xf32, #tpu.memory_space<vmem>>, vector<8x16xf32>
    %149 = arith.maximumf %147, %148 : vector<8x16xf32>
    %c0_117 = arith.constant 0 : index
    %c42 = arith.constant 42 : index
    %c0_118 = arith.constant 0 : index
    %150 = vector.load %arg5[%c0_117, %c42, %c0_118] : memref<1x102x16xf32, #tpu.memory_space<vmem>>, vector<1x8x16xf32>
    %151 = vector.shape_cast %150 : vector<1x8x16xf32> to vector<8x16xf32>
    %152 = vector.shape_cast %149 : vector<8x16xf32> to vector<1x8x16xf32>
    tpu.vector_store %arg5[%c0_117, %c42, %c0_118], %152 {strides = array<i32>} : memref<1x102x16xf32, #tpu.memory_space<vmem>>, vector<1x8x16xf32>,
    %c126_119 = arith.constant 126 : index
    %c0_120 = arith.constant 0 : index
    %153 = tpu.strided_load %arg6[%c126_119, %c0_120] {strides = array<i32: 2, 1>} : memref<288x16xf32, #tpu.memory_space<vmem>>, vector<8x16xf32>
    %c127_121 = arith.constant 127 : index
    %c0_122 = arith.constant 0 : index
    %154 = tpu.strided_load %arg6[%c127_121, %c0_122] {strides = array<i32: 2, 1>} : memref<288x16xf32, #tpu.memory_space<vmem>>, vector<8x16xf32>
    %155 = arith.maximumf %153, %154 : vector<8x16xf32>
    %c128_123 = arith.constant 128 : index
    %c0_124 = arith.constant 0 : index
    %156 = tpu.strided_load %arg6[%c128_123, %c0_124] {strides = array<i32: 2, 1>} : memref<288x16xf32, #tpu.memory_space<vmem>>, vector<8x16xf32>
    %157 = arith.maximumf %155, %156 : vector<8x16xf32>
    %c144 = arith.constant 144 : index
    %c0_125 = arith.constant 0 : index
    %158 = tpu.strided_load %arg6[%c144, %c0_125] {strides = array<i32: 2, 1>} : memref<288x16xf32, #tpu.memory_space<vmem>>, vector<8x16xf32>
    %159 = arith.maximumf %157, %158 : vector<8x16xf32>
    %c145 = arith.constant 145 : index
    %c0_126 = arith.constant 0 : index
    %160 = tpu.strided_load %arg6[%c145, %c0_126] {strides = array<i32: 2, 1>} : memref<288x16xf32, #tpu.memory_space<vmem>>, vector<8x16xf32>
    %161 = arith.maximumf %159, %160 : vector<8x16xf32>
    %c146 = arith.constant 146 : index
    %c0_127 = arith.constant 0 : index
    %162 = tpu.strided_load %arg6[%c146, %c0_127] {strides = array<i32: 2, 1>} : memref<288x16xf32, #tpu.memory_space<vmem>>, vector<8x16xf32>
    %163 = arith.maximumf %161, %162 : vector<8x16xf32>
    %c162 = arith.constant 162 : index
    %c0_128 = arith.constant 0 : index
    %164 = tpu.strided_load %arg6[%c162, %c0_128] {strides = array<i32: 2, 1>} : memref<288x16xf32, #tpu.memory_space<vmem>>, vector<8x16xf32>
    %165 = arith.maximumf %163, %164 : vector<8x16xf32>
    %c163 = arith.constant 163 : index
    %c0_129 = arith.constant 0 : index
    %166 = tpu.strided_load %arg6[%c163, %c0_129] {strides = array<i32: 2, 1>} : memref<288x16xf32, #tpu.memory_space<vmem>>, vector<8x16xf32>
    %167 = arith.maximumf %165, %166 : vector<8x16xf32>
    %c164 = arith.constant 164 : index
    %c0_130 = arith.constant 0 : index
    %168 = tpu.strided_load %arg6[%c164, %c0_130] {strides = array<i32: 2, 1>} : memref<288x16xf32, #tpu.memory_space<vmem>>, vector<8x16xf32>
    %169 = arith.maximumf %167, %168 : vector<8x16xf32>
    %c0_131 = arith.constant 0 : index
    %c52 = arith.constant 52 : index
    %c0_132 = arith.constant 0 : index
    %170 = vector.load %arg5[%c0_131, %c52, %c0_132] : memref<1x102x16xf32, #tpu.memory_space<vmem>>, vector<1x8x16xf32>
    %171 = vector.shape_cast %170 : vector<1x8x16xf32> to vector<8x16xf32>
    %172 = vector.shape_cast %169 : vector<8x16xf32> to vector<1x8x16xf32>
    tpu.vector_store %arg5[%c0_131, %c52, %c0_132], %172 {strides = array<i32>} : memref<1x102x16xf32, #tpu.memory_space<vmem>>, vector<1x8x16xf32>,
    %c162_133 = arith.constant 162 : index
    %c0_134 = arith.constant 0 : index
    %173 = tpu.strided_load %arg6[%c162_133, %c0_134] {strides = array<i32: 2, 1>} : memref<288x16xf32, #tpu.memory_space<vmem>>, vector<8x16xf32>
    %c163_135 = arith.constant 163 : index
    %c0_136 = arith.constant 0 : index
    %174 = tpu.strided_load %arg6[%c163_135, %c0_136] {strides = array<i32: 2, 1>} : memref<288x16xf32, #tpu.memory_space<vmem>>, vector<8x16xf32>
    %175 = arith.maximumf %173, %174 : vector<8x16xf32>
    %c164_137 = arith.constant 164 : index
    %c0_138 = arith.constant 0 : index
    %176 = tpu.strided_load %arg6[%c164_137, %c0_138] {strides = array<i32: 2, 1>} : memref<288x16xf32, #tpu.memory_space<vmem>>, vector<8x16xf32>
    %177 = arith.maximumf %175, %176 : vector<8x16xf32>
    %c180 = arith.constant 180 : index
    %c0_139 = arith.constant 0 : index
    %178 = tpu.strided_load %arg6[%c180, %c0_139] {strides = array<i32: 2, 1>} : memref<288x16xf32, #tpu.memory_space<vmem>>, vector<8x16xf32>
    %179 = arith.maximumf %177, %178 : vector<8x16xf32>
    %c181 = arith.constant 181 : index
    %c0_140 = arith.constant 0 : index
    %180 = tpu.strided_load %arg6[%c181, %c0_140] {strides = array<i32: 2, 1>} : memref<288x16xf32, #tpu.memory_space<vmem>>, vector<8x16xf32>
    %181 = arith.maximumf %179, %180 : vector<8x16xf32>
    %c182 = arith.constant 182 : index
    %c0_141 = arith.constant 0 : index
    %182 = tpu.strided_load %arg6[%c182, %c0_141] {strides = array<i32: 2, 1>} : memref<288x16xf32, #tpu.memory_space<vmem>>, vector<8x16xf32>
    %183 = arith.maximumf %181, %182 : vector<8x16xf32>
    %c198 = arith.constant 198 : index
    %c0_142 = arith.constant 0 : index
    %184 = tpu.strided_load %arg6[%c198, %c0_142] {strides = array<i32: 2, 1>} : memref<288x16xf32, #tpu.memory_space<vmem>>, vector<8x16xf32>
    %185 = arith.maximumf %183, %184 : vector<8x16xf32>
    %c199 = arith.constant 199 : index
    %c0_143 = arith.constant 0 : index
    %186 = tpu.strided_load %arg6[%c199, %c0_143] {strides = array<i32: 2, 1>} : memref<288x16xf32, #tpu.memory_space<vmem>>, vector<8x16xf32>
    %187 = arith.maximumf %185, %186 : vector<8x16xf32>
    %c200 = arith.constant 200 : index
    %c0_144 = arith.constant 0 : index
    %188 = tpu.strided_load %arg6[%c200, %c0_144] {strides = array<i32: 2, 1>} : memref<288x16xf32, #tpu.memory_space<vmem>>, vector<8x16xf32>
    %189 = arith.maximumf %187, %188 : vector<8x16xf32>
    %c0_145 = arith.constant 0 : index
    %c62 = arith.constant 62 : index
    %c0_146 = arith.constant 0 : index
    %190 = vector.load %arg5[%c0_145, %c62, %c0_146] : memref<1x102x16xf32, #tpu.memory_space<vmem>>, vector<1x8x16xf32>
    %191 = vector.shape_cast %190 : vector<1x8x16xf32> to vector<8x16xf32>
    %192 = vector.shape_cast %189 : vector<8x16xf32> to vector<1x8x16xf32>
    tpu.vector_store %arg5[%c0_145, %c62, %c0_146], %192 {strides = array<i32>} : memref<1x102x16xf32, #tpu.memory_space<vmem>>, vector<1x8x16xf32>,
    %c198_147 = arith.constant 198 : index
    %c0_148 = arith.constant 0 : index
    %193 = tpu.strided_load %arg6[%c198_147, %c0_148] {strides = array<i32: 2, 1>} : memref<288x16xf32, #tpu.memory_space<vmem>>, vector<8x16xf32>
    %c199_149 = arith.constant 199 : index
    %c0_150 = arith.constant 0 : index
    %194 = tpu.strided_load %arg6[%c199_149, %c0_150] {strides = array<i32: 2, 1>} : memref<288x16xf32, #tpu.memory_space<vmem>>, vector<8x16xf32>
    %195 = arith.maximumf %193, %194 : vector<8x16xf32>
    %c200_151 = arith.constant 200 : index
    %c0_152 = arith.constant 0 : index
    %196 = tpu.strided_load %arg6[%c200_151, %c0_152] {strides = array<i32: 2, 1>} : memref<288x16xf32, #tpu.memory_space<vmem>>, vector<8x16xf32>
    %197 = arith.maximumf %195, %196 : vector<8x16xf32>
    %c216 = arith.constant 216 : index
    %c0_153 = arith.constant 0 : index
    %198 = tpu.strided_load %arg6[%c216, %c0_153] {strides = array<i32: 2, 1>} : memref<288x16xf32, #tpu.memory_space<vmem>>, vector<8x16xf32>
    %199 = arith.maximumf %197, %198 : vector<8x16xf32>
    %c217 = arith.constant 217 : index
    %c0_154 = arith.constant 0 : index
    %200 = tpu.strided_load %arg6[%c217, %c0_154] {strides = array<i32: 2, 1>} : memref<288x16xf32, #tpu.memory_space<vmem>>, vector<8x16xf32>
    %201 = arith.maximumf %199, %200 : vector<8x16xf32>
    %c218 = arith.constant 218 : index
    %c0_155 = arith.constant 0 : index
    %202 = tpu.strided_load %arg6[%c218, %c0_155] {strides = array<i32: 2, 1>} : memref<288x16xf32, #tpu.memory_space<vmem>>, vector<8x16xf32>
    %203 = arith.maximumf %201, %202 : vector<8x16xf32>
    %c234 = arith.constant 234 : index
    %c0_156 = arith.constant 0 : index
    %204 = tpu.strided_load %arg6[%c234, %c0_156] {strides = array<i32: 2, 1>} : memref<288x16xf32, #tpu.memory_space<vmem>>, vector<8x16xf32>
    %205 = arith.maximumf %203, %204 : vector<8x16xf32>
    %c235 = arith.constant 235 : index
    %c0_157 = arith.constant 0 : index
    %206 = tpu.strided_load %arg6[%c235, %c0_157] {strides = array<i32: 2, 1>} : memref<288x16xf32, #tpu.memory_space<vmem>>, vector<8x16xf32>
    %207 = arith.maximumf %205, %206 : vector<8x16xf32>
    %c236 = arith.constant 236 : index
    %c0_158 = arith.constant 0 : index
    %208 = tpu.strided_load %arg6[%c236, %c0_158] {strides = array<i32: 2, 1>} : memref<288x16xf32, #tpu.memory_space<vmem>>, vector<8x16xf32>
    %209 = arith.maximumf %207, %208 : vector<8x16xf32>
    %c0_159 = arith.constant 0 : index
    %c72_160 = arith.constant 72 : index
    %c0_161 = arith.constant 0 : index
    %210 = vector.load %arg5[%c0_159, %c72_160, %c0_161] : memref<1x102x16xf32, #tpu.memory_space<vmem>>, vector<1x8x16xf32>
    %211 = vector.shape_cast %210 : vector<1x8x16xf32> to vector<8x16xf32>
    %212 = vector.shape_cast %209 : vector<8x16xf32> to vector<1x8x16xf32>
    tpu.vector_store %arg5[%c0_159, %c72_160, %c0_161], %212 {strides = array<i32>} : memref<1x102x16xf32, #tpu.memory_space<vmem>>, vector<1x8x16xf32>,
    %c234_162 = arith.constant 234 : index
    %c0_163 = arith.constant 0 : index
    %213 = tpu.strided_load %arg6[%c234_162, %c0_163] {strides = array<i32: 2, 1>} : memref<288x16xf32, #tpu.memory_space<vmem>>, vector<8x16xf32>
    %c235_164 = arith.constant 235 : index
    %c0_165 = arith.constant 0 : index
    %214 = tpu.strided_load %arg6[%c235_164, %c0_165] {strides = array<i32: 2, 1>} : memref<288x16xf32, #tpu.memory_space<vmem>>, vector<8x16xf32>
    %215 = arith.maximumf %213, %214 : vector<8x16xf32>
    %c236_166 = arith.constant 236 : index
    %c0_167 = arith.constant 0 : index
    %216 = tpu.strided_load %arg6[%c236_166, %c0_167] {strides = array<i32: 2, 1>} : memref<288x16xf32, #tpu.memory_space<vmem>>, vector<8x16xf32>
    %217 = arith.maximumf %215, %216 : vector<8x16xf32>
    %c252 = arith.constant 252 : index
    %c0_168 = arith.constant 0 : index
    %218 = tpu.strided_load %arg6[%c252, %c0_168] {strides = array<i32: 2, 1>} : memref<288x16xf32, #tpu.memory_space<vmem>>, vector<8x16xf32>
    %219 = arith.maximumf %217, %218 : vector<8x16xf32>
    %c253 = arith.constant 253 : index
    %c0_169 = arith.constant 0 : index
    %220 = tpu.strided_load %arg6[%c253, %c0_169] {strides = array<i32: 2, 1>} : memref<288x16xf32, #tpu.memory_space<vmem>>, vector<8x16xf32>
    %221 = arith.maximumf %219, %220 : vector<8x16xf32>
    %c254 = arith.constant 254 : index
    %c0_170 = arith.constant 0 : index
    %222 = tpu.strided_load %arg6[%c254, %c0_170] {strides = array<i32: 2, 1>} : memref<288x16xf32, #tpu.memory_space<vmem>>, vector<8x16xf32>
    %223 = arith.maximumf %221, %222 : vector<8x16xf32>
    %c270 = arith.constant 270 : index
    %c0_171 = arith.constant 0 : index
    %224 = tpu.strided_load %arg6[%c270, %c0_171] {strides = array<i32: 2, 1>} : memref<288x16xf32, #tpu.memory_space<vmem>>, vector<8x16xf32>
    %225 = arith.maximumf %223, %224 : vector<8x16xf32>
    %c271 = arith.constant 271 : index
    %c0_172 = arith.constant 0 : index
    %226 = tpu.strided_load %arg6[%c271, %c0_172] {strides = array<i32: 2, 1>} : memref<288x16xf32, #tpu.memory_space<vmem>>, vector<8x16xf32>
    %227 = arith.maximumf %225, %226 : vector<8x16xf32>
    %c272 = arith.constant 272 : index
    %c0_173 = arith.constant 0 : index
    %228 = tpu.strided_load %arg6[%c272, %c0_173] {strides = array<i32: 2, 1>} : memref<288x16xf32, #tpu.memory_space<vmem>>, vector<8x16xf32>
    %229 = arith.maximumf %227, %228 : vector<8x16xf32>
    %c0_174 = arith.constant 0 : index
    %c82 = arith.constant 82 : index
    %c0_175 = arith.constant 0 : index
    %230 = vector.load %arg5[%c0_174, %c82, %c0_175] : memref<1x102x16xf32, #tpu.memory_space<vmem>>, vector<1x8x16xf32>
    %231 = vector.shape_cast %230 : vector<1x8x16xf32> to vector<8x16xf32>
    %232 = vector.shape_cast %229 : vector<8x16xf32> to vector<1x8x16xf32>
    tpu.vector_store %arg5[%c0_174, %c82, %c0_175], %232 {strides = array<i32>} : memref<1x102x16xf32, #tpu.memory_space<vmem>>, vector<1x8x16xf32>,
    return
  }
  func.func @transform_0(%arg0: i32) -> (i32, i32, i32) {
    %c0_i32 = arith.constant 0 : i32
    %c0_i32_0 = arith.constant 0 : i32
    %c0_i32_1 = arith.constant 0 : i32
    return %arg0, %c0_i32, %c0_i32_0 : i32, i32, i32
  }
  func.func @transform_1(%arg0: i32) -> (i32, i32, i32) {
    %c0_i32 = arith.constant 0 : i32
    %c0_i32_0 = arith.constant 0 : i32
    %c0_i32_1 = arith.constant 0 : i32
    %c0_i32_2 = arith.constant 0 : i32
    return %c0_i32, %c0_i32_0, %c0_i32_1 : i32, i32, i32
  }
  func.func @transform_2(%arg0: i32) -> (i32, i32) {
    %c0_i32 = arith.constant 0 : i32
    %c0_i32_0 = arith.constant 0 : i32
    %c0_i32_1 = arith.constant 0 : i32
    return %c0_i32, %c0_i32_0 : i32, i32
  }
  func.func @transform_3(%arg0: i32) -> (i32, i32) {
    %c0_i32 = arith.constant 0 : i32
    %c0_i32_0 = arith.constant 0 : i32
    %c0_i32_1 = arith.constant 0 : i32
    return %c0_i32, %c0_i32_0 : i32, i32
  }
  func.func @transform_4(%arg0: i32) -> (i32, i32, i32) {
    %c0_i32 = arith.constant 0 : i32
    %c0_i32_0 = arith.constant 0 : i32
    %c0_i32_1 = arith.constant 0 : i32
    return %arg0, %c0_i32, %c0_i32_0 : i32, i32, i32
  }
}

module attributes {stable_mosaic.version = 11 : i64} {
  func.func @kernel(%arg0: i32, %arg1: memref<1x102x16xf32, #tpu.memory_space<vmem>>, %arg2: memref<9x16x16xbf16, #tpu.memory_space<vmem>>, %arg3: memref<1x16xf32, #tpu.memory_space<vmem>>, %arg4: memref<9x16x16xbf16, #tpu.memory_space<vmem>>, %arg5: memref<1x16xf32, #tpu.memory_space<vmem>>, %arg6: memref<80x16xf32, #tpu.memory_space<vmem>>, %arg7: memref<1x102x16xf32, #tpu.memory_space<vmem>>, %arg8: memref<102x16xf32, #tpu.memory_space<vmem>>, %arg9: memref<102x16xf32, #tpu.memory_space<vmem>>) attributes {dimension_semantics = [#tpu.dimension_semantics<parallel>], iteration_bounds = array<i64: 2>, scalar_prefetch = 0 : i64, scratch_operands = 2 : i64, tpu.core_type = #tpu.core_type<tc>, window_params = [{transform_indices = @transform_0, window_bounds = array<i64: 1, 102, 16>}, {pipeline_mode = #tpu.pipeline_mode<synchronous>, transform_indices = @transform_1, window_bounds = array<i64: 9, 16, 16>}, {pipeline_mode = #tpu.pipeline_mode<synchronous>, transform_indices = @transform_2, window_bounds = array<i64: 1, 16>}, {pipeline_mode = #tpu.pipeline_mode<synchronous>, transform_indices = @transform_3, window_bounds = array<i64: 9, 16, 16>}, {pipeline_mode = #tpu.pipeline_mode<synchronous>, transform_indices = @transform_4, window_bounds = array<i64: 1, 16>}, {pipeline_mode = #tpu.pipeline_mode<synchronous>, transform_indices = @transform_5, window_bounds = array<i64: 80, 16>}, {transform_indices = @transform_6, window_bounds = array<i64: 1, 102, 16>}]} {
    %c0 = arith.constant 0 : index
    %c0_0 = arith.constant 0 : index
    %c0_1 = arith.constant 0 : index
    %0 = vector.load %arg1[%c0, %c0_0, %c0_1] : memref<1x102x16xf32, #tpu.memory_space<vmem>>, vector<1x102x16xf32>
    %1 = vector.shape_cast %0 : vector<1x102x16xf32> to vector<102x16xf32>
    %cst = arith.constant 0.000000e+00 : f32
    %2 = vector.broadcast %cst : f32 to vector<102x16xf32>
    %3 = arith.maximumf %1, %2 : vector<102x16xf32>
    %c0_2 = arith.constant 0 : index
    %c0_3 = arith.constant 0 : index
    %4 = vector.load %arg8[%c0_2, %c0_3] : memref<102x16xf32, #tpu.memory_space<vmem>>, vector<102x16xf32>
    tpu.vector_store %arg8[%c0_2, %c0_3], %3 {strides = array<i32>} : memref<102x16xf32, #tpu.memory_space<vmem>>, vector<102x16xf32>,
    %c0_4 = arith.constant 0 : index
    %c0_5 = arith.constant 0 : index
    %5 = vector.load %arg6[%c0_4, %c0_5] : memref<80x16xf32, #tpu.memory_space<vmem>>, vector<80x16xf32>
    %cst_6 = arith.constant 0.000000e+00 : f32
    %6 = vector.broadcast %cst_6 : f32 to vector<80x16xf32>
    %c0_7 = arith.constant 0 : index
    %c0_8 = arith.constant 0 : index
    %7 = vector.load %arg8[%c0_7, %c0_8] : memref<102x16xf32, #tpu.memory_space<vmem>>, vector<80x16xf32>
    %8 = arith.truncf %7 : vector<80x16xf32> to vector<80x16xbf16>
    %c0_9 = arith.constant 0 : index
    %c0_10 = arith.constant 0 : index
    %c0_11 = arith.constant 0 : index
    %9 = vector.load %arg2[%c0_9, %c0_10, %c0_11] : memref<9x16x16xbf16, #tpu.memory_space<vmem>>, vector<1x16x16xbf16>
    %10 = vector.shape_cast %9 : vector<1x16x16xbf16> to vector<16x16xbf16>
    %cst_12 = arith.constant dense<0.000000e+00> : vector<80x16xf32>
    %11 = tpu.matmul %8, %10, %cst_12 {dimension_numbers = #tpu.dot_dimension_numbers<[1], [0], [0], [1], [0, 0, 1, 1], [], []>} : vector<80x16xbf16>, vector<16x16xbf16>, vector<80x16xf32> -> vector<80x16xf32>
    %12 = arith.addf %6, %11 : vector<80x16xf32>
    %c1 = arith.constant 1 : index
    %c0_13 = arith.constant 0 : index
    %13 = vector.load %arg8[%c1, %c0_13] : memref<102x16xf32, #tpu.memory_space<vmem>>, vector<80x16xf32>
    %14 = arith.truncf %13 : vector<80x16xf32> to vector<80x16xbf16>
    %c1_14 = arith.constant 1 : index
    %c0_15 = arith.constant 0 : index
    %c0_16 = arith.constant 0 : index
    %15 = vector.load %arg2[%c1_14, %c0_15, %c0_16] : memref<9x16x16xbf16, #tpu.memory_space<vmem>>, vector<1x16x16xbf16>
    %16 = vector.shape_cast %15 : vector<1x16x16xbf16> to vector<16x16xbf16>
    %cst_17 = arith.constant dense<0.000000e+00> : vector<80x16xf32>
    %17 = tpu.matmul %14, %16, %cst_17 {dimension_numbers = #tpu.dot_dimension_numbers<[1], [0], [0], [1], [0, 0, 1, 1], [], []>} : vector<80x16xbf16>, vector<16x16xbf16>, vector<80x16xf32> -> vector<80x16xf32>
    %18 = arith.addf %12, %17 : vector<80x16xf32>
    %c2 = arith.constant 2 : index
    %c0_18 = arith.constant 0 : index
    %19 = vector.load %arg8[%c2, %c0_18] : memref<102x16xf32, #tpu.memory_space<vmem>>, vector<80x16xf32>
    %20 = arith.truncf %19 : vector<80x16xf32> to vector<80x16xbf16>
    %c2_19 = arith.constant 2 : index
    %c0_20 = arith.constant 0 : index
    %c0_21 = arith.constant 0 : index
    %21 = vector.load %arg2[%c2_19, %c0_20, %c0_21] : memref<9x16x16xbf16, #tpu.memory_space<vmem>>, vector<1x16x16xbf16>
    %22 = vector.shape_cast %21 : vector<1x16x16xbf16> to vector<16x16xbf16>
    %cst_22 = arith.constant dense<0.000000e+00> : vector<80x16xf32>
    %23 = tpu.matmul %20, %22, %cst_22 {dimension_numbers = #tpu.dot_dimension_numbers<[1], [0], [0], [1], [0, 0, 1, 1], [], []>} : vector<80x16xbf16>, vector<16x16xbf16>, vector<80x16xf32> -> vector<80x16xf32>
    %24 = arith.addf %18, %23 : vector<80x16xf32>
    %c10 = arith.constant 10 : index
    %c0_23 = arith.constant 0 : index
    %25 = vector.load %arg8[%c10, %c0_23] : memref<102x16xf32, #tpu.memory_space<vmem>>, vector<80x16xf32>
    %26 = arith.truncf %25 : vector<80x16xf32> to vector<80x16xbf16>
    %c3 = arith.constant 3 : index
    %c0_24 = arith.constant 0 : index
    %c0_25 = arith.constant 0 : index
    %27 = vector.load %arg2[%c3, %c0_24, %c0_25] : memref<9x16x16xbf16, #tpu.memory_space<vmem>>, vector<1x16x16xbf16>
    %28 = vector.shape_cast %27 : vector<1x16x16xbf16> to vector<16x16xbf16>
    %cst_26 = arith.constant dense<0.000000e+00> : vector<80x16xf32>
    %29 = tpu.matmul %26, %28, %cst_26 {dimension_numbers = #tpu.dot_dimension_numbers<[1], [0], [0], [1], [0, 0, 1, 1], [], []>} : vector<80x16xbf16>, vector<16x16xbf16>, vector<80x16xf32> -> vector<80x16xf32>
    %30 = arith.addf %24, %29 : vector<80x16xf32>
    %c11 = arith.constant 11 : index
    %c0_27 = arith.constant 0 : index
    %31 = vector.load %arg8[%c11, %c0_27] : memref<102x16xf32, #tpu.memory_space<vmem>>, vector<80x16xf32>
    %32 = arith.truncf %31 : vector<80x16xf32> to vector<80x16xbf16>
    %c4 = arith.constant 4 : index
    %c0_28 = arith.constant 0 : index
    %c0_29 = arith.constant 0 : index
    %33 = vector.load %arg2[%c4, %c0_28, %c0_29] : memref<9x16x16xbf16, #tpu.memory_space<vmem>>, vector<1x16x16xbf16>
    %34 = vector.shape_cast %33 : vector<1x16x16xbf16> to vector<16x16xbf16>
    %cst_30 = arith.constant dense<0.000000e+00> : vector<80x16xf32>
    %35 = tpu.matmul %32, %34, %cst_30 {dimension_numbers = #tpu.dot_dimension_numbers<[1], [0], [0], [1], [0, 0, 1, 1], [], []>} : vector<80x16xbf16>, vector<16x16xbf16>, vector<80x16xf32> -> vector<80x16xf32>
    %36 = arith.addf %30, %35 : vector<80x16xf32>
    %c12 = arith.constant 12 : index
    %c0_31 = arith.constant 0 : index
    %37 = vector.load %arg8[%c12, %c0_31] : memref<102x16xf32, #tpu.memory_space<vmem>>, vector<80x16xf32>
    %38 = arith.truncf %37 : vector<80x16xf32> to vector<80x16xbf16>
    %c5 = arith.constant 5 : index
    %c0_32 = arith.constant 0 : index
    %c0_33 = arith.constant 0 : index
    %39 = vector.load %arg2[%c5, %c0_32, %c0_33] : memref<9x16x16xbf16, #tpu.memory_space<vmem>>, vector<1x16x16xbf16>
    %40 = vector.shape_cast %39 : vector<1x16x16xbf16> to vector<16x16xbf16>
    %cst_34 = arith.constant dense<0.000000e+00> : vector<80x16xf32>
    %41 = tpu.matmul %38, %40, %cst_34 {dimension_numbers = #tpu.dot_dimension_numbers<[1], [0], [0], [1], [0, 0, 1, 1], [], []>} : vector<80x16xbf16>, vector<16x16xbf16>, vector<80x16xf32> -> vector<80x16xf32>
    %42 = arith.addf %36, %41 : vector<80x16xf32>
    %c20 = arith.constant 20 : index
    %c0_35 = arith.constant 0 : index
    %43 = vector.load %arg8[%c20, %c0_35] : memref<102x16xf32, #tpu.memory_space<vmem>>, vector<80x16xf32>
    %44 = arith.truncf %43 : vector<80x16xf32> to vector<80x16xbf16>
    %c6 = arith.constant 6 : index
    %c0_36 = arith.constant 0 : index
    %c0_37 = arith.constant 0 : index
    %45 = vector.load %arg2[%c6, %c0_36, %c0_37] : memref<9x16x16xbf16, #tpu.memory_space<vmem>>, vector<1x16x16xbf16>
    %46 = vector.shape_cast %45 : vector<1x16x16xbf16> to vector<16x16xbf16>
    %cst_38 = arith.constant dense<0.000000e+00> : vector<80x16xf32>
    %47 = tpu.matmul %44, %46, %cst_38 {dimension_numbers = #tpu.dot_dimension_numbers<[1], [0], [0], [1], [0, 0, 1, 1], [], []>} : vector<80x16xbf16>, vector<16x16xbf16>, vector<80x16xf32> -> vector<80x16xf32>
    %48 = arith.addf %42, %47 : vector<80x16xf32>
    %c21 = arith.constant 21 : index
    %c0_39 = arith.constant 0 : index
    %49 = vector.load %arg8[%c21, %c0_39] : memref<102x16xf32, #tpu.memory_space<vmem>>, vector<80x16xf32>
    %50 = arith.truncf %49 : vector<80x16xf32> to vector<80x16xbf16>
    %c7 = arith.constant 7 : index
    %c0_40 = arith.constant 0 : index
    %c0_41 = arith.constant 0 : index
    %51 = vector.load %arg2[%c7, %c0_40, %c0_41] : memref<9x16x16xbf16, #tpu.memory_space<vmem>>, vector<1x16x16xbf16>
    %52 = vector.shape_cast %51 : vector<1x16x16xbf16> to vector<16x16xbf16>
    %cst_42 = arith.constant dense<0.000000e+00> : vector<80x16xf32>
    %53 = tpu.matmul %50, %52, %cst_42 {dimension_numbers = #tpu.dot_dimension_numbers<[1], [0], [0], [1], [0, 0, 1, 1], [], []>} : vector<80x16xbf16>, vector<16x16xbf16>, vector<80x16xf32> -> vector<80x16xf32>
    %54 = arith.addf %48, %53 : vector<80x16xf32>
    %c22 = arith.constant 22 : index
    %c0_43 = arith.constant 0 : index
    %55 = vector.load %arg8[%c22, %c0_43] : memref<102x16xf32, #tpu.memory_space<vmem>>, vector<80x16xf32>
    %56 = arith.truncf %55 : vector<80x16xf32> to vector<80x16xbf16>
    %c8 = arith.constant 8 : index
    %c0_44 = arith.constant 0 : index
    %c0_45 = arith.constant 0 : index
    %57 = vector.load %arg2[%c8, %c0_44, %c0_45] : memref<9x16x16xbf16, #tpu.memory_space<vmem>>, vector<1x16x16xbf16>
    %58 = vector.shape_cast %57 : vector<1x16x16xbf16> to vector<16x16xbf16>
    %cst_46 = arith.constant dense<0.000000e+00> : vector<80x16xf32>
    %59 = tpu.matmul %56, %58, %cst_46 {dimension_numbers = #tpu.dot_dimension_numbers<[1], [0], [0], [1], [0, 0, 1, 1], [], []>} : vector<80x16xbf16>, vector<16x16xbf16>, vector<80x16xf32> -> vector<80x16xf32>
    %60 = arith.addf %54, %59 : vector<80x16xf32>
    %c0_47 = arith.constant 0 : index
    %c0_48 = arith.constant 0 : index
    %61 = vector.load %arg3[%c0_47, %c0_48] : memref<1x16xf32, #tpu.memory_space<vmem>>, vector<1x16xf32>
    %62 = vector.broadcast %61 : vector<1x16xf32> to vector<80x16xf32>
    %63 = arith.addf %60, %62 : vector<80x16xf32>
    %cst_49 = arith.constant 0.000000e+00 : f32
    %64 = vector.broadcast %cst_49 : f32 to vector<102x16xf32>
    %c0_50 = arith.constant 0 : index
    %c0_51 = arith.constant 0 : index
    %65 = vector.load %arg9[%c0_50, %c0_51] : memref<102x16xf32, #tpu.memory_space<vmem>>, vector<102x16xf32>
    tpu.vector_store %arg9[%c0_50, %c0_51], %64 {strides = array<i32>} : memref<102x16xf32, #tpu.memory_space<vmem>>, vector<102x16xf32>,
    %cst_52 = arith.constant 0.000000e+00 : f32
    %66 = vector.broadcast %cst_52 : f32 to vector<80x16xf32>
    %67 = arith.maximumf %63, %66 : vector<80x16xf32>
    %68 = arith.mulf %67, %5 : vector<80x16xf32>
    %c11_53 = arith.constant 11 : index
    %c0_54 = arith.constant 0 : index
    %69 = vector.load %arg9[%c11_53, %c0_54] : memref<102x16xf32, #tpu.memory_space<vmem>>, vector<80x16xf32>
    tpu.vector_store %arg9[%c11_53, %c0_54], %68 {strides = array<i32>} : memref<102x16xf32, #tpu.memory_space<vmem>>, vector<80x16xf32>,
    %cst_55 = arith.constant 0.000000e+00 : f32
    %70 = vector.broadcast %cst_55 : f32 to vector<80x16xf32>
    %c0_56 = arith.constant 0 : index
    %c0_57 = arith.constant 0 : index
    %71 = vector.load %arg9[%c0_56, %c0_57] : memref<102x16xf32, #tpu.memory_space<vmem>>, vector<80x16xf32>
    %72 = arith.truncf %71 : vector<80x16xf32> to vector<80x16xbf16>
    %c0_58 = arith.constant 0 : index
    %c0_59 = arith.constant 0 : index
    %c0_60 = arith.constant 0 : index
    %73 = vector.load %arg4[%c0_58, %c0_59, %c0_60] : memref<9x16x16xbf16, #tpu.memory_space<vmem>>, vector<1x16x16xbf16>
    %74 = vector.shape_cast %73 : vector<1x16x16xbf16> to vector<16x16xbf16>
    %cst_61 = arith.constant dense<0.000000e+00> : vector<80x16xf32>
    %75 = tpu.matmul %72, %74, %cst_61 {dimension_numbers = #tpu.dot_dimension_numbers<[1], [0], [0], [1], [0, 0, 1, 1], [], []>} : vector<80x16xbf16>, vector<16x16xbf16>, vector<80x16xf32> -> vector<80x16xf32>
    %76 = arith.addf %70, %75 : vector<80x16xf32>
    %c1_62 = arith.constant 1 : index
    %c0_63 = arith.constant 0 : index
    %77 = vector.load %arg9[%c1_62, %c0_63] : memref<102x16xf32, #tpu.memory_space<vmem>>, vector<80x16xf32>
    %78 = arith.truncf %77 : vector<80x16xf32> to vector<80x16xbf16>
    %c1_64 = arith.constant 1 : index
    %c0_65 = arith.constant 0 : index
    %c0_66 = arith.constant 0 : index
    %79 = vector.load %arg4[%c1_64, %c0_65, %c0_66] : memref<9x16x16xbf16, #tpu.memory_space<vmem>>, vector<1x16x16xbf16>
    %80 = vector.shape_cast %79 : vector<1x16x16xbf16> to vector<16x16xbf16>
    %cst_67 = arith.constant dense<0.000000e+00> : vector<80x16xf32>
    %81 = tpu.matmul %78, %80, %cst_67 {dimension_numbers = #tpu.dot_dimension_numbers<[1], [0], [0], [1], [0, 0, 1, 1], [], []>} : vector<80x16xbf16>, vector<16x16xbf16>, vector<80x16xf32> -> vector<80x16xf32>
    %82 = arith.addf %76, %81 : vector<80x16xf32>
    %c2_68 = arith.constant 2 : index
    %c0_69 = arith.constant 0 : index
    %83 = vector.load %arg9[%c2_68, %c0_69] : memref<102x16xf32, #tpu.memory_space<vmem>>, vector<80x16xf32>
    %84 = arith.truncf %83 : vector<80x16xf32> to vector<80x16xbf16>
    %c2_70 = arith.constant 2 : index
    %c0_71 = arith.constant 0 : index
    %c0_72 = arith.constant 0 : index
    %85 = vector.load %arg4[%c2_70, %c0_71, %c0_72] : memref<9x16x16xbf16, #tpu.memory_space<vmem>>, vector<1x16x16xbf16>
    %86 = vector.shape_cast %85 : vector<1x16x16xbf16> to vector<16x16xbf16>
    %cst_73 = arith.constant dense<0.000000e+00> : vector<80x16xf32>
    %87 = tpu.matmul %84, %86, %cst_73 {dimension_numbers = #tpu.dot_dimension_numbers<[1], [0], [0], [1], [0, 0, 1, 1], [], []>} : vector<80x16xbf16>, vector<16x16xbf16>, vector<80x16xf32> -> vector<80x16xf32>
    %88 = arith.addf %82, %87 : vector<80x16xf32>
    %c10_74 = arith.constant 10 : index
    %c0_75 = arith.constant 0 : index
    %89 = vector.load %arg9[%c10_74, %c0_75] : memref<102x16xf32, #tpu.memory_space<vmem>>, vector<80x16xf32>
    %90 = arith.truncf %89 : vector<80x16xf32> to vector<80x16xbf16>
    %c3_76 = arith.constant 3 : index
    %c0_77 = arith.constant 0 : index
    %c0_78 = arith.constant 0 : index
    %91 = vector.load %arg4[%c3_76, %c0_77, %c0_78] : memref<9x16x16xbf16, #tpu.memory_space<vmem>>, vector<1x16x16xbf16>
    %92 = vector.shape_cast %91 : vector<1x16x16xbf16> to vector<16x16xbf16>
    %cst_79 = arith.constant dense<0.000000e+00> : vector<80x16xf32>
    %93 = tpu.matmul %90, %92, %cst_79 {dimension_numbers = #tpu.dot_dimension_numbers<[1], [0], [0], [1], [0, 0, 1, 1], [], []>} : vector<80x16xbf16>, vector<16x16xbf16>, vector<80x16xf32> -> vector<80x16xf32>
    %94 = arith.addf %88, %93 : vector<80x16xf32>
    %c11_80 = arith.constant 11 : index
    %c0_81 = arith.constant 0 : index
    %95 = vector.load %arg9[%c11_80, %c0_81] : memref<102x16xf32, #tpu.memory_space<vmem>>, vector<80x16xf32>
    %96 = arith.truncf %95 : vector<80x16xf32> to vector<80x16xbf16>
    %c4_82 = arith.constant 4 : index
    %c0_83 = arith.constant 0 : index
    %c0_84 = arith.constant 0 : index
    %97 = vector.load %arg4[%c4_82, %c0_83, %c0_84] : memref<9x16x16xbf16, #tpu.memory_space<vmem>>, vector<1x16x16xbf16>
    %98 = vector.shape_cast %97 : vector<1x16x16xbf16> to vector<16x16xbf16>
    %cst_85 = arith.constant dense<0.000000e+00> : vector<80x16xf32>
    %99 = tpu.matmul %96, %98, %cst_85 {dimension_numbers = #tpu.dot_dimension_numbers<[1], [0], [0], [1], [0, 0, 1, 1], [], []>} : vector<80x16xbf16>, vector<16x16xbf16>, vector<80x16xf32> -> vector<80x16xf32>
    %100 = arith.addf %94, %99 : vector<80x16xf32>
    %c12_86 = arith.constant 12 : index
    %c0_87 = arith.constant 0 : index
    %101 = vector.load %arg9[%c12_86, %c0_87] : memref<102x16xf32, #tpu.memory_space<vmem>>, vector<80x16xf32>
    %102 = arith.truncf %101 : vector<80x16xf32> to vector<80x16xbf16>
    %c5_88 = arith.constant 5 : index
    %c0_89 = arith.constant 0 : index
    %c0_90 = arith.constant 0 : index
    %103 = vector.load %arg4[%c5_88, %c0_89, %c0_90] : memref<9x16x16xbf16, #tpu.memory_space<vmem>>, vector<1x16x16xbf16>
    %104 = vector.shape_cast %103 : vector<1x16x16xbf16> to vector<16x16xbf16>
    %cst_91 = arith.constant dense<0.000000e+00> : vector<80x16xf32>
    %105 = tpu.matmul %102, %104, %cst_91 {dimension_numbers = #tpu.dot_dimension_numbers<[1], [0], [0], [1], [0, 0, 1, 1], [], []>} : vector<80x16xbf16>, vector<16x16xbf16>, vector<80x16xf32> -> vector<80x16xf32>
    %106 = arith.addf %100, %105 : vector<80x16xf32>
    %c20_92 = arith.constant 20 : index
    %c0_93 = arith.constant 0 : index
    %107 = vector.load %arg9[%c20_92, %c0_93] : memref<102x16xf32, #tpu.memory_space<vmem>>, vector<80x16xf32>
    %108 = arith.truncf %107 : vector<80x16xf32> to vector<80x16xbf16>
    %c6_94 = arith.constant 6 : index
    %c0_95 = arith.constant 0 : index
    %c0_96 = arith.constant 0 : index
    %109 = vector.load %arg4[%c6_94, %c0_95, %c0_96] : memref<9x16x16xbf16, #tpu.memory_space<vmem>>, vector<1x16x16xbf16>
    %110 = vector.shape_cast %109 : vector<1x16x16xbf16> to vector<16x16xbf16>
    %cst_97 = arith.constant dense<0.000000e+00> : vector<80x16xf32>
    %111 = tpu.matmul %108, %110, %cst_97 {dimension_numbers = #tpu.dot_dimension_numbers<[1], [0], [0], [1], [0, 0, 1, 1], [], []>} : vector<80x16xbf16>, vector<16x16xbf16>, vector<80x16xf32> -> vector<80x16xf32>
    %112 = arith.addf %106, %111 : vector<80x16xf32>
    %c21_98 = arith.constant 21 : index
    %c0_99 = arith.constant 0 : index
    %113 = vector.load %arg9[%c21_98, %c0_99] : memref<102x16xf32, #tpu.memory_space<vmem>>, vector<80x16xf32>
    %114 = arith.truncf %113 : vector<80x16xf32> to vector<80x16xbf16>
    %c7_100 = arith.constant 7 : index
    %c0_101 = arith.constant 0 : index
    %c0_102 = arith.constant 0 : index
    %115 = vector.load %arg4[%c7_100, %c0_101, %c0_102] : memref<9x16x16xbf16, #tpu.memory_space<vmem>>, vector<1x16x16xbf16>
    %116 = vector.shape_cast %115 : vector<1x16x16xbf16> to vector<16x16xbf16>
    %cst_103 = arith.constant dense<0.000000e+00> : vector<80x16xf32>
    %117 = tpu.matmul %114, %116, %cst_103 {dimension_numbers = #tpu.dot_dimension_numbers<[1], [0], [0], [1], [0, 0, 1, 1], [], []>} : vector<80x16xbf16>, vector<16x16xbf16>, vector<80x16xf32> -> vector<80x16xf32>
    %118 = arith.addf %112, %117 : vector<80x16xf32>
    %c22_104 = arith.constant 22 : index
    %c0_105 = arith.constant 0 : index
    %119 = vector.load %arg9[%c22_104, %c0_105] : memref<102x16xf32, #tpu.memory_space<vmem>>, vector<80x16xf32>
    %120 = arith.truncf %119 : vector<80x16xf32> to vector<80x16xbf16>
    %c8_106 = arith.constant 8 : index
    %c0_107 = arith.constant 0 : index
    %c0_108 = arith.constant 0 : index
    %121 = vector.load %arg4[%c8_106, %c0_107, %c0_108] : memref<9x16x16xbf16, #tpu.memory_space<vmem>>, vector<1x16x16xbf16>
    %122 = vector.shape_cast %121 : vector<1x16x16xbf16> to vector<16x16xbf16>
    %cst_109 = arith.constant dense<0.000000e+00> : vector<80x16xf32>
    %123 = tpu.matmul %120, %122, %cst_109 {dimension_numbers = #tpu.dot_dimension_numbers<[1], [0], [0], [1], [0, 0, 1, 1], [], []>} : vector<80x16xbf16>, vector<16x16xbf16>, vector<80x16xf32> -> vector<80x16xf32>
    %124 = arith.addf %118, %123 : vector<80x16xf32>
    %c0_110 = arith.constant 0 : index
    %c0_111 = arith.constant 0 : index
    %125 = vector.load %arg5[%c0_110, %c0_111] : memref<1x16xf32, #tpu.memory_space<vmem>>, vector<1x16xf32>
    %126 = vector.broadcast %125 : vector<1x16xf32> to vector<80x16xf32>
    %127 = arith.addf %124, %126 : vector<80x16xf32>
    %c0_112 = arith.constant 0 : index
    %c0_113 = arith.constant 0 : index
    %c0_114 = arith.constant 0 : index
    %128 = vector.load %arg7[%c0_112, %c0_113, %c0_114] : memref<1x102x16xf32, #tpu.memory_space<vmem>>, vector<1x102x16xf32>
    %129 = vector.shape_cast %128 : vector<1x102x16xf32> to vector<102x16xf32>
    %130 = vector.shape_cast %1 : vector<102x16xf32> to vector<1x102x16xf32>
    tpu.vector_store %arg7[%c0_112, %c0_113, %c0_114], %130 {strides = array<i32>} : memref<1x102x16xf32, #tpu.memory_space<vmem>>, vector<1x102x16xf32>,
    %c0_115 = arith.constant 0 : index
    %c11_116 = arith.constant 11 : index
    %c0_117 = arith.constant 0 : index
    %131 = vector.load %arg1[%c0_115, %c11_116, %c0_117] : memref<1x102x16xf32, #tpu.memory_space<vmem>>, vector<1x80x16xf32>
    %132 = vector.shape_cast %131 : vector<1x80x16xf32> to vector<80x16xf32>
    %133 = arith.mulf %127, %5 : vector<80x16xf32>
    %134 = arith.addf %132, %133 : vector<80x16xf32>
    %c0_118 = arith.constant 0 : index
    %c11_119 = arith.constant 11 : index
    %c0_120 = arith.constant 0 : index
    %135 = vector.load %arg7[%c0_118, %c11_119, %c0_120] : memref<1x102x16xf32, #tpu.memory_space<vmem>>, vector<1x80x16xf32>
    %136 = vector.shape_cast %135 : vector<1x80x16xf32> to vector<80x16xf32>
    %137 = vector.shape_cast %134 : vector<80x16xf32> to vector<1x80x16xf32>
    tpu.vector_store %arg7[%c0_118, %c11_119, %c0_120], %137 {strides = array<i32>} : memref<1x102x16xf32, #tpu.memory_space<vmem>>, vector<1x80x16xf32>,
    return
  }
  func.func @transform_0(%arg0: i32) -> (i32, i32, i32) {
    %c0_i32 = arith.constant 0 : i32
    %c0_i32_0 = arith.constant 0 : i32
    %c0_i32_1 = arith.constant 0 : i32
    return %arg0, %c0_i32, %c0_i32_0 : i32, i32, i32
  }
  func.func @transform_1(%arg0: i32) -> (i32, i32, i32) {
    %c0_i32 = arith.constant 0 : i32
    %c0_i32_0 = arith.constant 0 : i32
    %c0_i32_1 = arith.constant 0 : i32
    %c0_i32_2 = arith.constant 0 : i32
    return %c0_i32, %c0_i32_0, %c0_i32_1 : i32, i32, i32
  }
  func.func @transform_2(%arg0: i32) -> (i32, i32) {
    %c0_i32 = arith.constant 0 : i32
    %c0_i32_0 = arith.constant 0 : i32
    %c0_i32_1 = arith.constant 0 : i32
    return %c0_i32, %c0_i32_0 : i32, i32
  }
  func.func @transform_3(%arg0: i32) -> (i32, i32, i32) {
    %c0_i32 = arith.constant 0 : i32
    %c0_i32_0 = arith.constant 0 : i32
    %c0_i32_1 = arith.constant 0 : i32
    %c0_i32_2 = arith.constant 0 : i32
    return %c0_i32, %c0_i32_0, %c0_i32_1 : i32, i32, i32
  }
  func.func @transform_4(%arg0: i32) -> (i32, i32) {
    %c0_i32 = arith.constant 0 : i32
    %c0_i32_0 = arith.constant 0 : i32
    %c0_i32_1 = arith.constant 0 : i32
    return %c0_i32, %c0_i32_0 : i32, i32
  }
  func.func @transform_5(%arg0: i32) -> (i32, i32) {
    %c0_i32 = arith.constant 0 : i32
    %c0_i32_0 = arith.constant 0 : i32
    %c0_i32_1 = arith.constant 0 : i32
    return %c0_i32, %c0_i32_0 : i32, i32
  }
  func.func @transform_6(%arg0: i32) -> (i32, i32, i32) {
    %c0_i32 = arith.constant 0 : i32
    %c0_i32_0 = arith.constant 0 : i32
    %c0_i32_1 = arith.constant 0 : i32
    return %arg0, %c0_i32, %c0_i32_0 : i32, i32, i32
  }
}

</mosaic_0001>

<bundles_post_ra>
// kernel: impala_block_forward.4
= control target key start
LH: loop header
LB: loop body
LE: loop exit
PB: predicated region body
PF: predicated region fallthrough
CT: control target
= control target key end

     0   :  { %s3379_s21 = smov 0   ;;  %s3996_s0 = inlined_call_operand.vmem [shape: f32[2,102,16], index: 0, kind: input, shape index: {}]   ;;  %s3997_s1 = inlined_call_operand.vmem [shape: bf16[9,16,16], index: 1, kind: input, shape index: {}]   ;;  %s3998_s2 = inlined_call_operand.vmem [shape: f32[1,16], index: 2, kind: input, shape index: {}]   ;;  %s3999_s3 = inlined_call_operand.vmem [shape: bf16[9,16,16], index: 3, kind: input, shape index: {}]   ;;  %s4000_s4 = inlined_call_operand.vmem [shape: f32[1,16], index: 4, kind: input, shape index: {}]   ;;  %s4001_s5 = inlined_call_operand.vmem [shape: f32[80,16], index: 5, kind: input, shape index: {}]   ;;  %s4002_s6 = inlined_call_operand.vmem [shape: f32[2,102,16], index: 6, kind: output, shape index: {}]  }
   0x1 LB: > { %s2643_s22 = sadd.s32 4294967295, %s3340_s21   ;;  %p2647_p0 = scmp.ge.s32.totalorder %s3340_s21, 1  ;;  %s3340_s21 = sphi %s3379_s21, %s16_s21  }
   0x2   : > { %p212_p1 = scmp.lt.s32.totalorder %s3340_s21, 3 }
   0x4   : > { %p213_p2 = pnand %p2647_p0, %p212_p1 }
   0x5   : > { %v3309_v0 = vld [vmem:[%s3997_s1 + $0x8] sm:$0xff] (!%p213_p2)   ;;  %v3342_v1 = vmov (!%p213_p2), 0.0   ;;  %v3310_v2 = vld [vmem:[%s3997_s1] sm:$0xff] (!%p213_p2)   ;;  %vm3343_vm0 = vmmov (!%p213_p2), 0   ;;  %p3399_p3 = scmp.lt.s32.totalorder (!%p213_p2), %s2643_s22, 1  ;;  %vm279_vm1 = vcmask (!%p213_p2), 130048  }
   0x6   : > { %216 = sbr.rel (%p213_p2) target bundleno = 837 (0x345), region = 44  ;;  %2902 = vmatprep.subr.bf16.mxu0 (!%p213_p2), %v3342_v1  ;;  %2924 = vmatprep.subr.bf16.mxu1 (!%p213_p2), %v3342_v1  ;;  %1398 = vst.msk [vmem:[#allocation3] sm:$0xff] (!%p213_p2), %vm279_vm1, %v3342_v1  ;;  %1399 = vst.msk [vmem:[#allocation3 + $0x8] sm:$0xff] (!%p213_p2), %vm279_vm1, %v3342_v1  ;;  %v3311_v27 = vld [vmem:[%s3997_s1 + $0x10] sm:$0xff] (!%p213_p2)   ;;  %v3312_v34 = vld [vmem:[%s3997_s1 + $0x18] sm:$0xff] (!%p213_p2)   ;;  %vm292_vm2 = vcmask (!%p213_p2), 128000  }
   0x7   : > { %2903 = vmatpush3.bf16.msra.mxu0 (!%p213_p2), %v3309_v0  ;;  %2904 = vmatprep.mubr.msk.bf16.mxu0 (!%p213_p2), %vm3343_vm0, %v3342_v1  ;;  %1400 = vst.msk [vmem:[#allocation3 + $0x10] sm:$0xff] (!%p213_p2), %vm279_vm1, %v3342_v1  ;;  %1401 = vst.msk [vmem:[#allocation3 + $0x18] sm:$0xff] (!%p213_p2), %vm279_vm1, %v3342_v1 }
   0x8   : > { %2925 = vmatpush3.bf16.msra.mxu1 (!%p213_p2), %v3310_v2  ;;  %2926 = vmatprep.mubr.msk.bf16.mxu1 (!%p213_p2), %vm3343_vm0, %v3342_v1  ;;  %1402 = vst.msk [vmem:[#allocation3 + $0x20] sm:$0xff] (!%p213_p2), %vm279_vm1, %v3342_v1  ;;  %1403 = vst.msk [vmem:[#allocation3 + $0x28] sm:$0xff] (!%p213_p2), %vm279_vm1, %v3342_v1  ;;  %v3313_v2 = vld [vmem:[%s3997_s1 + $0x20] sm:$0xff] (!%p213_p2)  }
   0x9   : > { %1404 = vst.msk [vmem:[#allocation3 + $0x30] sm:$0xff] (!%p213_p2), %vm279_vm1, %v3342_v1  ;;  %1405 = vst.msk [vmem:[#allocation3 + $0x38] sm:$0xff] (!%p213_p2), %vm279_vm1, %v3342_v1  ;;  %2946 = vmatprep.subr.bf16.mxu0 (!%p213_p2), %v3342_v1  ;;  %2968 = vmatprep.subr.bf16.mxu1 (!%p213_p2), %v3342_v1 }
   0xa   : > { %1406 = vst.msk [vmem:[#allocation3 + $0x40] sm:$0xff] (!%p213_p2), %vm279_vm1, %v3342_v1  ;;  %1407 = vst.msk [vmem:[#allocation3 + $0x48] sm:$0xff] (!%p213_p2), %vm279_vm1, %v3342_v1 }
   0xb   : > { %1408 = vst.msk [vmem:[#allocation3 + $0x50] sm:$0xff] (!%p213_p2), %vm279_vm1, %v3342_v1  ;;  %1409 = vst.msk [vmem:[#allocation3 + $0x58] sm:$0xff] (!%p213_p2), %vm279_vm1, %v3342_v1 }
   0xc   : > { %1410 = vst.msk [vmem:[#allocation3 + $0x60] sm:$0x3f] (!%p213_p2), %vm292_vm2, %v3342_v1 }
   0xd   : > { %s4005_s22 = smov (!%p3399_p3, %s2643_s22), 1 }
   0xe   : > { %s3298_s28 = smul.u32 104, %s4005_s22 }
  0x10   : > { %s3438_s7 = scalar_lea.vmem %s3996_s0, %s3298_s28  ;;  %s3443_s10 = scalar_lea.vmem %s4002_s6, %s3298_s28 }
  0x11   : > { %v253_v3 = vld [vmem:[%s3438_s7] sm:$0xff]  ;;  %v254_v4 = vld [vmem:[%s3438_s7 + $0x8] sm:$0xff]  ;;  %v255_v5 = vld [vmem:[%s3438_s7 + $0x10] sm:$0xff] }
  0x12   : > { %v266_v6 = vmax.f32 %v253_v3, 0.0  ;;  %v267_v7 = vmax.f32 %v254_v4, 0.0  ;;  %v268_v8 = vmax.f32 %v255_v5, 0.0  ;;  %2535 = vst.msk [vmem:[%s3443_s10] sm:$0xff] %vm279_vm1, %v253_v3  ;;  %2536 = vst.msk [vmem:[%s3443_s10 + $0x8] sm:$0xff] %vm279_vm1, %v254_v4  ;;  %v256_v9 = vld [vmem:[%s3438_s7 + $0x18] sm:$0xff] }
  0x13   : > { %2537 = vst.msk [vmem:[%s3443_s10 + $0x10] sm:$0xff] %vm279_vm1, %v255_v5  ;;  %v257_v10 = vld [vmem:[%s3438_s7 + $0x20] sm:$0xff]  ;;  %v258_v11 = vld [vmem:[%s3438_s7 + $0x28] sm:$0xff]  ;;  %v269_v12 = vmax.f32 %v256_v9, 0.0  ;;  %2538 = vst.msk [vmem:[%s3443_s10 + $0x18] sm:$0xff] %vm279_vm1, %v256_v9 }
  0x14   : > { %v270_v13 = vmax.f32 %v257_v10, 0.0  ;;  %2539 = vst.msk [vmem:[%s3443_s10 + $0x20] sm:$0xff] %vm279_vm1, %v257_v10  ;;  %v259_v14 = vld [vmem:[%s3438_s7 + $0x30] sm:$0xff]  ;;  %v271_v15 = vmax.f32 %v258_v11, 0.0  ;;  %2540 = vst.msk [vmem:[%s3443_s10 + $0x28] sm:$0xff] %vm279_vm1, %v258_v11  ;;  %v260_v16 = vld [vmem:[%s3438_s7 + $0x38] sm:$0xff] }
  0x15   : > { %v261_v17 = vld [vmem:[%s3438_s7 + $0x40] sm:$0xff]  ;;  %280 = vst.msk [vmem:[#allocation2] sm:$0xff] %vm279_vm1, %v266_v6  ;;  %281 = vst.msk [vmem:[#allocation2 + $0x8] sm:$0xff] %vm279_vm1, %v267_v7  ;;  %v272_v18 = vmax.f32 %v259_v14, 0.0  ;;  %v273_v19 = vmax.f32 %v260_v16, 0.0  ;;  %v262_v21 = vld [vmem:[%s3438_s7 + $0x48] sm:$0xff] }
  0x16   : > { %282 = vst.msk [vmem:[#allocation2 + $0x10] sm:$0xff] %vm279_vm1, %v268_v8  ;;  %2541 = vst.msk [vmem:[%s3443_s10 + $0x30] sm:$0xff] %vm279_vm1, %v259_v14  ;;  %v274_v20 = vmax.f32 %v261_v17, 0.0  ;;  %v263_v22 = vld [vmem:[%s3438_s7 + $0x50] sm:$0xff]  ;;  %v264_v23 = vld [vmem:[%s3438_s7 + $0x58] sm:$0xff]  ;;  %v275_v24 = vmax.f32 %v262_v21, 0.0 }
  0x17   : > { %2542 = vst.msk [vmem:[%s3443_s10 + $0x38] sm:$0xff] %vm279_vm1, %v260_v16  ;;  %2543 = vst.msk [vmem:[%s3443_s10 + $0x40] sm:$0xff] %vm279_vm1, %v261_v17  ;;  %v276_v25 = vmax.f32 %v263_v22, 0.0  ;;  %v277_v26 = vmax.f32 %v264_v23, 0.0  ;;  %v265_v48 = vld [vmem:[%s3438_s7 + $0x60] sm:$0x3f] }
  0x18   : > { %283 = vst.msk [vmem:[#allocation2 + $0x18] sm:$0xff] %vm279_vm1, %v269_v12  ;;  %284 = vst.msk [vmem:[#allocation2 + $0x20] sm:$0xff] %vm279_vm1, %v270_v13  ;;  %v278_v50 = vmax.f32 %v265_v48, 0.0  ;;  %v3314_v4 = vld [vmem:[%s3997_s1 + $0x28] sm:$0xff]  }
  0x19   : > { %285 = vst.msk [vmem:[#allocation2 + $0x28] sm:$0xff] %vm279_vm1, %v271_v15  ;;  %2544 = vst.msk [vmem:[%s3443_s10 + $0x48] sm:$0xff] %vm279_vm1, %v262_v21 }
  0x1a   : > { %2545 = vst.msk [vmem:[%s3443_s10 + $0x50] sm:$0xff] %vm279_vm1, %v263_v22  ;;  %2546 = vst.msk [vmem:[%s3443_s10 + $0x58] sm:$0xff] %vm279_vm1, %v264_v23 }
  0x1b   : > { %286 = vst.msk [vmem:[#allocation2 + $0x30] sm:$0xff] %vm279_vm1, %v272_v18  ;;  %287 = vst.msk [vmem:[#allocation2 + $0x38] sm:$0xff] %vm279_vm1, %v273_v19 }
  0x1c   : > { %288 = vst.msk [vmem:[#allocation2 + $0x40] sm:$0xff] %vm279_vm1, %v274_v20  ;;  %289 = vst.msk [vmem:[#allocation2 + $0x48] sm:$0xff] %vm279_vm1, %v275_v24  ;;  %v321_v28 = vld [vmem:[#allocation2 + $0x1] sm:$0xff] }
  0x1d   : > { %290 = vst.msk [vmem:[#allocation2 + $0x50] sm:$0xff] %vm279_vm1, %v276_v25  ;;  %291 = vst.msk [vmem:[#allocation2 + $0x58] sm:$0xff] %vm279_vm1, %v277_v26  ;;  %v322_v29 = vld [vmem:[#allocation2 + $0x9] sm:$0xff]  ;;  %v304_v30 = vld [vmem:[#allocation2] sm:$0xff] }
  0x1e   : > { %v331_v31 = vpack.c.bf16 %v322_v29, %v321_v28  ;;  %v305_v32 = vld [vmem:[#allocation2 + $0x8] sm:$0xff]  ;;  %v306_v37 = vld [vmem:[#allocation2 + $0x10] sm:$0xff]  ;;  %2547 = vst.msk [vmem:[%s3443_s10 + $0x60] sm:$0x3f] %vm292_vm2, %v265_v48  ;;  %293 = vst.msk [vmem:[#allocation2 + $0x60] sm:$0x3f] %vm292_vm2, %v278_v50 }
  0x1f   : > { %v314_v33 = vpack.c.bf16 %v305_v32, %v304_v30  ;;  %v323_v35 = vld [vmem:[#allocation2 + $0x11] sm:$0xff]  ;;  %v324_v36 = vld [vmem:[#allocation2 + $0x19] sm:$0xff]  ;;  %v527_v61 = vld [vmem:[#allocation2 + $0x2] sm:$0xff] }
  0x20   : > { %2905 = vmatmul.mubr.msk.bf16.vlgmr.msra.gmra.mrb[0].mxu0 %vm279_vm1, %v331_v31  ;;  %v307_v38 = vld [vmem:[#allocation2 + $0x18] sm:$0xff]  ;;  %v332_v39 = vpack.c.bf16 %v324_v36, %v323_v35  ;;  %v325_v41 = vld [vmem:[#allocation2 + $0x21] sm:$0xff]  ;;  %v528_v62 = vld [vmem:[#allocation2 + $0xa] sm:$0xff] }
  0x21   : > { %2927 = vmatmul.mubr.msk.bf16.vlgmr.msra.gmra.mrb[0].mxu1 %vm279_vm1, %v314_v33  ;;  %2947 = vmatpush3.bf16.msra.mxu0 %v3311_v27  ;;  %v315_v40 = vpack.c.bf16 %v307_v38, %v306_v37  ;;  %v308_v43 = vld [vmem:[#allocation2 + $0x20] sm:$0xff]  ;;  %v309_v44 = vld [vmem:[#allocation2 + $0x28] sm:$0xff]  ;;  %v650_v63 = vld [vmem:[#allocation2 + $0x12] sm:$0xff]  ;;  %v537_v0 = vpack.c.bf16 %v528_v62, %v527_v61 }
  0x22   : > { %2908 = vmatprep.mubr.msk.bf16.mxu0 %vm3343_vm0, %v3342_v1  ;;  %2930 = vmatprep.mubr.msk.bf16.mxu1 %vm3343_vm0, %v3342_v1  ;;  %v326_v42 = vld [vmem:[#allocation2 + $0x29] sm:$0xff]  ;;  %v316_v46 = vpack.c.bf16 %v309_v44, %v308_v43  ;;  %v327_v47 = vld [vmem:[#allocation2 + $0x31] sm:$0xff]  ;;  %v659_v3 = vpack.c.bf16 %v650_v63, %v528_v62  ;;  %v530_v5 = vld [vmem:[#allocation2 + $0x1a] sm:$0xff] }
  0x23   : > { %2969 = vmatpush3.bf16.msra.mxu1 %v3312_v34  ;;  %2990 = vmatprep.subr.bf16.mxu0 %v3342_v1  ;;  %v333_v45 = vpack.c.bf16 %v326_v42, %v325_v41  ;;  %v328_v49 = vld [vmem:[#allocation2 + $0x39] sm:$0xff]  ;;  %v310_v51 = vld [vmem:[#allocation2 + $0x30] sm:$0xff]  ;;  %v329_v55 = vld [vmem:[#allocation2 + $0x41] sm:$0xff]  ;;  %v538_v7 = vpack.c.bf16 %v530_v5, %v650_v63 }
  0x24   : > { %3012 = vmatprep.subr.bf16.mxu1 %v3342_v1  ;;  %v311_v52 = vld [vmem:[#allocation2 + $0x38] sm:$0xff]  ;;  %v334_v53 = vpack.c.bf16 %v328_v49, %v327_v47  ;;  %v330_v56 = vld [vmem:[#allocation2 + $0x49] sm:$0xff]  ;;  %v312_v57 = vld [vmem:[#allocation2 + $0x40] sm:$0xff] }
  0x25   : > { %v317_v54 = vpack.c.bf16 %v311_v52, %v310_v51  ;;  %v313_v58 = vld [vmem:[#allocation2 + $0x48] sm:$0xff]  ;;  %v335_v59 = vpack.c.bf16 %v330_v56, %v329_v55  ;;  %v654_v10 = vld [vmem:[#allocation2 + $0x32] sm:$0xff]  ;;  %v534_v13 = vld [vmem:[#allocation2 + $0x3a] sm:$0xff] }
  0x26   : > { %v318_v60 = vpack.c.bf16 %v313_v58, %v312_v57  ;;  %v652_v6 = vld [vmem:[#allocation2 + $0x22] sm:$0xff]  ;;  %v532_v9 = vld [vmem:[#allocation2 + $0x2a] sm:$0xff]  ;;  %v540_v15 = vpack.c.bf16 %v534_v13, %v654_v10  ;;  %v658_v18 = vld [vmem:[#allocation2 + $0x52] sm:$0xff] }
  0x27   : > { %v660_v8 = vpack.c.bf16 %v652_v6, %v530_v5  ;;  %v539_v11 = vpack.c.bf16 %v532_v9, %v652_v6  ;;  %v661_v12 = vpack.c.bf16 %v654_v10, %v532_v9  ;;  %v656_v14 = vld [vmem:[#allocation2 + $0x42] sm:$0xff]  ;;  %v536_v17 = vld [vmem:[#allocation2 + $0x4a] sm:$0xff]  ;;  %v772_v22 = vld [vmem:[#allocation2 + $0x13] sm:$0xff] }
  0x28   : > { %2909 = vmatmul.mubr.msk.bf16.gmra.mrb[4].mxu0 %vm279_vm1, %v332_v39  ;;  %v662_v16 = vpack.c.bf16 %v656_v14, %v534_v13  ;;  %v541_v19 = vpack.c.bf16 %v536_v17, %v656_v14  ;;  %v663_v20 = vpack.c.bf16 %v658_v18, %v536_v17  ;;  %v771_v21 = vld [vmem:[#allocation2 + $0xb] sm:$0xff]  ;;  %v894_v24 = vld [vmem:[#allocation2 + $0x14] sm:$0xff]  ;;  %v774_v30 = vld [vmem:[#allocation2 + $0x23] sm:$0xff] }
  0x29   : > { %2931 = vmatmul.mubr.msk.bf16.gmra.mrb[4].mxu1 %vm279_vm1, %v315_v40  ;;  %2912 = vmatprep.mubr.msk.bf16.mxu0 %vm3343_vm0, %v3342_v1  ;;  %v893_v23 = vld [vmem:[#allocation2 + $0xc] sm:$0xff]  ;;  %v781_v25 = vpack.c.bf16 %v772_v22, %v771_v21  ;;  %v3316_v28 = vld [vmem:[%s3997_s1 + $0x38] sm:$0xff]   ;;  %v896_v32 = vld [vmem:[#allocation2 + $0x24] sm:$0xff] }
  0x2a   : > { %2934 = vmatprep.mubr.msk.bf16.mxu1 %vm3343_vm0, %v3342_v1  ;;  %v3315_v26 = vld [vmem:[%s3997_s1 + $0x30] sm:$0xff]   ;;  %v903_v27 = vpack.c.bf16 %v894_v24, %v893_v23  ;;  %v773_v29 = vld [vmem:[#allocation2 + $0x1b] sm:$0xff]  ;;  %v778_v42 = vld [vmem:[#allocation2 + $0x43] sm:$0xff] }
  0x2b   : > { %v895_v31 = vld [vmem:[#allocation2 + $0x1c] sm:$0xff]  ;;  %v782_v33 = vpack.c.bf16 %v774_v30, %v773_v29  ;;  %v775_v35 = vld [vmem:[#allocation2 + $0x2b] sm:$0xff]  ;;  %v776_v36 = vld [vmem:[#allocation2 + $0x33] sm:$0xff] }
  0x2c   : > { %v904_v34 = vpack.c.bf16 %v896_v32, %v895_v31  ;;  %v897_v37 = vld [vmem:[#allocation2 + $0x2c] sm:$0xff]  ;;  %v898_v38 = vld [vmem:[#allocation2 + $0x34] sm:$0xff]  ;;  %v783_v39 = vpack.c.bf16 %v776_v36, %v775_v35  ;;  %v899_v43 = vld [vmem:[#allocation2 + $0x3c] sm:$0xff]  ;;  %v1025_v55 = vpack.c.bf16 %v895_v31, %v894_v24 }
  0x2d   : > { %v905_v40 = vpack.c.bf16 %v898_v38, %v897_v37  ;;  %v777_v41 = vld [vmem:[#allocation2 + $0x3b] sm:$0xff]  ;;  %v900_v44 = vld [vmem:[#allocation2 + $0x44] sm:$0xff]  ;;  %v780_v48 = vld [vmem:[#allocation2 + $0x53] sm:$0xff] }
  0x2e   : > { %v779_v47 = vld [vmem:[#allocation2 + $0x4b] sm:$0xff]  ;;  %v902_v50 = vld [vmem:[#allocation2 + $0x54] sm:$0xff]  ;;  %v3317_v56 = vld [vmem:[%s3997_s1 + $0x40] sm:$0xff]  }
  0x2f   : > { %v901_v49 = vld [vmem:[#allocation2 + $0x4c] sm:$0xff]  ;;  %v785_v51 = vpack.c.bf16 %v780_v48, %v779_v47  ;;  %v1141_v62 = vld [vmem:[#allocation2 + $0x35] sm:$0xff]  ;;  %v1142_v63 = vld [vmem:[#allocation2 + $0x3d] sm:$0xff] }
  0x30   : > { %2913 = vmatmul.mubr.msk.bf16.gmra.mrb[8].mxu0 %vm279_vm1, %v333_v45  ;;  %v784_v45 = vpack.c.bf16 %v778_v42, %v777_v41  ;;  %v907_v52 = vpack.c.bf16 %v902_v50, %v901_v49  ;;  %v1139_v58 = vld [vmem:[#allocation2 + $0x25] sm:$0xff]  ;;  %v1028_v5 = vpack.c.bf16 %v901_v49, %v900_v44  ;;  %v1146_v9 = vld [vmem:[#allocation2 + $0x5d] sm:$0xff]  ;;  %v1266_v22 = vld [vmem:[#allocation2 + $0x4e] sm:$0xff] }
  0x31   : > { %2935 = vmatmul.mubr.msk.bf16.gmra.mrb[8].mxu1 %vm279_vm1, %v316_v46  ;;  %2916 = vmatprep.mubr.msk.bf16.mxu0 %vm3343_vm0, %v3342_v1  ;;  %v906_v46 = vpack.c.bf16 %v900_v44, %v899_v43  ;;  %v1260_v13 = vld [vmem:[#allocation2 + $0x1e] sm:$0xff]  ;;  %v1263_v18 = vld [vmem:[#allocation2 + $0x36] sm:$0xff]  ;;  %v1265_v21 = vld [vmem:[#allocation2 + $0x46] sm:$0xff] }
  0x32   : > { %2938 = vmatprep.mubr.msk.bf16.mxu1 %vm3343_vm0, %v3342_v1  ;;  %v1272_v23 = vpack.c.bf16 %v1266_v22, %v1265_v21  ;;  %v1267_v24 = vld [vmem:[#allocation2 + $0x56] sm:$0xff] }
  0x38   : > { %2917 = vmatmul.mubr.msk.bf16.gmra.mrb[12].mxu0 %vm279_vm1, %v334_v53  ;;  %v1137_v53 = vld [vmem:[#allocation2 + $0x15] sm:$0xff] }
  0x39   : > { %2939 = vmatmul.mubr.msk.bf16.gmra.mrb[12].mxu1 %vm279_vm1, %v317_v54  ;;  %2920 = vmatprep.mubr.msk.bf16.mxu0 %vm3343_vm0, %v3342_v1  ;;  %v1138_v54 = vld [vmem:[#allocation2 + $0x1d] sm:$0xff] }
  0x3a   : > { %2942 = vmatprep.mubr.msk.bf16.mxu1 %vm3343_vm0, %v3342_v1  ;;  %v1147_v57 = vpack.c.bf16 %v1138_v54, %v1137_v53 }
  0x40   : > { %2921 = vmatmul.mubr.msk.bf16.gmra.mrb[16].mxu0 %vm279_vm1, %v335_v59  ;;  %v1140_v59 = vld [vmem:[#allocation2 + $0x2d] sm:$0xff] }
  0x41   : > { %2943 = vmatmul.mubr.msk.bf16.gmra.mrb[16].mxu1 %vm279_vm1, %v318_v60  ;;  %2948 = vmatprep.mubr.msk.bf16.mxu0 %vm3343_vm0, %v3342_v1  ;;  %v1026_v60 = vpack.c.bf16 %v897_v37, %v896_v32  ;;  %v1148_v61 = vpack.c.bf16 %v1140_v59, %v1139_v58 }
  0x42   : > { %2970 = vmatprep.mubr.msk.bf16.mxu1 %vm3343_vm0, %v3342_v1 }
  0x48   : > { %2949 = vmatmul.mubr.msk.bf16.vlgmr.msra.gmra.mrb[20].mxu0 %vm279_vm1, %v537_v0  ;;  %v1027_v0 = vpack.c.bf16 %v899_v43, %v898_v38 }
  0x49   : > { %2991 = vmatpush3.bf16.msra.mxu0 %v3313_v2  ;;  %2971 = vmatmul.mubr.msk.bf16.vlgmr.msra.gmra.mrb[20].mxu1 %vm279_vm1, %v659_v3  ;;  %v1149_v2 = vpack.c.bf16 %v1142_v63, %v1141_v62  ;;  %v1143_v3 = vld [vmem:[#allocation2 + $0x45] sm:$0xff] }
  0x4a   : > { %2952 = vmatprep.mubr.msk.bf16.mxu0 %vm3343_vm0, %v3342_v1  ;;  %2974 = vmatprep.mubr.msk.bf16.mxu1 %vm3343_vm0, %v3342_v1 }
  0x4b   : > { %3013 = vmatpush3.bf16.msra.mxu1 %v3314_v4  ;;  %3034 = vmatprep.subr.bf16.mxu0 %v3342_v1  ;;  %v1144_v4 = vld [vmem:[#allocation2 + $0x4d] sm:$0xff] }
  0x4c   : > { %3056 = vmatprep.subr.bf16.mxu1 %v3342_v1  ;;  %v1150_v6 = vpack.c.bf16 %v1144_v4, %v1143_v3 }
  0x50   : > { %2953 = vmatmul.mubr.msk.bf16.gmra.mrb[24].mxu0 %vm279_vm1, %v538_v7  ;;  %v1024_v7 = vld [vmem:[#allocation2 + $0x5c] sm:$0xff] }
  0x51   : > { %2975 = vmatmul.mubr.msk.bf16.gmra.mrb[24].mxu1 %vm279_vm1, %v660_v8  ;;  %2956 = vmatprep.mubr.msk.bf16.mxu0 %vm3343_vm0, %v3342_v1  ;;  %v1145_v8 = vld [vmem:[#allocation2 + $0x55] sm:$0xff]  ;;  %v1029_v10 = vpack.c.bf16 %v1024_v7, %v902_v50 }
  0x52   : > { %2978 = vmatprep.mubr.msk.bf16.mxu1 %vm3343_vm0, %v3342_v1 }
  0x58   : > { %2957 = vmatmul.mubr.msk.bf16.gmra.mrb[28].mxu0 %vm279_vm1, %v539_v11  ;;  %v1151_v11 = vpack.c.bf16 %v1146_v9, %v1145_v8 }
  0x59   : > { %2979 = vmatmul.mubr.msk.bf16.gmra.mrb[28].mxu1 %vm279_vm1, %v661_v12  ;;  %2960 = vmatprep.mubr.msk.bf16.mxu0 %vm3343_vm0, %v3342_v1  ;;  %v1259_v12 = vld [vmem:[#allocation2 + $0x16] sm:$0xff] }
  0x5a   : > { %2982 = vmatprep.mubr.msk.bf16.mxu1 %vm3343_vm0, %v3342_v1  ;;  %v1269_v14 = vpack.c.bf16 %v1260_v13, %v1259_v12 }
  0x60   : > { %2961 = vmatmul.mubr.msk.bf16.gmra.mrb[32].mxu0 %vm279_vm1, %v540_v15  ;;  %v1261_v15 = vld [vmem:[#allocation2 + $0x26] sm:$0xff] }
  0x61   : > { %2983 = vmatmul.mubr.msk.bf16.gmra.mrb[32].mxu1 %vm279_vm1, %v662_v16  ;;  %2964 = vmatprep.mubr.msk.bf16.mxu0 %vm3343_vm0, %v3342_v1  ;;  %v1262_v16 = vld [vmem:[#allocation2 + $0x2e] sm:$0xff] }
  0x62   : > { %2986 = vmatprep.mubr.msk.bf16.mxu1 %vm3343_vm0, %v3342_v1  ;;  %v1270_v17 = vpack.c.bf16 %v1262_v16, %v1261_v15 }
  0x68   : > { %2965 = vmatmul.mubr.msk.bf16.gmra.mrb[36].mxu0 %vm279_vm1, %v541_v19  ;;  %v1264_v19 = vld [vmem:[#allocation2 + $0x3e] sm:$0xff] }
  0x69   : > { %2987 = vmatmul.mubr.msk.bf16.gmra.mrb[36].mxu1 %vm279_vm1, %v663_v20  ;;  %2992 = vmatprep.mubr.msk.bf16.mxu0 %vm3343_vm0, %v3342_v1  ;;  %v1271_v20 = vpack.c.bf16 %v1264_v19, %v1263_v18 }
  0x6a   : > { %3014 = vmatprep.mubr.msk.bf16.mxu1 %vm3343_vm0, %v3342_v1 }
  0x70   : > { %2993 = vmatmul.mubr.msk.bf16.vlgmr.msra.gmra.mrb[40].mxu0 %vm279_vm1, %v781_v25  ;;  %v1268_v25 = vld [vmem:[#allocation2 + $0x5e] sm:$0xff] }
  0x71   : > { %3035 = vmatpush3.bf16.msra.mxu0 %v3315_v26  ;;  %3015 = vmatmul.mubr.msk.bf16.vlgmr.msra.gmra.mrb[40].mxu1 %vm279_vm1, %v903_v27  ;;  %v1273_v26 = vpack.c.bf16 %v1268_v25, %v1267_v24 }
  0x72   : > { %2996 = vmatprep.mubr.msk.bf16.mxu0 %vm3343_vm0, %v3342_v1  ;;  %3018 = vmatprep.mubr.msk.bf16.mxu1 %vm3343_vm0, %v3342_v1 }
  0x73   : > { %3057 = vmatpush3.bf16.msra.mxu1 %v3316_v28  ;;  %3078 = vmatprep.subr.bf16.mxu0 %v3342_v1 }
  0x74   : > { %3100 = vmatprep.subr.bf16.mxu1 %v3342_v1 }
  0x78   : > { %2997 = vmatmul.mubr.msk.bf16.gmra.mrb[44].mxu0 %vm279_vm1, %v782_v33 }
  0x79   : > { %3019 = vmatmul.mubr.msk.bf16.gmra.mrb[44].mxu1 %vm279_vm1, %v904_v34  ;;  %3000 = vmatprep.mubr.msk.bf16.mxu0 %vm3343_vm0, %v3342_v1 }
  0x7a   : > { %3022 = vmatprep.mubr.msk.bf16.mxu1 %vm3343_vm0, %v3342_v1 }
  0x80   : > { %3001 = vmatmul.mubr.msk.bf16.gmra.mrb[48].mxu0 %vm279_vm1, %v783_v39 }
  0x81   : > { %3023 = vmatmul.mubr.msk.bf16.gmra.mrb[48].mxu1 %vm279_vm1, %v905_v40  ;;  %3004 = vmatprep.mubr.msk.bf16.mxu0 %vm3343_vm0, %v3342_v1 }
  0x82   : > { %3026 = vmatprep.mubr.msk.bf16.mxu1 %vm3343_vm0, %v3342_v1 }
  0x88   : > { %3005 = vmatmul.mubr.msk.bf16.gmra.mrb[52].mxu0 %vm279_vm1, %v784_v45  ;;  %v3318_v45 = vld [vmem:[%s3999_s3 + $0x8] sm:$0xff]  }
  0x89   : > { %3027 = vmatmul.mubr.msk.bf16.gmra.mrb[52].mxu1 %vm279_vm1, %v906_v46  ;;  %3008 = vmatprep.mubr.msk.bf16.mxu0 %vm3343_vm0, %v3342_v1 }
  0x8a   : > { %3030 = vmatprep.mubr.msk.bf16.mxu1 %vm3343_vm0, %v3342_v1 }
  0x90   : > { %3009 = vmatmul.mubr.msk.bf16.gmra.mrb[56].mxu0 %vm279_vm1, %v785_v51 }
  0x91   : > { %3031 = vmatmul.mubr.msk.bf16.gmra.mrb[56].mxu1 %vm279_vm1, %v907_v52  ;;  %3036 = vmatprep.mubr.msk.bf16.mxu0 %vm3343_vm0, %v3342_v1 }
  0x92   : > { %3058 = vmatprep.mubr.msk.bf16.mxu1 %vm3343_vm0, %v3342_v1 }
  0x98   : > { %3037 = vmatmul.mubr.msk.bf16.vlgmr.msra.gmra.mrb[60].mxu0 %vm279_vm1, %v1025_v55 }
  0x99   : > { %3079 = vmatpush3.bf16.msra.mxu0 %v3317_v56  ;;  %3059 = vmatmul.mubr.msk.bf16.vlgmr.msra.gmra.mrb[60].mxu1 %vm279_vm1, %v1147_v57 }
  0x9a   : > { %3040 = vmatprep.mubr.msk.bf16.mxu0 %vm3343_vm0, %v3342_v1  ;;  %3062 = vmatprep.mubr.msk.bf16.mxu1 %vm3343_vm0, %v3342_v1 }
  0x9b   : > { %3122 = vmatprep.subr.bf16.mxu0 %v3342_v1  ;;  %3101 = vmatpush3.bf16.msra.mxu1 %v3318_v45 }
  0x9c   : > { %3144 = vmatprep.subr.bf16.mxu1 %v3342_v1 }
  0xa0   : > { %3041 = vmatmul.mubr.msk.bf16.gmra.mrb[64].mxu0 %vm279_vm1, %v1026_v60 }
  0xa1   : > { %3063 = vmatmul.mubr.msk.bf16.gmra.mrb[64].mxu1 %vm279_vm1, %v1148_v61  ;;  %3044 = vmatprep.mubr.msk.bf16.mxu0 %vm3343_vm0, %v3342_v1 }
  0xa2   : > { %3066 = vmatprep.mubr.msk.bf16.mxu1 %vm3343_vm0, %v3342_v1 }
  0xa8   : > { %3045 = vmatmul.mubr.msk.bf16.gmra.mrb[68].mxu0 %vm279_vm1, %v1027_v0 }
  0xa9   : > { %3067 = vmatmul.mubr.msk.bf16.gmra.mrb[68].mxu1 %vm279_vm1, %v1149_v2  ;;  %3048 = vmatprep.mubr.msk.bf16.mxu0 %vm3343_vm0, %v3342_v1 }
  0xaa   : > { %3070 = vmatprep.mubr.msk.bf16.mxu1 %vm3343_vm0, %v3342_v1 }
  0xb0   : > { %3049 = vmatmul.mubr.msk.bf16.gmra.mrb[72].mxu0 %vm279_vm1, %v1028_v5 }
  0xb1   : > { %3071 = vmatmul.mubr.msk.bf16.gmra.mrb[72].mxu1 %vm279_vm1, %v1150_v6  ;;  %3052 = vmatprep.mubr.msk.bf16.mxu0 %vm3343_vm0, %v3342_v1 }
  0xb2   : > { %3074 = vmatprep.mubr.msk.bf16.mxu1 %vm3343_vm0, %v3342_v1 }
  0xb8   : > { %3053 = vmatmul.mubr.msk.bf16.gmra.mrb[76].mxu0 %vm279_vm1, %v1029_v10 }
  0xb9   : > { %3075 = vmatmul.mubr.msk.bf16.gmra.mrb[76].mxu1 %vm279_vm1, %v1151_v11  ;;  %3080 = vmatprep.mubr.msk.bf16.mxu0 %vm3343_vm0, %v3342_v1 }
  0xba   : > { %3102 = vmatprep.mubr.msk.bf16.mxu1 %vm3343_vm0, %v3342_v1 }
  0xc0   : > { %3081 = vmatmul.mubr.msk.bf16.vlgmr.msra.gmra.mrb[80].mxu0 %vm279_vm1, %v1269_v14 }
  0xc1   : > { %3084 = vmatprep.mubr.msk.bf16.mxu0 %vm3343_vm0, %v3342_v1 }
  0xc8   : > { %3085 = vmatmul.mubr.msk.bf16.gmra.mrb[84].mxu0 %vm279_vm1, %v1270_v17 }
  0xc9   : > { %3088 = vmatprep.mubr.msk.bf16.mxu0 %vm3343_vm0, %v3342_v1 }
  0xd0   : > { %3089 = vmatmul.mubr.msk.bf16.gmra.mrb[88].mxu0 %vm279_vm1, %v1271_v20 }
  0xd1   : > { %3092 = vmatprep.mubr.msk.bf16.mxu0 %vm3343_vm0, %v3342_v1 }
  0xd8   : > { %3093 = vmatmul.mubr.msk.bf16.gmra.mrb[92].mxu0 %vm279_vm1, %v1272_v23 }
  0xd9   : > { %3096 = vmatprep.mubr.msk.bf16.mxu0 %vm3343_vm0, %v3342_v1 }
  0xe0   : > { %3097 = vmatmul.mubr.msk.bf16.gmra.mrb[96].mxu0 %vm279_vm1, %v1273_v26 }
  0xe1   : > { %3124 = vmatprep.mubr.msk.bf16.mxu0 %vm3343_vm0, %v3342_v1 }
  0xf3   : > { %v394_v27 = vpop.f32.mrb[0].mxu0 }
  0xf4   : > { %v488_v28 = vpop.f32.mrb[0].mxu1  ;;  %v2906_v29 = vpop.f32.mrb[1].mxu0 }
  0xf5   : > { %v489_v30 = vadd.f32 %v488_v28, %v394_v27  ;;  %v2928_v31 = vpop.f32.mrb[1].mxu1  ;;  %v397_v32 = vpop.f32.mrb[2].mxu0  ;;  %v3319_v27 = vld [vmem:[%s3999_s3] sm:$0xff]  }
  0xf6   : > { %v491_v33 = vpop.f32.mrb[2].mxu1  ;;  %v2907_v34 = vpop.f32.mrb[3].mxu0  ;;  %3123 = vmatpush3.bf16.msra.mxu0 %v3319_v27 }
  0xf7   : > { %v492_v35 = vadd.f32 %v491_v33, %v397_v32  ;;  %v2929_v36 = vpop.f32.mrb[3].mxu1  ;;  %3166 = vmatprep.subr.bf16.mxu0 %v3342_v1 }
  0xfb   : > { %v402_v37 = vpop.f32.mrb[4].mxu0 }
  0xfc   : > { %v496_v38 = vpop.f32.mrb[4].mxu1  ;;  %v2910_v39 = vpop.f32.mrb[5].mxu0 }
  0xfd   : > { %v497_v40 = vadd.f32 %v496_v38, %v402_v37  ;;  %v2932_v41 = vpop.f32.mrb[5].mxu1  ;;  %v405_v42 = vpop.f32.mrb[6].mxu0 }
  0xfe   : > { %v499_v43 = vpop.f32.mrb[6].mxu1  ;;  %v2911_v44 = vpop.f32.mrb[7].mxu0 }
  0xff   : > { %v500_v46 = vadd.f32 %v499_v43, %v405_v42  ;;  %v2933_v47 = vpop.f32.mrb[7].mxu1 }
 0x103   : > { %v410_v48 = vpop.f32.mrb[8].mxu0 }
 0x104   : > { %v504_v49 = vpop.f32.mrb[8].mxu1  ;;  %v2914_v50 = vpop.f32.mrb[9].mxu0 }
 0x105   : > { %v505_v51 = vadd.f32 %v504_v49, %v410_v48  ;;  %v2936_v52 = vpop.f32.mrb[9].mxu1  ;;  %v413_v53 = vpop.f32.mrb[10].mxu0 }
 0x106   : > { %v507_v54 = vpop.f32.mrb[10].mxu1  ;;  %v2915_v55 = vpop.f32.mrb[11].mxu0 }
 0x107   : > { %v508_v56 = vadd.f32 %v507_v54, %v413_v53  ;;  %v2937_v57 = vpop.f32.mrb[11].mxu1 }
 0x10b   : > { %v418_v58 = vpop.f32.mrb[12].mxu0 }
 0x10c   : > { %v512_v59 = vpop.f32.mrb[12].mxu1  ;;  %v2918_v60 = vpop.f32.mrb[13].mxu0 }
 0x10d   : > { %v513_v61 = vadd.f32 %v512_v59, %v418_v58  ;;  %v2940_v62 = vpop.f32.mrb[13].mxu1  ;;  %v421_v63 = vpop.f32.mrb[14].mxu0 }
 0x10e   : > { %v515_v0 = vpop.f32.mrb[14].mxu1  ;;  %v2919_v2 = vpop.f32.mrb[15].mxu0 }
 0x10f   : > { %v516_v3 = vadd.f32 %v515_v0, %v421_v63  ;;  %v2941_v4 = vpop.f32.mrb[15].mxu1 }
 0x113   : > { %v426_v5 = vpop.f32.mrb[16].mxu0 }
 0x114   : > { %v520_v6 = vpop.f32.mrb[16].mxu1  ;;  %v2922_v7 = vpop.f32.mrb[17].mxu0 }
 0x115   : > { %v521_v8 = vadd.f32 %v520_v6, %v426_v5  ;;  %v2944_v9 = vpop.f32.mrb[17].mxu1  ;;  %v429_v10 = vpop.f32.mrb[18].mxu0 }
 0x116   : > { %v523_v11 = vpop.f32.mrb[18].mxu1  ;;  %v2923_v12 = vpop.f32.mrb[19].mxu0 }
 0x117   : > { %v524_v13 = vadd.f32 %v523_v11, %v429_v10  ;;  %v2945_v14 = vpop.f32.mrb[19].mxu1 }
 0x11b   : > { %v600_v15 = vpop.f32.mrb[20].mxu0 }
 0x11c   : > { %v639_v16 = vadd.f32 %v600_v15, %v489_v30  ;;  %v2950_v17 = vpop.f32.mrb[21].mxu0  ;;  %v722_v18 = vpop.f32.mrb[20].mxu1 }
 0x11d   : > { %v603_v19 = vpop.f32.mrb[22].mxu0  ;;  %v2972_v20 = vpop.f32.mrb[21].mxu1 }
 0x11e   : > { %v640_v21 = vadd.f32 %v603_v19, %v492_v35  ;;  %v761_v22 = vadd.f32 %v722_v18, %v639_v16  ;;  %v2951_v23 = vpop.f32.mrb[23].mxu0  ;;  %v725_v24 = vpop.f32.mrb[22].mxu1 }
 0x11f   : > { %v2973_v25 = vpop.f32.mrb[23].mxu1 }
 0x120   : > { %v762_v26 = vadd.f32 %v725_v24, %v640_v21 }
 0x123   : > { %v608_v28 = vpop.f32.mrb[24].mxu0 }
 0x124   : > { %v641_v29 = vadd.f32 %v608_v28, %v497_v40  ;;  %v2954_v31 = vpop.f32.mrb[25].mxu0  ;;  %v730_v32 = vpop.f32.mrb[24].mxu1 }
 0x125   : > { %v611_v30 = vpop.f32.mrb[26].mxu0  ;;  %v2976_v33 = vpop.f32.mrb[25].mxu1 }
 0x126   : > { %v642_v34 = vadd.f32 %v611_v30, %v500_v46  ;;  %v763_v35 = vadd.f32 %v730_v32, %v641_v29  ;;  %v2955_v36 = vpop.f32.mrb[27].mxu0  ;;  %v733_v37 = vpop.f32.mrb[26].mxu1 }
 0x127   : > { %v2977_v38 = vpop.f32.mrb[27].mxu1 }
 0x128   : > { %v764_v39 = vadd.f32 %v733_v37, %v642_v34 }
 0x12b   : > { %v616_v41 = vpop.f32.mrb[28].mxu0 }
 0x12c   : > { %v643_v42 = vadd.f32 %v616_v41, %v505_v51  ;;  %v2958_v43 = vpop.f32.mrb[29].mxu0  ;;  %v738_v44 = vpop.f32.mrb[28].mxu1 }
 0x12d   : > { %v619_v45 = vpop.f32.mrb[30].mxu0  ;;  %v2980_v47 = vpop.f32.mrb[29].mxu1 }
 0x12e   : > { %v644_v40 = vadd.f32 %v619_v45, %v508_v56  ;;  %v765_v48 = vadd.f32 %v738_v44, %v643_v42  ;;  %v2959_v49 = vpop.f32.mrb[31].mxu0  ;;  %v741_v50 = vpop.f32.mrb[30].mxu1 }
 0x12f   : > { %v2981_v52 = vpop.f32.mrb[31].mxu1 }
 0x130   : > { %v766_v53 = vadd.f32 %v741_v50, %v644_v40 }
 0x133   : > { %v624_v54 = vpop.f32.mrb[32].mxu0 }
 0x134   : > { %v645_v55 = vadd.f32 %v624_v54, %v513_v61  ;;  %v2962_v46 = vpop.f32.mrb[33].mxu0  ;;  %v746_v57 = vpop.f32.mrb[32].mxu1 }
 0x135   : > { %v627_v58 = vpop.f32.mrb[34].mxu0  ;;  %v2984_v59 = vpop.f32.mrb[33].mxu1 }
 0x136   : > { %v646_v60 = vadd.f32 %v627_v58, %v516_v3  ;;  %v767_v62 = vadd.f32 %v746_v57, %v645_v55  ;;  %v2963_v63 = vpop.f32.mrb[35].mxu0  ;;  %v749_v51 = vpop.f32.mrb[34].mxu1 }
 0x137   : > { %v2985_v0 = vpop.f32.mrb[35].mxu1 }
 0x138   : > { %v768_v2 = vadd.f32 %v749_v51, %v646_v60 }
 0x13b   : > { %v632_v4 = vpop.f32.mrb[36].mxu0 }
 0x13c   : > { %v647_v5 = vadd.f32 %v632_v4, %v521_v8  ;;  %v2966_v56 = vpop.f32.mrb[37].mxu0  ;;  %v754_v6 = vpop.f32.mrb[36].mxu1 }
 0x13d   : > { %v635_v7 = vpop.f32.mrb[38].mxu0  ;;  %v2988_v9 = vpop.f32.mrb[37].mxu1 }
 0x13e   : > { %v648_v10 = vadd.f32 %v635_v7, %v524_v13  ;;  %v769_v11 = vadd.f32 %v754_v6, %v647_v5  ;;  %v2967_v12 = vpop.f32.mrb[39].mxu0  ;;  %v757_v61 = vpop.f32.mrb[38].mxu1 }
 0x13f   : > { %v2989_v14 = vpop.f32.mrb[39].mxu1 }
 0x140   : > { %v770_v15 = vadd.f32 %v757_v61, %v648_v10 }
 0x143   : > { %v844_v16 = vpop.f32.mrb[40].mxu0 }
 0x144   : > { %v883_v17 = vadd.f32 %v844_v16, %v761_v22  ;;  %v2994_v3 = vpop.f32.mrb[41].mxu0  ;;  %v966_v18 = vpop.f32.mrb[40].mxu1 }
 0x145   : > { %v847_v19 = vpop.f32.mrb[42].mxu0  ;;  %v3016_v20 = vpop.f32.mrb[41].mxu1 }
 0x146   : > { %v884_v21 = vadd.f32 %v847_v19, %v762_v26  ;;  %v1005_v23 = vadd.f32 %v966_v18, %v883_v17  ;;  %v2995_v24 = vpop.f32.mrb[43].mxu0  ;;  %v969_v8 = vpop.f32.mrb[42].mxu1 }
 0x147   : > { %v3017_v25 = vpop.f32.mrb[43].mxu1 }
 0x148   : > { %v1006_v27 = vadd.f32 %v969_v8, %v884_v21 }
 0x14b   : > { %v852_v28 = vpop.f32.mrb[44].mxu0 }
 0x14c   : > { %v885_v29 = vadd.f32 %v852_v28, %v763_v35  ;;  %v2998_v13 = vpop.f32.mrb[45].mxu0  ;;  %v974_v31 = vpop.f32.mrb[44].mxu1 }
 0x14d   : > { %v855_v32 = vpop.f32.mrb[46].mxu0  ;;  %v3020_v30 = vpop.f32.mrb[45].mxu1 }
 0x14e   : > { %v886_v33 = vadd.f32 %v855_v32, %v764_v39  ;;  %v1007_v34 = vadd.f32 %v974_v31, %v885_v29  ;;  %v2999_v36 = vpop.f32.mrb[47].mxu0  ;;  %v977_v22 = vpop.f32.mrb[46].mxu1 }
 0x14f   : > { %v3021_v37 = vpop.f32.mrb[47].mxu1 }
 0x150   : > { %v1008_v38 = vadd.f32 %v977_v22, %v886_v33 }
 0x153   : > { %v860_v41 = vpop.f32.mrb[48].mxu0 }
 0x154   : > { %v887_v42 = vadd.f32 %v860_v41, %v765_v48  ;;  %v3002_v26 = vpop.f32.mrb[49].mxu0  ;;  %v982_v43 = vpop.f32.mrb[48].mxu1 }
 0x155   : > { %v863_v44 = vpop.f32.mrb[50].mxu0  ;;  %v3024_v45 = vpop.f32.mrb[49].mxu1 }
 0x156   : > { %v888_v47 = vadd.f32 %v863_v44, %v766_v53  ;;  %v1009_v40 = vadd.f32 %v982_v43, %v887_v42  ;;  %v3003_v49 = vpop.f32.mrb[51].mxu0  ;;  %v985_v35 = vpop.f32.mrb[50].mxu1 }
 0x157   : > { %v3025_v50 = vpop.f32.mrb[51].mxu1 }
 0x158   : > { %v1010_v52 = vadd.f32 %v985_v35, %v888_v47 }
 0x15b   : > { %v868_v54 = vpop.f32.mrb[52].mxu0 }
 0x15c   : > { %v889_v55 = vadd.f32 %v868_v54, %v767_v62  ;;  %v3006_v39 = vpop.f32.mrb[53].mxu0  ;;  %v990_v46 = vpop.f32.mrb[52].mxu1 }
 0x15d   : > { %v871_v57 = vpop.f32.mrb[54].mxu0  ;;  %v3028_v58 = vpop.f32.mrb[53].mxu1 }
 0x15e   : > { %v890_v59 = vadd.f32 %v871_v57, %v768_v2  ;;  %v1011_v60 = vadd.f32 %v990_v46, %v889_v55  ;;  %v3007_v63 = vpop.f32.mrb[55].mxu0  ;;  %v993_v48 = vpop.f32.mrb[54].mxu1 }
 0x15f   : > { %v3029_v51 = vpop.f32.mrb[55].mxu1 }
 0x160   : > { %v1012_v0 = vadd.f32 %v993_v48, %v890_v59 }
 0x163   : > { %v876_v4 = vpop.f32.mrb[56].mxu0 }
 0x164   : > { %v891_v5 = vadd.f32 %v876_v4, %v769_v11  ;;  %v3010_v53 = vpop.f32.mrb[57].mxu0  ;;  %v998_v56 = vpop.f32.mrb[56].mxu1 }
 0x165   : > { %v879_v6 = vpop.f32.mrb[58].mxu0  ;;  %v3032_v7 = vpop.f32.mrb[57].mxu1 }
 0x166   : > { %v892_v9 = vadd.f32 %v879_v6, %v770_v15  ;;  %v1013_v10 = vadd.f32 %v998_v56, %v891_v5  ;;  %v3011_v12 = vpop.f32.mrb[59].mxu0  ;;  %v1001_v62 = vpop.f32.mrb[58].mxu1 }
 0x167   : > { %v3033_v61 = vpop.f32.mrb[59].mxu1 }
 0x168   : > { %v1014_v14 = vadd.f32 %v1001_v62, %v892_v9 }
 0x16b   : > { %v1088_v16 = vpop.f32.mrb[60].mxu0 }
 0x16c   : > { %v1127_v17 = vadd.f32 %v1088_v16, %v1005_v23  ;;  %v3038_v2 = vpop.f32.mrb[61].mxu0  ;;  %v1210_v3 = vpop.f32.mrb[60].mxu1  ;;  %v3682_v16 = vld [vmem:[%s3998_s2] ss:$0 sm:$0xff] }
 0x16d   : > { %v1091_v18 = vpop.f32.mrb[62].mxu0  ;;  %v3060_v19 = vpop.f32.mrb[61].mxu1 }
 0x16e   : > { %v1128_v20 = vadd.f32 %v1091_v18, %v1006_v27  ;;  %v1249_v21 = vadd.f32 %v1210_v3, %v1127_v17  ;;  %v3039_v24 = vpop.f32.mrb[63].mxu0  ;;  %v1213_v11 = vpop.f32.mrb[62].mxu1  ;;  %v294_v19 = vld [vmem:[%s4001_s5] sm:$0xff] }
 0x16f   : > { %v3061_v8 = vpop.f32.mrb[63].mxu1 }
 0x170   : > { %v1250_v25 = vadd.f32 %v1213_v11, %v1128_v20  ;;  %v295_v11 = vld [vmem:[%s4001_s5 + $0x8] sm:$0xff] }
 0x173   : > { %v1096_v28 = vpop.f32.mrb[64].mxu0 }
 0x174   : > { %v1129_v29 = vadd.f32 %v1096_v28, %v1007_v34  ;;  %v3042_v15 = vpop.f32.mrb[65].mxu0  ;;  %v1218_v13 = vpop.f32.mrb[64].mxu1 }
 0x175   : > { %v1099_v31 = vpop.f32.mrb[66].mxu0  ;;  %v3064_v32 = vpop.f32.mrb[65].mxu1 }
 0x176   : > { %v1130_v30 = vadd.f32 %v1099_v31, %v1008_v38  ;;  %v1251_v33 = vadd.f32 %v1218_v13, %v1129_v29  ;;  %v3043_v36 = vpop.f32.mrb[67].mxu0  ;;  %v1221_v23 = vpop.f32.mrb[66].mxu1 }
 0x177   : > { %v3065_v22 = vpop.f32.mrb[67].mxu1  ;;  %v296_v36 = vld [vmem:[%s4001_s5 + $0x10] sm:$0xff] }
 0x178   : > { %v1252_v37 = vadd.f32 %v1221_v23, %v1130_v30 }
 0x17b   : > { %v1104_v41 = vpop.f32.mrb[68].mxu0 }
 0x17c   : > { %v1131_v42 = vadd.f32 %v1104_v41, %v1009_v40  ;;  %v3046_v27 = vpop.f32.mrb[69].mxu0  ;;  %v1226_v26 = vpop.f32.mrb[68].mxu1  ;;  %v297_v41 = vld [vmem:[%s4001_s5 + $0x18] sm:$0xff] }
 0x17d   : > { %v1107_v43 = vpop.f32.mrb[70].mxu0  ;;  %v3068_v44 = vpop.f32.mrb[69].mxu1 }
 0x17e   : > { %v1132_v45 = vadd.f32 %v1107_v43, %v1010_v52  ;;  %v3667_v47 = vadd.f32 %v1226_v26, %v1131_v42  ;;  %v3047_v34 = vpop.f32.mrb[71].mxu0  ;;  %v1229_v49 = vpop.f32.mrb[70].mxu1  ;;  %v1441_v42 = vld [vmem:[#allocation3] sm:$0xff] }
 0x17f   : > { %v3069_v35 = vpop.f32.mrb[71].mxu1 }
 0x180   : > { %v3669_v50 = vadd.f32 %v1229_v49, %v1132_v45 }
 0x183   : > { %v1112_v38 = vpop.f32.mrb[72].mxu0 }
 0x184   : > { %v1133_v54 = vadd.f32 %v1112_v38, %v1011_v60  ;;  %v3050_v55 = vpop.f32.mrb[73].mxu0  ;;  %v1234_v39 = vpop.f32.mrb[72].mxu1 }
 0x185   : > { %v1115_v46 = vpop.f32.mrb[74].mxu0  ;;  %v3072_v57 = vpop.f32.mrb[73].mxu1  ;;  %v3321_v55 = vld [vmem:[%s3999_s3 + $0x18] sm:$0xff]  }
 0x186   : > { %v1134_v58 = vadd.f32 %v1115_v46, %v1012_v0  ;;  %v3671_v40 = vadd.f32 %v1234_v39, %v1133_v54  ;;  %v3051_v59 = vpop.f32.mrb[75].mxu0  ;;  %v1237_v63 = vpop.f32.mrb[74].mxu1 }
 0x187   : > { %v3073_v48 = vpop.f32.mrb[75].mxu1 }
 0x188   : > { %v3673_v52 = vadd.f32 %v1237_v63, %v1134_v58 }
 0x18b   : > { %v1120_v51 = vpop.f32.mrb[76].mxu0 }
 0x18c   : > { %v1135_v4 = vadd.f32 %v1120_v51, %v1013_v10  ;;  %v3054_v5 = vpop.f32.mrb[77].mxu0  ;;  %v1242_v53 = vpop.f32.mrb[76].mxu1 }
 0x18d   : > { %v1123_v56 = vpop.f32.mrb[78].mxu0  ;;  %v3076_v6 = vpop.f32.mrb[77].mxu1 }
 0x18e   : > { %v1136_v7 = vadd.f32 %v1123_v56, %v1014_v14  ;;  %v3675_v60 = vadd.f32 %v1242_v53, %v1135_v4  ;;  %v3055_v9 = vpop.f32.mrb[79].mxu0  ;;  %v1245_v12 = vpop.f32.mrb[78].mxu1 }
 0x18f   : > { %v3077_v62 = vpop.f32.mrb[79].mxu1 }
 0x190   : > { %v3677_v0 = vadd.f32 %v1245_v12, %v1136_v7 }
 0x193   : > { %v1332_v61 = vpop.f32.mrb[80].mxu0 }
 0x194   : > { %v1371_v17 = vadd.f32 %v1332_v61, %v1249_v21  ;;  %v3082_v10 = vpop.f32.mrb[81].mxu0 }
 0x195   : > { %v1335_v2 = vpop.f32.mrb[82].mxu0 }
 0x196   : > { %v1388_v3 = vadd.f32 %v3682_v16, %v1371_v17  ;;  %v1372_v18 = vadd.f32 %v1335_v2, %v1250_v25  ;;  %v3083_v14 = vpop.f32.mrb[83].mxu0 }
 0x198   : > { %v1411_v20 = vmax.f32 %v1388_v3, 0.0  ;;  %v1389_v24 = vadd.f32 %v3682_v16, %v1372_v18  ;;  %v300_v18 = vld [vmem:[%s4001_s5 + $0x30] sm:$0xff] }
 0x19a   : > { %v1421_v8 = vmul.f32 %v1411_v20, %v294_v19  ;;  %v1412_v28 = vmax.f32 %v1389_v24, 0.0 }
 0x19b   : > { %v1340_v21 = vpop.f32.mrb[84].mxu0 }
 0x19c   : > { %1431 = vst.msk [vmem:[#allocation3 + $0xb] sm:$0xff] %vm279_vm1, %v1421_v8  ;;  %v1422_v29 = vmul.f32 %v1412_v28, %v295_v11  ;;  %v1373_v15 = vadd.f32 %v1340_v21, %v1251_v33  ;;  %v3086_v25 = vpop.f32.mrb[85].mxu0  ;;  %v1458_v33 = vld [vmem:[#allocation3 + $0x1] sm:$0xff] }
 0x19d   : > { %v1343_v13 = vpop.f32.mrb[86].mxu0 }
 0x19e   : > { %1432 = vst.msk [vmem:[#allocation3 + $0x13] sm:$0xff] %vm279_vm1, %v1422_v29  ;;  %v1390_v31 = vadd.f32 %v3682_v16, %v1373_v15  ;;  %v1374_v32 = vadd.f32 %v1343_v13, %v1252_v37  ;;  %v3087_v30 = vpop.f32.mrb[87].mxu0  ;;  %v3320_v37 = vld [vmem:[%s3999_s3 + $0x10] sm:$0xff]  }
 0x1a0   : > { %v1413_v23 = vmax.f32 %v1390_v31, 0.0  ;;  %v1391_v22 = vadd.f32 %v3682_v16, %v1374_v32 }
 0x1a2   : > { %v1423_v27 = vmul.f32 %v1413_v23, %v296_v36  ;;  %v1414_v26 = vmax.f32 %v1391_v22, 0.0  ;;  %v3759_v22 = vld [vmem:[%s4001_s5 + $0x40] sm:$0xff] }
 0x1a3   : > { %v1348_v43 = vpop.f32.mrb[88].mxu0  ;;  %v1459_v44 = vld [vmem:[#allocation3 + $0x9] sm:$0xff] }
 0x1a4   : > { %v1442_v45 = vld [vmem:[#allocation3 + $0x8] sm:$0xff]  ;;  %1433 = vst.msk [vmem:[#allocation3 + $0x1b] sm:$0xff] %vm279_vm1, %v1423_v27  ;;  %v1424_v34 = vmul.f32 %v1414_v26, %v297_v41  ;;  %v1375_v49 = vadd.f32 %v1348_v43, %v3667_v47  ;;  %v3090_v35 = vpop.f32.mrb[89].mxu0  ;;  %v1468_v38 = vpack.c.bf16 %v1459_v44, %v1458_v33  ;;  %v298_v47 = vld [vmem:[%s4001_s5 + $0x20] sm:$0xff] }
 0x1a5   : > { %v1451_v54 = vpack.c.bf16 %v1442_v45, %v1441_v42  ;;  %v1351_v39 = vpop.f32.mrb[90].mxu0  ;;  %v1460_v4 = vld [vmem:[#allocation3 + $0x11] sm:$0xff] }
 0x1a6   : > { %1434 = vst.msk [vmem:[#allocation3 + $0x23] sm:$0xff] %vm279_vm1, %v1424_v34  ;;  %v1392_v46 = vadd.f32 %v3682_v16, %v1375_v49  ;;  %v1376_v57 = vadd.f32 %v1351_v39, %v3669_v50  ;;  %v3091_v58 = vpop.f32.mrb[91].mxu0  ;;  %3103 = vmatmul.mubr.msk.bf16.vlgmr.msra.gmra.mrb[80].mxu1 %vm279_vm1, %v1468_v38  ;;  %v299_v50 = vld [vmem:[%s4001_s5 + $0x28] sm:$0xff]  ;;  %v1443_v56 = vld [vmem:[#allocation3 + $0x10] sm:$0xff] }
 0x1a7   : > { %3125 = vmatmul.mubr.msk.bf16.vlgmr.msra.gmra.mrb[100].mxu0 %vm279_vm1, %v1451_v54  ;;  %3145 = vmatpush3.bf16.msra.mxu1 %v3320_v37  ;;  %v1664_v39 = vld [vmem:[#allocation3 + $0x2] sm:$0xff]  ;;  %v3322_v58 = vld [vmem:[%s3999_s3 + $0x20] sm:$0xff]  }
 0x1a8   : > { %3106 = vmatprep.mubr.msk.bf16.mxu1 %vm3343_vm0, %v3342_v1  ;;  %v1415_v59 = vmax.f32 %v1392_v46, 0.0  ;;  %v1393_v63 = vadd.f32 %v3682_v16, %v1376_v57  ;;  %3128 = vmatprep.mubr.msk.bf16.mxu0 %vm3343_vm0, %v3342_v1  ;;  %v1665_v46 = vld [vmem:[#allocation3 + $0xa] sm:$0xff]  ;;  %v1787_v57 = vld [vmem:[#allocation3 + $0x12] sm:$0xff] }
 0x1a9   : > { %3167 = vmatpush3.bf16.msra.mxu0 %v3321_v55  ;;  %3188 = vmatprep.subr.bf16.mxu1 %v3342_v1 }
 0x1aa   : > { %3210 = vmatprep.subr.bf16.mxu0 %v3342_v1  ;;  %v1425_v48 = vmul.f32 %v1415_v59, %v298_v47  ;;  %v1416_v51 = vmax.f32 %v1393_v63, 0.0  ;;  %v1674_v47 = vpack.c.bf16 %v1665_v46, %v1664_v39  ;;  %v1796_v59 = vpack.c.bf16 %v1787_v57, %v1665_v46  ;;  %v3323_v63 = vld [vmem:[%s3999_s3 + $0x28] sm:$0xff]  }
 0x1ab   : > { %v1356_v5 = vpop.f32.mrb[92].mxu0  ;;  %v1461_v53 = vld [vmem:[#allocation3 + $0x19] sm:$0xff] }
 0x1ac   : > { %v1444_v6 = vld [vmem:[#allocation3 + $0x18] sm:$0xff]  ;;  %1435 = vst.msk [vmem:[#allocation3 + $0x2b] sm:$0xff] %vm279_vm1, %v1425_v48  ;;  %v1426_v7 = vmul.f32 %v1416_v51, %v299_v50  ;;  %v1377_v9 = vadd.f32 %v1356_v5, %v3671_v40  ;;  %v3094_v12 = vpop.f32.mrb[93].mxu0  ;;  %v1469_v62 = vpack.c.bf16 %v1461_v53, %v1460_v4 }
 0x1ad   : > { %v1452_v61 = vpack.c.bf16 %v1444_v6, %v1443_v56  ;;  %v1359_v17 = vpop.f32.mrb[94].mxu0  ;;  %v1462_v24 = vld [vmem:[#allocation3 + $0x21] sm:$0xff] }
 0x1ae   : > { %1436 = vst.msk [vmem:[#allocation3 + $0x33] sm:$0xff] %vm279_vm1, %v1426_v7  ;;  %v1394_v10 = vadd.f32 %v3682_v16, %v1377_v9  ;;  %v1378_v2 = vadd.f32 %v1359_v17, %v3673_v52  ;;  %v3095_v3 = vpop.f32.mrb[95].mxu0  ;;  %3107 = vmatmul.mubr.msk.bf16.gmra.mrb[84].mxu1 %vm279_vm1, %v1469_v62  ;;  %v3746_v52 = vld [vmem:[%s4001_s5 + $0x38] sm:$0xff]  ;;  %v1445_v28 = vld [vmem:[#allocation3 + $0x20] sm:$0xff] }
 0x1af   : > { %3129 = vmatmul.mubr.msk.bf16.gmra.mrb[104].mxu0 %vm279_vm1, %v1452_v61  ;;  %3110 = vmatprep.mubr.msk.bf16.mxu1 %vm3343_vm0, %v3342_v1  ;;  %v1667_v50 = vld [vmem:[#allocation3 + $0x1a] sm:$0xff]  ;;  %v1789_v48 = vld [vmem:[#allocation3 + $0x22] sm:$0xff] }
 0x1b0   : > { %3132 = vmatprep.mubr.msk.bf16.mxu0 %vm3343_vm0, %v3342_v1  ;;  %v1417_v40 = vmax.f32 %v1394_v10, 0.0  ;;  %v1395_v14 = vadd.f32 %v3682_v16, %v1378_v2  ;;  %v1675_v51 = vpack.c.bf16 %v1667_v50, %v1787_v57  ;;  %v1797_v4 = vpack.c.bf16 %v1789_v48, %v1667_v50  ;;  %v1909_v3 = vld [vmem:[#allocation3 + $0x13] sm:$0xff] }
 0x1b2   : > { %v1427_v19 = vmul.f32 %v1417_v40, %v300_v18  ;;  %v1418_v20 = vmax.f32 %v1395_v14, 0.0  ;;  %v2031_v18 = vld [vmem:[#allocation3 + $0x14] sm:$0xff]  ;;  %v1908_v40 = vld [vmem:[#allocation3 + $0xb] sm:$0xff] }
 0x1b3   : > { %v1364_v11 = vpop.f32.mrb[96].mxu0  ;;  %v1463_v8 = vld [vmem:[#allocation3 + $0x29] sm:$0xff] }
 0x1b4   : > { %v1446_v21 = vld [vmem:[#allocation3 + $0x28] sm:$0xff]  ;;  %1437 = vst.msk [vmem:[#allocation3 + $0x3b] sm:$0xff] %vm279_vm1, %v1427_v19  ;;  %v1428_v29 = vmul.f32 %v1418_v20, %v3746_v52  ;;  %v1379_v15 = vadd.f32 %v1364_v11, %v3675_v60  ;;  %v3098_v25 = vpop.f32.mrb[97].mxu0  ;;  %v1470_v13 = vpack.c.bf16 %v1463_v8, %v1462_v24  ;;  %v1918_v20 = vpack.c.bf16 %v1909_v3, %v1908_v40  ;;  %v3325_v11 = vld [vmem:[%s3999_s3 + $0x38] sm:$0xff]  }
 0x1b5   : > { %v1453_v31 = vpack.c.bf16 %v1446_v21, %v1445_v28  ;;  %v1367_v32 = vpop.f32.mrb[98].mxu0  ;;  %v1464_v27 = vld [vmem:[#allocation3 + $0x31] sm:$0xff]  ;;  %v3324_v19 = vld [vmem:[%s3999_s3 + $0x30] sm:$0xff]   ;;  %v1910_v21 = vld [vmem:[#allocation3 + $0x1b] sm:$0xff] }
 0x1b6   : > { %1438 = vst.msk [vmem:[#allocation3 + $0x43] sm:$0xff] %vm279_vm1, %v1428_v29  ;;  %v1396_v30 = vadd.f32 %v3682_v16, %v1379_v15  ;;  %v1380_v36 = vadd.f32 %v1367_v32, %v3677_v0  ;;  %v3099_v23 = vpop.f32.mrb[99].mxu0  ;;  %3111 = vmatmul.mubr.msk.bf16.gmra.mrb[88].mxu1 %vm279_vm1, %v1470_v13  ;;  %v3769_v0 = vld [vmem:[%s4001_s5 + $0x48] sm:$0xff]  ;;  %v1447_v43 = vld [vmem:[#allocation3 + $0x30] sm:$0xff] }
 0x1b7   : > { %3133 = vmatmul.mubr.msk.bf16.gmra.mrb[108].mxu0 %vm279_vm1, %v1453_v31  ;;  %3114 = vmatprep.mubr.msk.bf16.mxu1 %vm3343_vm0, %v3342_v1  ;;  %v1669_v5 = vld [vmem:[#allocation3 + $0x2a] sm:$0xff]  ;;  %v1791_v53 = vld [vmem:[#allocation3 + $0x32] sm:$0xff]  ;;  %v2032_v29 = vld [vmem:[#allocation3 + $0x1c] sm:$0xff] }
 0x1b8   : > { %3136 = vmatprep.mubr.msk.bf16.mxu0 %vm3343_vm0, %v3342_v1  ;;  %v1419_v60 = vmax.f32 %v1396_v30, 0.0  ;;  %v1397_v41 = vadd.f32 %v3682_v16, %v1380_v36  ;;  %v1676_v56 = vpack.c.bf16 %v1669_v5, %v1789_v48  ;;  %v1798_v6 = vpack.c.bf16 %v1791_v53, %v1669_v5  ;;  %v2030_v14 = vld [vmem:[#allocation3 + $0xc] sm:$0xff]  ;;  %v1911_v8 = vld [vmem:[#allocation3 + $0x23] sm:$0xff] }
 0x1b9   : > { %v2040_v24 = vpack.c.bf16 %v2031_v18, %v2030_v14  ;;  %v2033_v28 = vld [vmem:[#allocation3 + $0x24] sm:$0xff]  ;;  %v1919_v15 = vpack.c.bf16 %v1911_v8, %v1910_v21  ;;  %v1913_v13 = vld [vmem:[#allocation3 + $0x33] sm:$0xff] }
 0x1ba   : > { %v1429_v33 = vmul.f32 %v1419_v60, %v3759_v22  ;;  %v1420_v42 = vmax.f32 %v1397_v41, 0.0  ;;  %v2041_v25 = vpack.c.bf16 %v2033_v28, %v2032_v29  ;;  %v1912_v32 = vld [vmem:[#allocation3 + $0x2b] sm:$0xff] }
 0x1bb   : > { %v1465_v26 = vld [vmem:[#allocation3 + $0x39] sm:$0xff]  ;;  %v2034_v30 = vld [vmem:[#allocation3 + $0x2c] sm:$0xff]  ;;  %v1920_v36 = vpack.c.bf16 %v1913_v13, %v1912_v32 }
 0x1bc   : > { %v1448_v44 = vld [vmem:[#allocation3 + $0x38] sm:$0xff]  ;;  %1439 = vst.msk [vmem:[#allocation3 + $0x4b] sm:$0xff] %vm279_vm1, %v1429_v33  ;;  %v1430_v45 = vmul.f32 %v1420_v42, %v3769_v0  ;;  %v1471_v37 = vpack.c.bf16 %v1465_v26, %v1464_v27  ;;  %v2277_v39 = vld [vmem:[#allocation3 + $0x2d] sm:$0xff]  ;;  %v2276_v46 = vld [vmem:[#allocation3 + $0x25] sm:$0xff]  ;;  %v2163_v57 = vpack.c.bf16 %v2034_v30, %v2033_v28 }
 0x1bd   : > { %v1454_v34 = vpack.c.bf16 %v1448_v44, %v1447_v43  ;;  %v1466_v16 = vld [vmem:[#allocation3 + $0x41] sm:$0xff]  ;;  %v2035_v31 = vld [vmem:[#allocation3 + $0x34] sm:$0xff] }
 0x1be   : > { %1440 = vst.msk [vmem:[#allocation3 + $0x53] sm:$0xff] %vm279_vm1, %v1430_v45  ;;  %3115 = vmatmul.mubr.msk.bf16.gmra.mrb[92].mxu1 %vm279_vm1, %v1471_v37  ;;  %v1449_v35 = vld [vmem:[#allocation3 + $0x40] sm:$0xff]  ;;  %v2042_v23 = vpack.c.bf16 %v2035_v31, %v2034_v30 }
 0x1bf   : > { %3137 = vmatmul.mubr.msk.bf16.gmra.mrb[112].mxu0 %vm279_vm1, %v1454_v34  ;;  %3118 = vmatprep.mubr.msk.bf16.mxu1 %vm3343_vm0, %v3342_v1  ;;  %v1671_v7 = vld [vmem:[#allocation3 + $0x3a] sm:$0xff]  ;;  %v1793_v9 = vld [vmem:[#allocation3 + $0x42] sm:$0xff] }
 0x1c0   : > { %3140 = vmatprep.mubr.msk.bf16.mxu0 %vm3343_vm0, %v3342_v1  ;;  %v1677_v12 = vpack.c.bf16 %v1671_v7, %v1791_v53  ;;  %v1799_v62 = vpack.c.bf16 %v1793_v9, %v1671_v7  ;;  %v1915_v60 = vld [vmem:[#allocation3 + $0x43] sm:$0xff]  ;;  %v1914_v33 = vld [vmem:[#allocation3 + $0x3b] sm:$0xff] }
 0x1c1   : > { %v2036_v42 = vld [vmem:[#allocation3 + $0x3c] sm:$0xff]  ;;  %v1921_v27 = vpack.c.bf16 %v1915_v60, %v1914_v33 }
 0x1c2   : > { %v2161_v53 = vld [vmem:[#allocation3 + $0x5c] sm:$0xff] }
 0x1c3   : > { %v1467_v49 = vld [vmem:[#allocation3 + $0x49] sm:$0xff]  ;;  %v2401_v3 = vld [vmem:[#allocation3 + $0x3e] sm:$0xff] }
 0x1c4   : > { %v1450_v38 = vld [vmem:[#allocation3 + $0x48] sm:$0xff]  ;;  %v1472_v54 = vpack.c.bf16 %v1467_v49, %v1466_v16  ;;  %v2275_v49 = vld [vmem:[#allocation3 + $0x1d] sm:$0xff] }
 0x1c5   : > { %v1455_v55 = vpack.c.bf16 %v1450_v38, %v1449_v35  ;;  %v1673_v61 = vld [vmem:[#allocation3 + $0x4a] sm:$0xff]  ;;  %v1795_v17 = vld [vmem:[#allocation3 + $0x52] sm:$0xff] }
 0x1c6   : > { %3119 = vmatmul.mubr.msk.bf16.gmra.mrb[96].mxu1 %vm279_vm1, %v1472_v54  ;;  %v1678_v10 = vpack.c.bf16 %v1673_v61, %v1793_v9  ;;  %v1800_v2 = vpack.c.bf16 %v1795_v17, %v1673_v61  ;;  %v2037_v41 = vld [vmem:[#allocation3 + $0x44] sm:$0xff]  ;;  %v1917_v43 = vld [vmem:[#allocation3 + $0x53] sm:$0xff]  ;;  %v2162_v54 = vpack.c.bf16 %v2032_v29, %v2031_v18 }
 0x1c7   : > { %3141 = vmatmul.mubr.msk.bf16.gmra.mrb[116].mxu0 %vm279_vm1, %v1455_v55  ;;  %3146 = vmatprep.mubr.msk.bf16.mxu1 %vm3343_vm0, %v3342_v1  ;;  %v2043_v26 = vpack.c.bf16 %v2037_v41, %v2036_v42  ;;  %v2038_v44 = vld [vmem:[#allocation3 + $0x4c] sm:$0xff]  ;;  %v2039_v45 = vld [vmem:[#allocation3 + $0x54] sm:$0xff] }
 0x1c8   : > { %3168 = vmatprep.mubr.msk.bf16.mxu0 %vm3343_vm0, %v3342_v1  ;;  %v1916_v37 = vld [vmem:[#allocation3 + $0x4b] sm:$0xff]  ;;  %v2044_v16 = vpack.c.bf16 %v2039_v45, %v2038_v44  ;;  %v2274_v35 = vld [vmem:[#allocation3 + $0x15] sm:$0xff]  ;;  %v2166_v7 = vpack.c.bf16 %v2161_v53, %v2039_v45 }
 0x1c9   : > { %v1922_v34 = vpack.c.bf16 %v1917_v43, %v1916_v37  ;;  %v3326_v38 = vld [vmem:[%s3999_s3 + $0x40] sm:$0xff]   ;;  %v2284_v55 = vpack.c.bf16 %v2275_v49, %v2274_v35  ;;  %v2281_v48 = vld [vmem:[#allocation3 + $0x4d] sm:$0xff] }
 0x1ca   : > { %v2399_v17 = vld [vmem:[#allocation3 + $0x2e] sm:$0xff]  ;;  %v2400_v18 = vld [vmem:[#allocation3 + $0x36] sm:$0xff] }
 0x1cb   : > { %v2408_v40 = vpack.c.bf16 %v2401_v3, %v2400_v18  ;;  %v2403_v14 = vld [vmem:[#allocation3 + $0x4e] sm:$0xff] }
 0x1ce   : > { %3147 = vmatmul.mubr.msk.bf16.vlgmr.msra.gmra.mrb[100].mxu1 %vm279_vm1, %v1674_v47  ;;  %v2279_v47 = vld [vmem:[#allocation3 + $0x3d] sm:$0xff] }
 0x1cf   : > { %3169 = vmatmul.mubr.msk.bf16.vlgmr.msra.gmra.mrb[120].mxu0 %vm279_vm1, %v1796_v59  ;;  %3189 = vmatpush3.bf16.msra.mxu1 %v3322_v58  ;;  %v2285_v58 = vpack.c.bf16 %v2277_v39, %v2276_v46  ;;  %v2278_v59 = vld [vmem:[#allocation3 + $0x35] sm:$0xff] }
 0x1d0   : > { %3150 = vmatprep.mubr.msk.bf16.mxu1 %vm3343_vm0, %v3342_v1  ;;  %3172 = vmatprep.mubr.msk.bf16.mxu0 %vm3343_vm0, %v3342_v1  ;;  %v2286_v50 = vpack.c.bf16 %v2279_v47, %v2278_v59 }
 0x1d1   : > { %3211 = vmatpush3.bf16.msra.mxu0 %v3323_v63  ;;  %3232 = vmatprep.subr.bf16.mxu1 %v3342_v1  ;;  %v2164_v63 = vpack.c.bf16 %v2036_v42, %v2035_v31 }
 0x1d2   : > { %3254 = vmatprep.subr.bf16.mxu0 %v3342_v1 }
 0x1d6   : > { %3151 = vmatmul.mubr.msk.bf16.gmra.mrb[104].mxu1 %vm279_vm1, %v1675_v51  ;;  %v2280_v51 = vld [vmem:[#allocation3 + $0x45] sm:$0xff] }
 0x1d7   : > { %3173 = vmatmul.mubr.msk.bf16.gmra.mrb[124].mxu0 %vm279_vm1, %v1797_v4  ;;  %3154 = vmatprep.mubr.msk.bf16.mxu1 %vm3343_vm0, %v3342_v1  ;;  %v2165_v4 = vpack.c.bf16 %v2038_v44, %v2037_v41  ;;  %v2287_v5 = vpack.c.bf16 %v2281_v48, %v2280_v51 }
 0x1d8   : > { %3176 = vmatprep.mubr.msk.bf16.mxu0 %vm3343_vm0, %v3342_v1 }
 0x1de   : > { %3155 = vmatmul.mubr.msk.bf16.gmra.mrb[108].mxu1 %vm279_vm1, %v1676_v56  ;;  %v2282_v56 = vld [vmem:[#allocation3 + $0x55] sm:$0xff] }
 0x1df   : > { %3177 = vmatmul.mubr.msk.bf16.gmra.mrb[128].mxu0 %vm279_vm1, %v1798_v6  ;;  %3158 = vmatprep.mubr.msk.bf16.mxu1 %vm3343_vm0, %v3342_v1  ;;  %v2283_v6 = vld [vmem:[#allocation3 + $0x5d] sm:$0xff] }
 0x1e0   : > { %3180 = vmatprep.mubr.msk.bf16.mxu0 %vm3343_vm0, %v3342_v1  ;;  %v2288_v9 = vpack.c.bf16 %v2283_v6, %v2282_v56 }
 0x1e6   : > { %3159 = vmatmul.mubr.msk.bf16.gmra.mrb[112].mxu1 %vm279_vm1, %v1677_v12  ;;  %v2397_v12 = vld [vmem:[#allocation3 + $0x1e] sm:$0xff] }
 0x1e7   : > { %3181 = vmatmul.mubr.msk.bf16.gmra.mrb[132].mxu0 %vm279_vm1, %v1799_v62  ;;  %3162 = vmatprep.mubr.msk.bf16.mxu1 %vm3343_vm0, %v3342_v1  ;;  %v2396_v62 = vld [vmem:[#allocation3 + $0x16] sm:$0xff] }
 0x1e8   : > { %3184 = vmatprep.mubr.msk.bf16.mxu0 %vm3343_vm0, %v3342_v1  ;;  %v2406_v61 = vpack.c.bf16 %v2397_v12, %v2396_v62 }
 0x1ee   : > { %3163 = vmatmul.mubr.msk.bf16.gmra.mrb[116].mxu1 %vm279_vm1, %v1678_v10  ;;  %v2398_v10 = vld [vmem:[#allocation3 + $0x26] sm:$0xff] }
 0x1ef   : > { %3185 = vmatmul.mubr.msk.bf16.gmra.mrb[136].mxu0 %vm279_vm1, %v1800_v2  ;;  %3190 = vmatprep.mubr.msk.bf16.mxu1 %vm3343_vm0, %v3342_v1  ;;  %v2407_v2 = vpack.c.bf16 %v2399_v17, %v2398_v10 }
 0x1f0   : > { %3212 = vmatprep.mubr.msk.bf16.mxu0 %vm3343_vm0, %v3342_v1 }
 0x1f6   : > { %3191 = vmatmul.mubr.msk.bf16.vlgmr.msra.gmra.mrb[120].mxu1 %vm279_vm1, %v1918_v20 }
 0x1f7   : > { %3213 = vmatmul.mubr.msk.bf16.vlgmr.msra.gmra.mrb[140].mxu0 %vm279_vm1, %v2040_v24  ;;  %3233 = vmatpush3.bf16.msra.mxu1 %v3324_v19  ;;  %v2402_v19 = vld [vmem:[#allocation3 + $0x46] sm:$0xff]  ;;  %v2404_v24 = vld [vmem:[#allocation3 + $0x56] sm:$0xff] }
 0x1f8   : > { %3194 = vmatprep.mubr.msk.bf16.mxu1 %vm3343_vm0, %v3342_v1  ;;  %3216 = vmatprep.mubr.msk.bf16.mxu0 %vm3343_vm0, %v3342_v1  ;;  %v2409_v20 = vpack.c.bf16 %v2403_v14, %v2402_v19 }
 0x1f9   : > { %3255 = vmatpush3.bf16.msra.mxu0 %v3325_v11  ;;  %3276 = vmatprep.subr.bf16.mxu1 %v3342_v1  ;;  %v2405_v11 = vld [vmem:[#allocation3 + $0x5e] sm:$0xff] }
 0x1fa   : > { %v2410_v8 = vpack.c.bf16 %v2405_v11, %v2404_v24 }
 0x1fe   : > { %3195 = vmatmul.mubr.msk.bf16.gmra.mrb[124].mxu1 %vm279_vm1, %v1919_v15 }
 0x1ff   : > { %3217 = vmatmul.mubr.msk.bf16.gmra.mrb[144].mxu0 %vm279_vm1, %v2041_v25  ;;  %3198 = vmatprep.mubr.msk.bf16.mxu1 %vm3343_vm0, %v3342_v1 }
 0x200   : > { %3220 = vmatprep.mubr.msk.bf16.mxu0 %vm3343_vm0, %v3342_v1 }
 0x206   : > { %3199 = vmatmul.mubr.msk.bf16.gmra.mrb[128].mxu1 %vm279_vm1, %v1920_v36 }
 0x207   : > { %3221 = vmatmul.mubr.msk.bf16.gmra.mrb[148].mxu0 %vm279_vm1, %v2042_v23  ;;  %3202 = vmatprep.mubr.msk.bf16.mxu1 %vm3343_vm0, %v3342_v1 }
 0x208   : > { %3224 = vmatprep.mubr.msk.bf16.mxu0 %vm3343_vm0, %v3342_v1 }
 0x20e   : > { %3203 = vmatmul.mubr.msk.bf16.gmra.mrb[132].mxu1 %vm279_vm1, %v1921_v27 }
 0x20f   : > { %3225 = vmatmul.mubr.msk.bf16.gmra.mrb[152].mxu0 %vm279_vm1, %v2043_v26  ;;  %3206 = vmatprep.mubr.msk.bf16.mxu1 %vm3343_vm0, %v3342_v1 }
 0x210   : > { %3228 = vmatprep.mubr.msk.bf16.mxu0 %vm3343_vm0, %v3342_v1 }
 0x216   : > { %3207 = vmatmul.mubr.msk.bf16.gmra.mrb[136].mxu1 %vm279_vm1, %v1922_v34 }
 0x217   : > { %3229 = vmatmul.mubr.msk.bf16.gmra.mrb[156].mxu0 %vm279_vm1, %v2044_v16  ;;  %3234 = vmatprep.mubr.msk.bf16.mxu1 %vm3343_vm0, %v3342_v1 }
 0x218   : > { %3256 = vmatprep.mubr.msk.bf16.mxu0 %vm3343_vm0, %v3342_v1 }
 0x21e   : > { %3235 = vmatmul.mubr.msk.bf16.vlgmr.msra.gmra.mrb[140].mxu1 %vm279_vm1, %v2162_v54 }
 0x21f   : > { %3257 = vmatmul.mubr.msk.bf16.vlgmr.msra.gmra.mrb[160].mxu0 %vm279_vm1, %v2284_v55  ;;  %3277 = vmatpush3.bf16.msra.mxu1 %v3326_v38 }
 0x220   : > { %3238 = vmatprep.mubr.msk.bf16.mxu1 %vm3343_vm0, %v3342_v1  ;;  %3260 = vmatprep.mubr.msk.bf16.mxu0 %vm3343_vm0, %v3342_v1 }
 0x226   : > { %3239 = vmatmul.mubr.msk.bf16.gmra.mrb[144].mxu1 %vm279_vm1, %v2163_v57 }
 0x227   : > { %3261 = vmatmul.mubr.msk.bf16.gmra.mrb[164].mxu0 %vm279_vm1, %v2285_v58  ;;  %3242 = vmatprep.mubr.msk.bf16.mxu1 %vm3343_vm0, %v3342_v1 }
 0x228   : > { %3264 = vmatprep.mubr.msk.bf16.mxu0 %vm3343_vm0, %v3342_v1 }
 0x22e   : > { %3243 = vmatmul.mubr.msk.bf16.gmra.mrb[148].mxu1 %vm279_vm1, %v2164_v63 }
 0x22f   : > { %3265 = vmatmul.mubr.msk.bf16.gmra.mrb[168].mxu0 %vm279_vm1, %v2286_v50  ;;  %3246 = vmatprep.mubr.msk.bf16.mxu1 %vm3343_vm0, %v3342_v1 }
 0x230   : > { %3268 = vmatprep.mubr.msk.bf16.mxu0 %vm3343_vm0, %v3342_v1 }
 0x236   : > { %3247 = vmatmul.mubr.msk.bf16.gmra.mrb[152].mxu1 %vm279_vm1, %v2165_v4 }
 0x237   : > { %3269 = vmatmul.mubr.msk.bf16.gmra.mrb[172].mxu0 %vm279_vm1, %v2287_v5  ;;  %3250 = vmatprep.mubr.msk.bf16.mxu1 %vm3343_vm0, %v3342_v1 }
 0x238   : > { %3272 = vmatprep.mubr.msk.bf16.mxu0 %vm3343_vm0, %v3342_v1 }
 0x23e   : > { %3251 = vmatmul.mubr.msk.bf16.gmra.mrb[156].mxu1 %vm279_vm1, %v2166_v7 }
 0x23f   : > { %3273 = vmatmul.mubr.msk.bf16.gmra.mrb[176].mxu0 %vm279_vm1, %v2288_v9  ;;  %3278 = vmatprep.mubr.msk.bf16.mxu1 %vm3343_vm0, %v3342_v1 }
 0x246   : > { %3279 = vmatmul.mubr.msk.bf16.vlgmr.msra.gmra.mrb[160].mxu1 %vm279_vm1, %v2406_v61 }
 0x247   : > { %3282 = vmatprep.mubr.msk.bf16.mxu1 %vm3343_vm0, %v3342_v1 }
 0x24e   : > { %3283 = vmatmul.mubr.msk.bf16.gmra.mrb[164].mxu1 %vm279_vm1, %v2407_v2 }
 0x24f   : > { %3286 = vmatprep.mubr.msk.bf16.mxu1 %vm3343_vm0, %v3342_v1 }
 0x256   : > { %3287 = vmatmul.mubr.msk.bf16.gmra.mrb[168].mxu1 %vm279_vm1, %v2408_v40 }
 0x257   : > { %3290 = vmatprep.mubr.msk.bf16.mxu1 %vm3343_vm0, %v3342_v1 }
 0x25e   : > { %3291 = vmatmul.mubr.msk.bf16.gmra.mrb[172].mxu1 %vm279_vm1, %v2409_v20 }
 0x25f   : > { %3294 = vmatprep.mubr.msk.bf16.mxu1 %vm3343_vm0, %v3342_v1 }
 0x266   : > { %3295 = vmatmul.mubr.msk.bf16.gmra.mrb[176].mxu1 %vm279_vm1, %v2410_v8 }
 0x279   : > { %v1531_v28 = vpop.f32.mrb[80].mxu1 }
 0x27a   : > { %v1625_v21 = vpop.f32.mrb[100].mxu0  ;;  %v3104_v15 = vpop.f32.mrb[81].mxu1 }
 0x27b   : > { %v1626_v29 = vadd.f32 %v1625_v21, %v1531_v28  ;;  %v3126_v25 = vpop.f32.mrb[101].mxu0  ;;  %v1534_v13 = vpop.f32.mrb[82].mxu1 }
 0x27c   : > { %v1628_v31 = vpop.f32.mrb[102].mxu0  ;;  %v3105_v30 = vpop.f32.mrb[83].mxu1 }
 0x27d   : > { %v1629_v32 = vadd.f32 %v1628_v31, %v1534_v13  ;;  %v3127_v36 = vpop.f32.mrb[103].mxu0 }
 0x281   : > { %v1539_v23 = vpop.f32.mrb[84].mxu1 }
 0x282   : > { %v1633_v60 = vpop.f32.mrb[104].mxu0  ;;  %v3108_v33 = vpop.f32.mrb[85].mxu1 }
 0x283   : > { %v1634_v41 = vadd.f32 %v1633_v60, %v1539_v23  ;;  %v3130_v1 = vpop.f32.mrb[105].mxu0  ;;  %v1542_v42 = vpop.f32.mrb[86].mxu1 }
 0x284   : > { %v1636_v27 = vpop.f32.mrb[106].mxu0  ;;  %v3109_v43 = vpop.f32.mrb[87].mxu1 }
 0x285   : > { %v1637_v26 = vadd.f32 %v1636_v27, %v1542_v42  ;;  %v3131_v44 = vpop.f32.mrb[107].mxu0 }
 0x289   : > { %v1547_v45 = vpop.f32.mrb[88].mxu1 }
 0x28a   : > { %v1641_v37 = vpop.f32.mrb[108].mxu0  ;;  %v3112_v16 = vpop.f32.mrb[89].mxu1 }
 0x28b   : > { %v1642_v34 = vadd.f32 %v1641_v37, %v1547_v45  ;;  %v3134_v49 = vpop.f32.mrb[109].mxu0  ;;  %v1550_v35 = vpop.f32.mrb[90].mxu1 }
 0x28c   : > { %v1644_v38 = vpop.f32.mrb[110].mxu0  ;;  %v3113_v55 = vpop.f32.mrb[91].mxu1 }
 0x28d   : > { %v1645_v54 = vadd.f32 %v1644_v38, %v1550_v35  ;;  %v3135_v39 = vpop.f32.mrb[111].mxu0 }
 0x291   : > { %v1555_v46 = vpop.f32.mrb[92].mxu1 }
 0x292   : > { %v1649_v57 = vpop.f32.mrb[112].mxu0  ;;  %v3116_v47 = vpop.f32.mrb[93].mxu1 }
 0x293   : > { %v1650_v58 = vadd.f32 %v1649_v57, %v1555_v46  ;;  %v3138_v59 = vpop.f32.mrb[113].mxu0  ;;  %v1558_v63 = vpop.f32.mrb[94].mxu1 }
 0x294   : > { %v1652_v50 = vpop.f32.mrb[114].mxu0  ;;  %v3117_v51 = vpop.f32.mrb[95].mxu1 }
 0x295   : > { %v1653_v48 = vadd.f32 %v1652_v50, %v1558_v63  ;;  %v3139_v4 = vpop.f32.mrb[115].mxu0 }
 0x299   : > { %v1563_v5 = vpop.f32.mrb[96].mxu1 }
 0x29a   : > { %v1657_v53 = vpop.f32.mrb[116].mxu0  ;;  %v3120_v6 = vpop.f32.mrb[97].mxu1 }
 0x29b   : > { %v1658_v56 = vadd.f32 %v1657_v53, %v1563_v5  ;;  %v3142_v7 = vpop.f32.mrb[117].mxu0  ;;  %v1566_v9 = vpop.f32.mrb[98].mxu1 }
 0x29c   : > { %v1660_v12 = vpop.f32.mrb[118].mxu0  ;;  %v3121_v61 = vpop.f32.mrb[99].mxu1 }
 0x29d   : > { %v1661_v62 = vadd.f32 %v1660_v12, %v1566_v9  ;;  %v3143_v17 = vpop.f32.mrb[119].mxu0 }
 0x2a1   : > { %v1737_v10 = vpop.f32.mrb[100].mxu1 }
 0x2a2   : > { %v1859_v2 = vpop.f32.mrb[120].mxu0  ;;  %v1776_v3 = vadd.f32 %v1737_v10, %v1626_v29  ;;  %v3148_v18 = vpop.f32.mrb[101].mxu1 }
 0x2a3   : > { %v3170_v40 = vpop.f32.mrb[121].mxu0  ;;  %v1740_v14 = vpop.f32.mrb[102].mxu1 }
 0x2a4   : > { %v1862_v19 = vpop.f32.mrb[122].mxu0  ;;  %v1898_v20 = vadd.f32 %v1859_v2, %v1776_v3  ;;  %v1777_v24 = vadd.f32 %v1740_v14, %v1629_v32  ;;  %v3149_v11 = vpop.f32.mrb[103].mxu1 }
 0x2a5   : > { %v3171_v8 = vpop.f32.mrb[123].mxu0 }
 0x2a6   : > { %v1899_v28 = vadd.f32 %v1862_v19, %v1777_v24 }
 0x2a9   : > { %v1745_v21 = vpop.f32.mrb[104].mxu1 }
 0x2aa   : > { %v1867_v15 = vpop.f32.mrb[124].mxu0  ;;  %v1778_v25 = vadd.f32 %v1745_v21, %v1634_v41  ;;  %v3152_v13 = vpop.f32.mrb[105].mxu1 }
 0x2ab   : > { %v3174_v31 = vpop.f32.mrb[125].mxu0  ;;  %v1748_v30 = vpop.f32.mrb[106].mxu1 }
 0x2ac   : > { %v1870_v36 = vpop.f32.mrb[126].mxu0  ;;  %v1900_v23 = vadd.f32 %v1867_v15, %v1778_v25  ;;  %v1779_v60 = vadd.f32 %v1748_v30, %v1637_v26  ;;  %v3153_v33 = vpop.f32.mrb[107].mxu1 }
 0x2ad   : > { %v3175_v29 = vpop.f32.mrb[127].mxu0 }
 0x2ae   : > { %v1901_v1 = vadd.f32 %v1870_v36, %v1779_v60 }
 0x2b1   : > { %v1753_v42 = vpop.f32.mrb[108].mxu1 }
 0x2b2   : > { %v1875_v27 = vpop.f32.mrb[128].mxu0  ;;  %v1780_v43 = vadd.f32 %v1753_v42, %v1642_v34  ;;  %v3156_v44 = vpop.f32.mrb[109].mxu1 }
 0x2b3   : > { %v3178_v32 = vpop.f32.mrb[129].mxu0  ;;  %v1756_v45 = vpop.f32.mrb[110].mxu1 }
 0x2b4   : > { %v1878_v37 = vpop.f32.mrb[130].mxu0  ;;  %v1902_v16 = vadd.f32 %v1875_v27, %v1780_v43  ;;  %v1781_v49 = vadd.f32 %v1756_v45, %v1645_v54  ;;  %v3157_v35 = vpop.f32.mrb[111].mxu1 }
 0x2b5   : > { %v3179_v41 = vpop.f32.mrb[131].mxu0 }
 0x2b6   : > { %v1903_v38 = vadd.f32 %v1878_v37, %v1781_v49 }
 0x2b9   : > { %v1761_v55 = vpop.f32.mrb[112].mxu1 }
 0x2ba   : > { %v1883_v39 = vpop.f32.mrb[132].mxu0  ;;  %v1782_v46 = vadd.f32 %v1761_v55, %v1650_v58  ;;  %v3160_v57 = vpop.f32.mrb[113].mxu1 }
 0x2bb   : > { %v3182_v26 = vpop.f32.mrb[133].mxu0  ;;  %v1764_v47 = vpop.f32.mrb[114].mxu1 }
 0x2bc   : > { %v1886_v59 = vpop.f32.mrb[134].mxu0  ;;  %v1904_v63 = vadd.f32 %v1883_v39, %v1782_v46  ;;  %v1783_v50 = vadd.f32 %v1764_v47, %v1653_v48  ;;  %v3161_v51 = vpop.f32.mrb[115].mxu1 }
 0x2bd   : > { %v3183_v34 = vpop.f32.mrb[135].mxu0 }
 0x2be   : > { %v1905_v4 = vadd.f32 %v1886_v59, %v1783_v50 }
 0x2c1   : > { %v1769_v5 = vpop.f32.mrb[116].mxu1 }
 0x2c2   : > { %v1891_v53 = vpop.f32.mrb[136].mxu0  ;;  %v1784_v6 = vadd.f32 %v1769_v5, %v1658_v56  ;;  %v3164_v7 = vpop.f32.mrb[117].mxu1 }
 0x2c3   : > { %v3186_v54 = vpop.f32.mrb[137].mxu0  ;;  %v1772_v9 = vpop.f32.mrb[118].mxu1 }
 0x2c4   : > { %v1894_v12 = vpop.f32.mrb[138].mxu0  ;;  %v1906_v61 = vadd.f32 %v1891_v53, %v1784_v6  ;;  %v1785_v17 = vadd.f32 %v1772_v9, %v1661_v62  ;;  %v3165_v10 = vpop.f32.mrb[119].mxu1 }
 0x2c5   : > { %v3187_v58 = vpop.f32.mrb[139].mxu0 }
 0x2c6   : > { %v1907_v2 = vadd.f32 %v1894_v12, %v1785_v17 }
 0x2c9   : > { %v1981_v3 = vpop.f32.mrb[120].mxu1 }
 0x2ca   : > { %v2103_v18 = vpop.f32.mrb[140].mxu0  ;;  %v2020_v40 = vadd.f32 %v1981_v3, %v1898_v20  ;;  %v3192_v14 = vpop.f32.mrb[121].mxu1 }
 0x2cb   : > { %v3214_v48 = vpop.f32.mrb[141].mxu0  ;;  %v1984_v19 = vpop.f32.mrb[122].mxu1 }
 0x2cc   : > { %v2106_v24 = vpop.f32.mrb[142].mxu0  ;;  %v2142_v11 = vadd.f32 %v2103_v18, %v2020_v40  ;;  %v2021_v8 = vadd.f32 %v1984_v19, %v1899_v28  ;;  %v3193_v21 = vpop.f32.mrb[123].mxu1 }
 0x2cd   : > { %v3215_v56 = vpop.f32.mrb[143].mxu0 }
 0x2ce   : > { %v2143_v15 = vadd.f32 %v2106_v24, %v2021_v8 }
 0x2d1   : > { %v1989_v25 = vpop.f32.mrb[124].mxu1 }
 0x2d2   : > { %v2111_v13 = vpop.f32.mrb[144].mxu0  ;;  %v2022_v31 = vadd.f32 %v1989_v25, %v1900_v23  ;;  %v3196_v30 = vpop.f32.mrb[125].mxu1 }
 0x2d3   : > { %v3218_v62 = vpop.f32.mrb[145].mxu0  ;;  %v1992_v36 = vpop.f32.mrb[126].mxu1 }
 0x2d4   : > { %v2114_v60 = vpop.f32.mrb[146].mxu0  ;;  %v2144_v33 = vadd.f32 %v2111_v13, %v2022_v31  ;;  %v2023_v29 = vadd.f32 %v1992_v36, %v1901_v1  ;;  %v3197_v42 = vpop.f32.mrb[127].mxu1 }
 0x2d5   : > { %v3219_v20 = vpop.f32.mrb[147].mxu0 }
 0x2d6   : > { %v2145_v27 = vadd.f32 %v2114_v60, %v2023_v29 }
 0x2d9   : > { %v1997_v43 = vpop.f32.mrb[128].mxu1 }
 0x2da   : > { %v2119_v44 = vpop.f32.mrb[148].mxu0  ;;  %v2024_v32 = vadd.f32 %v1997_v43, %v1902_v16  ;;  %v3200_v45 = vpop.f32.mrb[129].mxu1 }
 0x2db   : > { %v3222_v28 = vpop.f32.mrb[149].mxu0  ;;  %v2000_v37 = vpop.f32.mrb[130].mxu1 }
 0x2dc   : > { %v2122_v49 = vpop.f32.mrb[150].mxu0  ;;  %v2146_v35 = vadd.f32 %v2119_v44, %v2024_v32  ;;  %v2025_v41 = vadd.f32 %v2000_v37, %v1903_v38  ;;  %v3201_v55 = vpop.f32.mrb[131].mxu1 }
 0x2dd   : > { %v3223_v23 = vpop.f32.mrb[151].mxu0 }
 0x2de   : > { %v2147_v39 = vadd.f32 %v2122_v49, %v2025_v41 }
 0x2e1   : > { %v2005_v46 = vpop.f32.mrb[132].mxu1 }
 0x2e2   : > { %v2127_v57 = vpop.f32.mrb[152].mxu0  ;;  %v2026_v26 = vadd.f32 %v2005_v46, %v1904_v63  ;;  %v3204_v47 = vpop.f32.mrb[133].mxu1 }
 0x2e3   : > { %v3226_v1 = vpop.f32.mrb[153].mxu0  ;;  %v2008_v59 = vpop.f32.mrb[134].mxu1 }
 0x2e4   : > { %v2130_v50 = vpop.f32.mrb[154].mxu0  ;;  %v2148_v51 = vadd.f32 %v2127_v57, %v2026_v26  ;;  %v2027_v34 = vadd.f32 %v2008_v59, %v1905_v4  ;;  %v3205_v5 = vpop.f32.mrb[135].mxu1 }
 0x2e5   : > { %v3227_v16 = vpop.f32.mrb[155].mxu0 }
 0x2e6   : > { %v2149_v53 = vadd.f32 %v2130_v50, %v2027_v34 }
 0x2e9   : > { %v2013_v6 = vpop.f32.mrb[136].mxu1 }
 0x2ea   : > { %v2135_v7 = vpop.f32.mrb[156].mxu0  ;;  %v2028_v54 = vadd.f32 %v2013_v6, %v1906_v61  ;;  %v3208_v9 = vpop.f32.mrb[137].mxu1 }
 0x2eb   : > { %v3230_v38 = vpop.f32.mrb[157].mxu0  ;;  %v2016_v12 = vpop.f32.mrb[138].mxu1 }
 0x2ec   : > { %v2138_v17 = vpop.f32.mrb[158].mxu0  ;;  %v2150_v10 = vadd.f32 %v2135_v7, %v2028_v54  ;;  %v2029_v58 = vadd.f32 %v2016_v12, %v1907_v2  ;;  %v3209_v3 = vpop.f32.mrb[139].mxu1 }
 0x2ed   : > { %v3231_v63 = vpop.f32.mrb[159].mxu0 }
 0x2ee   : > { %v2151_v18 = vadd.f32 %v2138_v17, %v2029_v58 }
 0x2f1   : > { %v2225_v40 = vpop.f32.mrb[140].mxu1 }
 0x2f2   : > { %v2347_v14 = vpop.f32.mrb[160].mxu0  ;;  %v2264_v48 = vadd.f32 %v2225_v40, %v2142_v11  ;;  %v3236_v19 = vpop.f32.mrb[141].mxu1 }
 0x2f3   : > { %v3258_v4 = vpop.f32.mrb[161].mxu0  ;;  %v2228_v24 = vpop.f32.mrb[142].mxu1 }
 0x2f4   : > { %v2350_v8 = vpop.f32.mrb[162].mxu0  ;;  %v2386_v21 = vadd.f32 %v2347_v14, %v2264_v48  ;;  %v2265_v56 = vadd.f32 %v2228_v24, %v2143_v15  ;;  %v3237_v25 = vpop.f32.mrb[143].mxu1  ;;  %v3921_v48 = vld [vmem:[%s4000_s4] ss:$0 sm:$0xff] }
 0x2f5   : > { %v3259_v61 = vpop.f32.mrb[163].mxu0  ;;  %v3327_v25 = vld [vmem:[%s4001_s5] sm:$0xff] }
 0x2f6   : > { %v2387_v13 = vadd.f32 %v2350_v8, %v2265_v56  ;;  %v2548_v56 = vld [vmem:[%s3438_s7 + $0xb] sm:$0xff] }
 0x2f9   : > { %v2233_v31 = vpop.f32.mrb[144].mxu1 }
 0x2fa   : > { %v2355_v30 = vpop.f32.mrb[164].mxu0  ;;  %v2266_v62 = vadd.f32 %v2233_v31, %v2144_v33  ;;  %v3240_v36 = vpop.f32.mrb[145].mxu1 }
 0x2fb   : > { %v3262_v2 = vpop.f32.mrb[165].mxu0  ;;  %v2236_v60 = vpop.f32.mrb[146].mxu1 }
 0x2fc   : > { %v2358_v29 = vpop.f32.mrb[166].mxu0  ;;  %v2388_v42 = vadd.f32 %v2355_v30, %v2266_v62  ;;  %v2267_v20 = vadd.f32 %v2236_v60, %v2145_v27  ;;  %v3241_v43 = vpop.f32.mrb[147].mxu1  ;;  %v2549_v30 = vld [vmem:[%s3438_s7 + $0x13] sm:$0xff] }
 0x2fd   : > { %v3263_v11 = vpop.f32.mrb[167].mxu0 }
 0x2fe   : > { %v2389_v44 = vadd.f32 %v2358_v29, %v2267_v20 }
 0x301   : > { %v2241_v32 = vpop.f32.mrb[148].mxu1 }
 0x302   : > { %v2363_v45 = vpop.f32.mrb[168].mxu0  ;;  %v2268_v28 = vadd.f32 %v2241_v32, %v2146_v35  ;;  %v3244_v37 = vpop.f32.mrb[149].mxu1 }
 0x303   : > { %v3266_v15 = vpop.f32.mrb[169].mxu0  ;;  %v2244_v49 = vpop.f32.mrb[150].mxu1 }
 0x304   : > { %v2366_v41 = vpop.f32.mrb[170].mxu0  ;;  %v3906_v55 = vadd.f32 %v2363_v45, %v2268_v28  ;;  %v2269_v23 = vadd.f32 %v2244_v49, %v2147_v39  ;;  %v3245_v33 = vpop.f32.mrb[151].mxu1  ;;  %v2550_v45 = vld [vmem:[%s3438_s7 + $0x1b] sm:$0xff]  ;;  %v3329_v28 = vld [vmem:[%s4001_s5 + $0x10] sm:$0xff] }
 0x305   : > { %v3267_v46 = vpop.f32.mrb[171].mxu0 }
 0x306   : > { %v3908_v57 = vadd.f32 %v2366_v41, %v2269_v23  ;;  %v3330_v41 = vld [vmem:[%s4001_s5 + $0x18] sm:$0xff] }
 0x309   : > { %v2249_v26 = vpop.f32.mrb[152].mxu1 }
 0x30a   : > { %v2371_v47 = vpop.f32.mrb[172].mxu0  ;;  %v2270_v27 = vadd.f32 %v2249_v26, %v2148_v51  ;;  %v3248_v1 = vpop.f32.mrb[153].mxu1 }
 0x30b   : > { %v3270_v59 = vpop.f32.mrb[173].mxu0  ;;  %v2252_v50 = vpop.f32.mrb[154].mxu1 }
 0x30c   : > { %v2374_v34 = vpop.f32.mrb[174].mxu0  ;;  %v3910_v5 = vadd.f32 %v2371_v47, %v2270_v27  ;;  %v2271_v35 = vadd.f32 %v2252_v50, %v2149_v53  ;;  %v3249_v16 = vpop.f32.mrb[155].mxu1  ;;  %v2552_v50 = vld [vmem:[%s3438_s7 + $0x2b] sm:$0xff] }
 0x30d   : > { %v3271_v6 = vpop.f32.mrb[175].mxu0  ;;  %v2553_v16 = vld [vmem:[%s3438_s7 + $0x33] sm:$0xff] }
 0x30e   : > { %v3912_v7 = vadd.f32 %v2374_v34, %v2271_v35  ;;  %v3331_v34 = vld [vmem:[%s4001_s5 + $0x20] sm:$0xff] }
 0x311   : > { %v2257_v54 = vpop.f32.mrb[156].mxu1 }
 0x312   : > { %v2379_v39 = vpop.f32.mrb[176].mxu0  ;;  %v2272_v9 = vadd.f32 %v2257_v54, %v2150_v10  ;;  %v3252_v38 = vpop.f32.mrb[157].mxu1  ;;  %v3332_v54 = vld [vmem:[%s4001_s5 + $0x28] sm:$0xff] }
 0x313   : > { %v3274_v12 = vpop.f32.mrb[177].mxu0  ;;  %v2260_v17 = vpop.f32.mrb[158].mxu1 }
 0x314   : > { %v2382_v58 = vpop.f32.mrb[178].mxu0  ;;  %v3914_v51 = vadd.f32 %v2379_v39, %v2272_v9  ;;  %v2273_v3 = vadd.f32 %v2260_v17, %v2151_v18  ;;  %v3253_v63 = vpop.f32.mrb[159].mxu1 }
 0x315   : > { %v3275_v40 = vpop.f32.mrb[179].mxu0 }
 0x316   : > { %v3916_v14 = vadd.f32 %v2382_v58, %v2273_v3  ;;  %v2554_v40 = vld [vmem:[%s3438_s7 + $0x3b] sm:$0xff] }
 0x319   : > { %v2469_v53 = vpop.f32.mrb[160].mxu1 }
 0x31a   : > { %v2508_v10 = vadd.f32 %v2469_v53, %v2386_v21  ;;  %v3280_v19 = vpop.f32.mrb[161].mxu1  ;;  %v3328_v21 = vld [vmem:[%s4001_s5 + $0x8] sm:$0xff]  ;;  %v3333_v53 = vld [vmem:[%s4001_s5 + $0x30] sm:$0xff] }
 0x31b   : > { %v2472_v4 = vpop.f32.mrb[162].mxu1 }
 0x31c   : > { %v2525_v24 = vadd.f32 %v3921_v48, %v2508_v10  ;;  %v2509_v8 = vadd.f32 %v2472_v4, %v2387_v13  ;;  %v3281_v18 = vpop.f32.mrb[163].mxu1 }
 0x31e   : > { %v2558_v61 = vmul.f32 %v3327_v25, %v2525_v24  ;;  %v2526_v31 = vadd.f32 %v3921_v48, %v2509_v8 }
 0x320   : > { %v2568_v62 = vadd.f32 %v2558_v61, %v2548_v56  ;;  %v2559_v36 = vmul.f32 %v3328_v21, %v2526_v31 }
 0x321   : > { %v2477_v13 = vpop.f32.mrb[164].mxu1 }
 0x322   : > { %2578 = vst.msk [vmem:[%s3443_s10 + $0xb] sm:$0xff] %vm279_vm1, %v2568_v62  ;;  %v2569_v2 = vadd.f32 %v2559_v36, %v2549_v30  ;;  %v2510_v60 = vadd.f32 %v2477_v13, %v2388_v42  ;;  %v3284_v29 = vpop.f32.mrb[165].mxu1  ;;  %v2551_v42 = vld [vmem:[%s3438_s7 + $0x23] sm:$0xff]  ;;  %v2556_v62 = vld [vmem:[%s3438_s7 + $0x4b] sm:$0xff]  ;;  %v2557_v36 = vld [vmem:[%s3438_s7 + $0x53] sm:$0xff] }
 0x323   : > { %v2480_v20 = vpop.f32.mrb[166].mxu1 }
 0x324   : > { %2579 = vst.msk [vmem:[%s3443_s10 + $0x13] sm:$0xff] %vm279_vm1, %v2569_v2  ;;  %v2527_v43 = vadd.f32 %v3921_v48, %v2510_v60  ;;  %v2511_v11 = vadd.f32 %v2480_v20, %v2389_v44  ;;  %v3285_v32 = vpop.f32.mrb[167].mxu1 }
 0x326   : > { %v2560_v37 = vmul.f32 %v3329_v28, %v2527_v43  ;;  %v2528_v15 = vadd.f32 %v3921_v48, %v2511_v11 }
 0x328   : > { %v2570_v49 = vadd.f32 %v2560_v37, %v2550_v45  ;;  %v2561_v23 = vmul.f32 %v3330_v41, %v2528_v15 }
 0x329   : > { %v2485_v44 = vpop.f32.mrb[168].mxu1 }
 0x32a   : > { %2580 = vst.msk [vmem:[%s3443_s10 + $0x1b] sm:$0xff] %vm279_vm1, %v2570_v49  ;;  %v2571_v33 = vadd.f32 %v2561_v23, %v2551_v42  ;;  %v2512_v46 = vadd.f32 %v2485_v44, %v3906_v55  ;;  %v3288_v26 = vpop.f32.mrb[169].mxu1 }
 0x32b   : > { %v2488_v47 = vpop.f32.mrb[170].mxu1 }
 0x32c   : > { %2581 = vst.msk [vmem:[%s3443_s10 + $0x23] sm:$0xff] %vm279_vm1, %v2571_v33  ;;  %v2529_v27 = vadd.f32 %v3921_v48, %v2512_v46  ;;  %v2513_v1 = vadd.f32 %v2488_v47, %v3908_v57  ;;  %v3289_v59 = vpop.f32.mrb[171].mxu1 }
 0x32e   : > { %v2562_v35 = vmul.f32 %v3331_v34, %v2529_v27  ;;  %v2530_v55 = vadd.f32 %v3921_v48, %v2513_v1 }
 0x330   : > { %v2572_v6 = vadd.f32 %v2562_v35, %v2552_v50  ;;  %v2563_v39 = vmul.f32 %v3332_v54, %v2530_v55 }
 0x331   : > { %v2493_v57 = vpop.f32.mrb[172].mxu1 }
 0x332   : > { %2582 = vst.msk [vmem:[%s3443_s10 + $0x2b] sm:$0xff] %vm279_vm1, %v2572_v6  ;;  %v2573_v9 = vadd.f32 %v2563_v39, %v2553_v16  ;;  %v2514_v38 = vadd.f32 %v2493_v57, %v3910_v5  ;;  %v3292_v12 = vpop.f32.mrb[173].mxu1  ;;  %v2555_v5 = vld [vmem:[%s3438_s7 + $0x43] sm:$0xff] }
 0x333   : > { %v2496_v17 = vpop.f32.mrb[174].mxu1 }
 0x334   : > { %2583 = vst.msk [vmem:[%s3443_s10 + $0x33] sm:$0xff] %vm279_vm1, %v2573_v9  ;;  %v2531_v58 = vadd.f32 %v3921_v48, %v2514_v38  ;;  %v2515_v3 = vadd.f32 %v2496_v17, %v3912_v7  ;;  %v3293_v63 = vpop.f32.mrb[175].mxu1 }
 0x336   : > { %v2564_v10 = vmul.f32 %v3333_v53, %v2531_v58  ;;  %v2532_v19 = vadd.f32 %v3921_v48, %v2515_v3 }
 0x338   : > { %v2574_v4 = vadd.f32 %v2564_v10, %v2554_v40  ;;  %v2565_v24 = vmul.f32 %v2532_v19, %v3746_v52 }
 0x339   : > { %v2501_v8 = vpop.f32.mrb[176].mxu1 }
 0x33a   : > { %2584 = vst.msk [vmem:[%s3443_s10 + $0x3b] sm:$0xff] %vm279_vm1, %v2574_v4  ;;  %v2575_v7 = vadd.f32 %v2565_v24, %v2555_v5  ;;  %v2516_v18 = vadd.f32 %v2501_v8, %v3914_v51  ;;  %v3296_v56 = vpop.f32.mrb[177].mxu1 }
 0x33b   : > { %v2504_v25 = vpop.f32.mrb[178].mxu1 }
 0x33c   : > { %2585 = vst.msk [vmem:[%s3443_s10 + $0x43] sm:$0xff] %vm279_vm1, %v2575_v7  ;;  %v2533_v61 = vadd.f32 %v3921_v48, %v2516_v18  ;;  %v2517_v31 = vadd.f32 %v2504_v25, %v3916_v14  ;;  %v3297_v30 = vpop.f32.mrb[179].mxu1 }
 0x33e   : > { %v2566_v52 = vmul.f32 %v2533_v61, %v3759_v22  ;;  %v2534_v21 = vadd.f32 %v3921_v48, %v2517_v31 }
 0x340   : > { %v2576_v13 = vadd.f32 %v2566_v52, %v2556_v62  ;;  %v2567_v2 = vmul.f32 %v2534_v21, %v3769_v0 }
 0x342   : > { %2586 = vst.msk [vmem:[%s3443_s10 + $0x4b] sm:$0xff] %vm279_vm1, %v2576_v13  ;;  %v2577_v51 = vadd.f32 %v2567_v2, %v2557_v36 }
 0x344   : > { %2587 = vst.msk [vmem:[%s3443_s10 + $0x53] sm:$0xff] %vm279_vm1, %v2577_v51 }
 0x345 PF: > { %s16_s21 = sadd.s32 1, %s3340_s21  }
 0x346   : > { %p13_p4 = scmp.ge.s32.totalorder %s16_s21, 4  }
 0x348   :  { %15 = sbr.rel (!%p13_p4) target bundleno = 1 (0x1), region = 90 }

// kernel: impala_block_forward.3
= control target key start
LH: loop header
LB: loop body
LE: loop exit
PB: predicated region body
PF: predicated region fallthrough
CT: control target
= control target key end

     0   :  { %s4614_s15 = smov 0   ;;  %s5736_s0 = inlined_call_operand.vmem [shape: f32[2,326,4], index: 0, kind: input, shape index: {}]   ;;  %s5737_s1 = inlined_call_operand.vmem [shape: bf16[9,4,16], index: 1, kind: input, shape index: {}]   ;;  %s5738_s2 = inlined_call_operand.vmem [shape: f32[1,16], index: 2, kind: input, shape index: {}]   ;;  %s5739_s3 = inlined_call_operand.vmem [shape: f32[288,16], index: 3, kind: input, shape index: {}]   ;;  %s5740_s4 = inlined_call_operand.vmem [shape: f32[2,102,16], index: 4, kind: output, shape index: {}]  }
   0x1 LB: > { %s3576_s16 = sadd.s32 4294967295, %s4586_s15   ;;  %p3580_p0 = scmp.ge.s32.totalorder %s4586_s15, 1  ;;  %s4586_s15 = sphi %s4614_s15, %s14_s15  }
   0x2   : > { %p162_p1 = scmp.lt.s32.totalorder %s4586_s15, 3 }
   0x4   : > { %p163_p2 = pnand %p3580_p0, %p162_p1 }
   0x5   : > { %vm365_vm0 = vcmask (!%p163_p2), 1041408   ;;  %v4625_v0 = vld [vmem:[%s5737_s1 + $0x8] sm:$0x3] (!%p163_p2)  ;;  %v3583_v1 = vld [vmem:[%s5737_s1 + $0x2] sm:$0x3] (!%p163_p2)  ;;  %p188_p3 = scmp.lt.s32.totalorder (!%p163_p2), %s3576_s16, 1 }
   0x6   : > { %166 = sbr.rel (%p163_p2) target bundleno = 587 (0x24b), region = 36  ;;  %4563 = vmatprep.subr.msk.bf16.mxu0 (!%p163_p2), %vm365_vm0, %v4625_v0  ;;  %4559 = vmatprep.subr.msk.bf16.mxu1 (!%p163_p2), %vm365_vm0, %v3583_v1  ;;  %v4635_v2 = vsel (!%p163_p2), %vm365_vm0, %v4625_v0, 0  ;;  %v367_v3 = vsel (!%p163_p2), %vm365_vm0, %v3583_v1, 0  ;;  %v3677_v4 = vld [vmem:[%s5737_s1 + $0xa] sm:$0x3] (!%p163_p2)  ;;  %vm310_vm1 = vcmask (!%p163_p2), 31744  }
   0x7   : > { %4080 = vmatpush3.bf16.msra.mxu0 (!%p163_p2), %v4635_v2  ;;  %3928 = vmatpush3.bf16.msra.mxu1 (!%p163_p2), %v367_v3  ;;  %v253_v5 = vld [vmem:[%s5737_s1] sm:$0x3] (!%p163_p2)  ;;  %v1869_v20 = vsel (!%p163_p2), %vm365_vm0, %v3677_v4, 0  ;;  %v4675_v26 = vld [vmem:[%s5737_s1 + $0xc] sm:$0x3] (!%p163_p2)  ;;  %vm3334_vm2 = vcmask (!%p163_p2), 128000  }
   0x8   : > { %4565 = vmatprep.subr.msk.bf16.mxu0 (!%p163_p2), %vm365_vm0, %v3677_v4  ;;  %4560 = vmatprep.subr.msk.bf16.mxu1 (!%p163_p2), %vm365_vm0, %v253_v5  ;;  %v601_v18 = vsel (!%p163_p2), %vm365_vm0, %v253_v5, 0  ;;  %v4680_v27 = vld [vmem:[%s5737_s1 + $0x4] sm:$0x3] (!%p163_p2)  ;;  %vm3285_vm3 = vcmask (!%p163_p2), 130048  }
   0xd   : > { %s5742_s16 = smov (!%p188_p3, %s3576_s16), 1 }
   0xe   : > { %s4569_s25 = smul.u32 328, %s5742_s16 }
   0xf   : > { %s4570_s13 = smul.u32 104, %s5742_s16 }
  0x10   : > { %s4653_s28 = scalar_lea.vmem %s5736_s0, %s4569_s25 }
  0x11   : > { %v254_v6 = vld [vmem:[%s4653_s28 + $0x1] sm:$0xff]  ;;  %v255_v7 = vld [vmem:[%s4653_s28 + $0x9] sm:$0xff]  ;;  %v1432_v8 = vld [vmem:[%s4653_s28 + $0x13] sm:$0xff]  ;;  %s5263_s18 = scalar_lea.vmem %s5740_s4, %s4570_s13 }
  0x12   : > { %v290_v9 = vpack.c.bf16 %v255_v7, %v254_v6  ;;  %v1433_v10 = vld [vmem:[%s4653_s28 + $0x1b] sm:$0xff]  ;;  %v256_v11 = vld [vmem:[%s4653_s28 + $0x11] sm:$0xff]  ;;  %v1434_v15 = vld [vmem:[%s4653_s28 + $0x23] sm:$0xff] }
  0x13   : > { %v257_v12 = vld [vmem:[%s4653_s28 + $0x19] sm:$0xff]  ;;  %v1468_v13 = vpack.c.bf16 %v1433_v10, %v1432_v8  ;;  %v1435_v16 = vld [vmem:[%s4653_s28 + $0x2b] sm:$0xff]  ;;  %v258_v17 = vld [vmem:[%s4653_s28 + $0x21] sm:$0xff] }
  0x14   : > { %v291_v14 = vpack.c.bf16 %v257_v12, %v256_v11  ;;  %3929 = vmatprep.mubr.msk.bf16.mxu1 %vm310_vm1, %v290_v9  ;;  %v1469_v19 = vpack.c.bf16 %v1435_v16, %v1434_v15  ;;  %v259_v21 = vld [vmem:[%s4653_s28 + $0x29] sm:$0xff]  ;;  %v1436_v22 = vld [vmem:[%s4653_s28 + $0x33] sm:$0xff]  ;;  %v1437_v23 = vld [vmem:[%s4653_s28 + $0x3b] sm:$0xff] }
  0x15   : > { %4081 = vmatprep.mubr.msk.bf16.mxu0 %vm310_vm1, %v1468_v13  ;;  %v292_v24 = vpack.c.bf16 %v259_v21, %v258_v17  ;;  %v1470_v25 = vpack.c.bf16 %v1437_v23, %v1436_v22  ;;  %v260_v28 = vld [vmem:[%s4653_s28 + $0x31] sm:$0xff]  ;;  %v261_v29 = vld [vmem:[%s4653_s28 + $0x39] sm:$0xff]  ;;  %v1438_v30 = vld [vmem:[%s4653_s28 + $0x43] sm:$0xff] }
  0x16   : > { %3930 = vmatmul.mubr.msk.bf16.vlgmr.msra.gmra.mrb[0].mxu1 %vm310_vm1, %v291_v14  ;;  %4082 = vmatmul.mubr.msk.bf16.vlgmr.msra.gmra.mrb[0].mxu0 %vm310_vm1, %v1469_v19  ;;  %v1439_v31 = vld [vmem:[%s4653_s28 + $0x4b] sm:$0xff]  ;;  %v262_v32 = vld [vmem:[%s4653_s28 + $0x41] sm:$0xff]  ;;  %v1440_v34 = vld [vmem:[%s4653_s28 + $0x53] sm:$0xff]  ;;  %v293_v36 = vpack.c.bf16 %v261_v29, %v260_v28  ;;  %v2195_v28 = vsel %vm365_vm0, %v4675_v26, 0 }
  0x17   : > { %3966 = vmatpush3.bf16.msra.mxu1 %v601_v18  ;;  %4118 = vmatpush3.bf16.msra.mxu0 %v1869_v20  ;;  %v263_v33 = vld [vmem:[%s4653_s28 + $0x49] sm:$0xff]  ;;  %v1441_v35 = vld [vmem:[%s4653_s28 + $0x5b] sm:$0xff]  ;;  %v1471_v37 = vpack.c.bf16 %v1439_v31, %v1438_v30  ;;  %v264_v40 = vld [vmem:[%s4653_s28 + $0x51] sm:$0xff] }
  0x18   : > { %3933 = vmatprep.mubr.msk.bf16.mxu1 %vm310_vm1, %v292_v24  ;;  %4085 = vmatprep.mubr.msk.bf16.mxu0 %vm310_vm1, %v1470_v25  ;;  %v294_v38 = vpack.c.bf16 %v263_v33, %v262_v32  ;;  %v1472_v39 = vpack.c.bf16 %v1441_v35, %v1440_v34  ;;  %v265_v41 = vld [vmem:[%s4653_s28 + $0x59] sm:$0xff]  ;;  %v1442_v42 = vld [vmem:[%s4653_s28 + $0x63] sm:$0xff]  ;;  %v1443_v43 = vld [vmem:[%s4653_s28 + $0x6b] sm:$0xff] }
  0x19   : > { %4566 = vmatprep.subr.msk.bf16.mxu0 %vm365_vm0, %v4675_v26  ;;  %4561 = vmatprep.subr.msk.bf16.mxu1 %vm365_vm0, %v4680_v27  ;;  %v266_v44 = vld [vmem:[%s4653_s28 + $0x61] sm:$0xff]  ;;  %v267_v45 = vld [vmem:[%s4653_s28 + $0x69] sm:$0xff]  ;;  %v1444_v46 = vld [vmem:[%s4653_s28 + $0x73] sm:$0xff]  ;;  %v295_v48 = vpack.c.bf16 %v265_v41, %v264_v40  ;;  %v1473_v49 = vpack.c.bf16 %v1443_v43, %v1442_v42 }
  0x1a   : > { %v1445_v47 = vld [vmem:[%s4653_s28 + $0x7b] sm:$0xff]  ;;  %v296_v50 = vpack.c.bf16 %v267_v45, %v266_v44  ;;  %v268_v52 = vld [vmem:[%s4653_s28 + $0x71] sm:$0xff]  ;;  %v1446_v54 = vld [vmem:[%s4653_s28 + $0x83] sm:$0xff] }
  0x1b   : > { %v1474_v51 = vpack.c.bf16 %v1445_v47, %v1444_v46  ;;  %v269_v53 = vld [vmem:[%s4653_s28 + $0x79] sm:$0xff]  ;;  %v1447_v55 = vld [vmem:[%s4653_s28 + $0x8b] sm:$0xff]  ;;  %v270_v56 = vld [vmem:[%s4653_s28 + $0x81] sm:$0xff] }
  0x1c   : > { %v271_v57 = vld [vmem:[%s4653_s28 + $0x89] sm:$0xff]  ;;  %v1448_v58 = vld [vmem:[%s4653_s28 + $0x93] sm:$0xff]  ;;  %v1449_v59 = vld [vmem:[%s4653_s28 + $0x9b] sm:$0xff]  ;;  %v297_v60 = vpack.c.bf16 %v269_v53, %v268_v52  ;;  %v1475_v61 = vpack.c.bf16 %v1447_v55, %v1446_v54 }
  0x1d   : > { %v298_v62 = vpack.c.bf16 %v271_v57, %v270_v56  ;;  %v1476_v63 = vpack.c.bf16 %v1449_v59, %v1448_v58  ;;  %v272_v1 = vld [vmem:[%s4653_s28 + $0x91] sm:$0xff]  ;;  %v273_v3 = vld [vmem:[%s4653_s28 + $0x99] sm:$0xff]  ;;  %v1450_v4 = vld [vmem:[%s4653_s28 + $0xa3] sm:$0xff] }
  0x1e   : > { %3934 = vmatmul.mubr.msk.bf16.gmra.mrb[4].mxu1 %vm310_vm1, %v293_v36  ;;  %4086 = vmatmul.mubr.msk.bf16.gmra.mrb[4].mxu0 %vm310_vm1, %v1471_v37  ;;  %v1451_v5 = vld [vmem:[%s4653_s28 + $0xab] sm:$0xff]  ;;  %v274_v6 = vld [vmem:[%s4653_s28 + $0xa1] sm:$0xff]  ;;  %v1758_v8 = vld [vmem:[%s4653_s28 + $0x14] sm:$0xff]  ;;  %v299_v10 = vpack.c.bf16 %v273_v3, %v272_v1 }
  0x1f   : > { %3937 = vmatprep.mubr.msk.bf16.mxu1 %vm310_vm1, %v294_v38  ;;  %4089 = vmatprep.mubr.msk.bf16.mxu0 %vm310_vm1, %v1472_v39  ;;  %v275_v7 = vld [vmem:[%s4653_s28 + $0xa9] sm:$0xff]  ;;  %v1759_v9 = vld [vmem:[%s4653_s28 + $0x1c] sm:$0xff]  ;;  %v1477_v11 = vpack.c.bf16 %v1451_v5, %v1450_v4  ;;  %v276_v14 = vld [vmem:[%s4653_s28 + $0xb1] sm:$0xff] }
  0x20   : > { %v300_v12 = vpack.c.bf16 %v275_v7, %v274_v6  ;;  %v1794_v13 = vpack.c.bf16 %v1759_v9, %v1758_v8  ;;  %v277_v15 = vld [vmem:[%s4653_s28 + $0xb9] sm:$0xff]  ;;  %v1760_v16 = vld [vmem:[%s4653_s28 + $0x24] sm:$0xff]  ;;  %v1761_v17 = vld [vmem:[%s4653_s28 + $0x2c] sm:$0xff] }
  0x21   : > { %v278_v18 = vld [vmem:[%s4653_s28 + $0xc1] sm:$0xff]  ;;  %v279_v19 = vld [vmem:[%s4653_s28 + $0xc9] sm:$0xff]  ;;  %v1762_v20 = vld [vmem:[%s4653_s28 + $0x34] sm:$0xff]  ;;  %v301_v22 = vpack.c.bf16 %v277_v15, %v276_v14  ;;  %v4745_v23 = vpack.c.bf16 %v1761_v17, %v1760_v16  ;;  %v891_v15 = vsel %vm365_vm0, %v4680_v27, 0 }
  0x22   : > { %v1763_v21 = vld [vmem:[%s4653_s28 + $0x3c] sm:$0xff]  ;;  %v302_v24 = vpack.c.bf16 %v279_v19, %v278_v18  ;;  %v4755_v29 = vld [vmem:[%s5737_s1 + $0xe] sm:$0x3]  ;;  %v280_v30 = vld [vmem:[%s4653_s28 + $0xd1] sm:$0xff] }
  0x23   : > { %v4747_v25 = vpack.c.bf16 %v1763_v21, %v1762_v20  ;;  %v281_v31 = vld [vmem:[%s4653_s28 + $0xd9] sm:$0xff]  ;;  %v1764_v32 = vld [vmem:[%s4653_s28 + $0x44] sm:$0xff]  ;;  %v1765_v26 = vld [vmem:[%s4653_s28 + $0x4c] sm:$0xff] }
  0x24   : > { %v282_v33 = vld [vmem:[%s4653_s28 + $0xe1] sm:$0xff]  ;;  %v283_v34 = vld [vmem:[%s4653_s28 + $0xe9] sm:$0xff]  ;;  %v1766_v35 = vld [vmem:[%s4653_s28 + $0x54] sm:$0xff]  ;;  %v303_v37 = vpack.c.bf16 %v281_v31, %v280_v30  ;;  %v4772_v38 = vpack.c.bf16 %v1765_v26, %v1764_v32 }
  0x25   : > { %v1767_v36 = vld [vmem:[%s4653_s28 + $0x5c] sm:$0xff]  ;;  %v304_v39 = vpack.c.bf16 %v283_v34, %v282_v33  ;;  %v284_v41 = vld [vmem:[%s4653_s28 + $0xf1] sm:$0xff]  ;;  %v1768_v43 = vld [vmem:[%s4653_s28 + $0x64] sm:$0xff] }
  0x26   : > { %3938 = vmatmul.mubr.msk.bf16.gmra.mrb[8].mxu1 %vm310_vm1, %v295_v48  ;;  %4090 = vmatmul.mubr.msk.bf16.gmra.mrb[8].mxu0 %vm310_vm1, %v1473_v49  ;;  %v4774_v40 = vpack.c.bf16 %v1767_v36, %v1766_v35  ;;  %v285_v42 = vld [vmem:[%s4653_s28 + $0xf9] sm:$0xff]  ;;  %v1769_v44 = vld [vmem:[%s4653_s28 + $0x6c] sm:$0xff]  ;;  %v286_v45 = vld [vmem:[%s4653_s28 + $0x101] sm:$0xff] }
  0x27   : > { %3941 = vmatprep.mubr.msk.bf16.mxu1 %vm310_vm1, %v296_v50  ;;  %4093 = vmatprep.mubr.msk.bf16.mxu0 %vm310_vm1, %v1474_v51  ;;  %v287_v46 = vld [vmem:[%s4653_s28 + $0x109] sm:$0xff]  ;;  %v1770_v47 = vld [vmem:[%s4653_s28 + $0x74] sm:$0xff]  ;;  %v1771_v48 = vld [vmem:[%s4653_s28 + $0x7c] sm:$0xff]  ;;  %v305_v49 = vpack.c.bf16 %v285_v42, %v284_v41  ;;  %v4790_v50 = vpack.c.bf16 %v1769_v44, %v1768_v43 }
  0x28   : > { %v306_v51 = vpack.c.bf16 %v287_v46, %v286_v45  ;;  %v4792_v52 = vpack.c.bf16 %v1771_v48, %v1770_v47  ;;  %v288_v53 = vld [vmem:[%s4653_s28 + $0x111] sm:$0xff]  ;;  %v289_v54 = vld [vmem:[%s4653_s28 + $0x119] sm:$0xff]  ;;  %v1772_v55 = vld [vmem:[%s4653_s28 + $0x84] sm:$0xff] }
  0x29   : > { %v1773_v56 = vld [vmem:[%s4653_s28 + $0x8c] sm:$0xff]  ;;  %v199_v57 = vld [vmem:[%s4653_s28] sm:$0xff]  ;;  %v1774_v59 = vld [vmem:[%s4653_s28 + $0x94] sm:$0xff] }
  0x2a   : > { %v200_v58 = vld [vmem:[%s4653_s28 + $0x8] sm:$0xff]  ;;  %v201_v3 = vld [vmem:[%s4653_s28 + $0x10] sm:$0xff]  ;;  %v202_v4 = vld [vmem:[%s4653_s28 + $0x18] sm:$0xff] }
  0x2b   : > { %v1776_v5 = vld [vmem:[%s4653_s28 + $0xa4] sm:$0xff]  ;;  %v1777_v6 = vld [vmem:[%s4653_s28 + $0xac] sm:$0xff]  ;;  %v1778_v9 = vld [vmem:[%s4653_s28 + $0xb4] sm:$0xff] }
  0x2c   : > { %v203_v7 = vld [vmem:[%s4653_s28 + $0x20] sm:$0xff]  ;;  %v204_v8 = vld [vmem:[%s4653_s28 + $0x28] sm:$0xff]  ;;  %v205_v17 = vld [vmem:[%s4653_s28 + $0x30] sm:$0xff] }
  0x2d   : > { %v4836_v16 = vld [vmem:[%s5737_s1 + $0x6] sm:$0x3]  ;;  %v206_v18 = vld [vmem:[%s4653_s28 + $0x38] sm:$0xff]  ;;  %v1781_v27 = vld [vmem:[%s4653_s28 + $0xcc] sm:$0xff] }
  0x2e   : > { %3942 = vmatmul.mubr.msk.bf16.gmra.mrb[12].mxu1 %vm310_vm1, %v297_v60  ;;  %4094 = vmatmul.mubr.msk.bf16.gmra.mrb[12].mxu0 %vm310_vm1, %v1475_v61  ;;  %v1775_v60 = vld [vmem:[%s4653_s28 + $0x9c] sm:$0xff]  ;;  %v307_v61 = vpack.c.bf16 %v289_v54, %v288_v53  ;;  %v1780_v19 = vld [vmem:[%s4653_s28 + $0xc4] sm:$0xff]  ;;  %v209_v26 = vld [vmem:[%s4653_s28 + $0x50] sm:$0xff] }
  0x2f   : > { %3945 = vmatprep.mubr.msk.bf16.mxu1 %vm310_vm1, %v298_v62  ;;  %4097 = vmatprep.mubr.msk.bf16.mxu0 %vm310_vm1, %v1476_v63  ;;  %v4808_v62 = vpack.c.bf16 %v1773_v56, %v1772_v55  ;;  %v235_v63 = vpack.c.bf16 %v200_v58, %v199_v57  ;;  %v4810_v1 = vpack.c.bf16 %v1775_v60, %v1774_v59  ;;  %v207_v20 = vld [vmem:[%s4653_s28 + $0x40] sm:$0xff]  ;;  %v208_v21 = vld [vmem:[%s4653_s28 + $0x48] sm:$0xff]  ;;  %v210_v33 = vld [vmem:[%s4653_s28 + $0x58] sm:$0xff] }
  0x30   : > { %v4853_v30 = vpack.c.bf16 %v1781_v27, %v1780_v19  ;;  %v239_v31 = vpack.c.bf16 %v208_v21, %v207_v20  ;;  %v1784_v34 = vld [vmem:[%s4653_s28 + $0xe4] sm:$0xff]  ;;  %v1785_v35 = vld [vmem:[%s4653_s28 + $0xec] sm:$0xff]  ;;  %v1787_v41 = vld [vmem:[%s4653_s28 + $0xfc] sm:$0xff]  ;;  %v240_v42 = vpack.c.bf16 %v210_v33, %v209_v26 }
  0x31   : > { %v211_v36 = vld [vmem:[%s4653_s28 + $0x60] sm:$0xff]  ;;  %v4871_v43 = vpack.c.bf16 %v1785_v35, %v1784_v34  ;;  %v213_v46 = vld [vmem:[%s4653_s28 + $0x70] sm:$0xff]  ;;  %v214_v47 = vld [vmem:[%s4653_s28 + $0x78] sm:$0xff] }
  0x32   : > { %v1788_v48 = vld [vmem:[%s4653_s28 + $0x104] sm:$0xff]  ;;  %v1790_v54 = vld [vmem:[%s4653_s28 + $0x114] sm:$0xff]  ;;  %v1791_v55 = vld [vmem:[%s4653_s28 + $0x11c] sm:$0xff]  ;;  %v242_v56 = vpack.c.bf16 %v214_v47, %v213_v46 }
  0x33   : > { %v216_v53 = vld [vmem:[%s4653_s28 + $0x88] sm:$0xff]  ;;  %v4891_v59 = vpack.c.bf16 %v1791_v55, %v1790_v54  ;;  %v217_v60 = vld [vmem:[%s4653_s28 + $0x90] sm:$0xff]  ;;  %v226_v27 = vld [vmem:[%s4653_s28 + $0xd8] sm:$0xff] }
  0x34   : > { %v4923_v19 = vld [vmem:[%s5737_s1 + $0x10] sm:$0x3]  ;;  %v228_v20 = vld [vmem:[%s4653_s28 + $0xe8] sm:$0xff]  ;;  %v234_v33 = vld [vmem:[%s4653_s28 + $0x118] sm:$0xff] }
  0x35   : > { %v781_v34 = vld [vmem:[%s4653_s28 + $0xa] sm:$0xff]  ;;  %v796_v54 = vld [vmem:[%s4653_s28 + $0x82] sm:$0xff] }
  0x36   : > { %3946 = vmatmul.mubr.msk.bf16.gmra.mrb[16].mxu1 %vm310_vm1, %v299_v10  ;;  %4098 = vmatmul.mubr.msk.bf16.gmra.mrb[16].mxu0 %vm310_vm1, %v1477_v11  ;;  %v1779_v10 = vld [vmem:[%s4653_s28 + $0xbc] sm:$0xff]  ;;  %v236_v11 = vpack.c.bf16 %v202_v4, %v201_v3  ;;  %v1793_v3 = vld [vmem:[%s4653_s28 + $0x12c] sm:$0xff] }
  0x37   : > { %3949 = vmatprep.mubr.msk.bf16.mxu1 %vm310_vm1, %v300_v12  ;;  %4119 = vmatprep.mubr.msk.bf16.mxu0 %vm310_vm1, %v1794_v13  ;;  %v4826_v12 = vpack.c.bf16 %v1777_v6, %v1776_v5  ;;  %v237_v13 = vpack.c.bf16 %v204_v8, %v203_v7  ;;  %v4828_v14 = vpack.c.bf16 %v1779_v10, %v1778_v9  ;;  %v219_v4 = vld [vmem:[%s4653_s28 + $0xa0] sm:$0xff]  ;;  %v220_v5 = vld [vmem:[%s4653_s28 + $0xa8] sm:$0xff]  ;;  %v221_v9 = vld [vmem:[%s4653_s28 + $0xb0] sm:$0xff] }
  0x38   : > { %v245_v8 = vpack.c.bf16 %v220_v5, %v219_v4  ;;  %v222_v10 = vld [vmem:[%s4653_s28 + $0xb8] sm:$0xff]  ;;  %v789_v46 = vld [vmem:[%s4653_s28 + $0x4a] sm:$0xff] }
  0x39   : > { %v797_v55 = vld [vmem:[%s4653_s28 + $0x8a] sm:$0xff] }
  0x3a   : > { %v2410_v4 = vld [vmem:[%s4653_s28 + $0x25] sm:$0xff] }
  0x3e   : > { %3950 = vmatmul.mubr.msk.bf16.gmra.mrb[20].mxu1 %vm310_vm1, %v301_v22  ;;  %4120 = vmatmul.mubr.msk.bf16.vlgmr.msra.gmra.mrb[0].mxu0 %vm310_vm1, %v4745_v23  ;;  %v1782_v22 = vld [vmem:[%s4653_s28 + $0xd4] sm:$0xff] }
  0x3f   : > { %3953 = vmatprep.mubr.msk.bf16.mxu1 %vm310_vm1, %v302_v24  ;;  %4156 = vmatpush3.bf16.msra.mxu0 %v2195_v28  ;;  %v1783_v24 = vld [vmem:[%s4653_s28 + $0xdc] sm:$0xff]  ;;  %v238_v28 = vpack.c.bf16 %v206_v18, %v205_v17  ;;  %v2521_v18 = vsel %vm365_vm0, %v4755_v29, 0 }
  0x40   : > { %4123 = vmatprep.mubr.msk.bf16.mxu0 %vm310_vm1, %v4747_v25  ;;  %4567 = vmatprep.subr.msk.bf16.mxu0 %vm365_vm0, %v4755_v29  ;;  %v4855_v32 = vpack.c.bf16 %v1783_v24, %v1782_v22  ;;  %v227_v29 = vld [vmem:[%s4653_s28 + $0xe0] sm:$0xff] }
  0x41   : > { %v249_v22 = vpack.c.bf16 %v228_v20, %v227_v29  ;;  %v231_v24 = vld [vmem:[%s4653_s28 + $0x100] sm:$0xff] }
  0x46   : > { %3954 = vmatmul.mubr.msk.bf16.gmra.mrb[24].mxu1 %vm310_vm1, %v303_v37  ;;  %4124 = vmatmul.mubr.msk.bf16.gmra.mrb[4].mxu0 %vm310_vm1, %v4772_v38  ;;  %v212_v37 = vld [vmem:[%s4653_s28 + $0x68] sm:$0xff] }
  0x47   : > { %3957 = vmatprep.mubr.msk.bf16.mxu1 %vm310_vm1, %v304_v39  ;;  %4127 = vmatprep.mubr.msk.bf16.mxu0 %vm310_vm1, %v4774_v40  ;;  %v1786_v39 = vld [vmem:[%s4653_s28 + $0xf4] sm:$0xff]  ;;  %v241_v44 = vpack.c.bf16 %v212_v37, %v211_v36 }
  0x48   : > { %v4873_v45 = vpack.c.bf16 %v1787_v41, %v1786_v39  ;;  %v783_v37 = vld [vmem:[%s4653_s28 + $0x1a] sm:$0xff]  ;;  %v785_v39 = vld [vmem:[%s4653_s28 + $0x2a] sm:$0xff] }
  0x4e   : > { %3958 = vmatmul.mubr.msk.bf16.gmra.mrb[28].mxu1 %vm310_vm1, %v305_v49  ;;  %4128 = vmatmul.mubr.msk.bf16.gmra.mrb[8].mxu0 %vm310_vm1, %v4790_v50  ;;  %v1789_v49 = vld [vmem:[%s4653_s28 + $0x10c] sm:$0xff] }
  0x4f   : > { %3961 = vmatprep.mubr.msk.bf16.mxu1 %vm310_vm1, %v306_v51  ;;  %4131 = vmatprep.mubr.msk.bf16.mxu0 %vm310_vm1, %v4792_v52  ;;  %v215_v51 = vld [vmem:[%s4653_s28 + $0x80] sm:$0xff]  ;;  %v4889_v57 = vpack.c.bf16 %v1789_v49, %v1788_v48  ;;  %v793_v49 = vld [vmem:[%s4653_s28 + $0x6a] sm:$0xff] }
  0x50   : > { %v243_v58 = vpack.c.bf16 %v216_v53, %v215_v51  ;;  %v791_v48 = vld [vmem:[%s4653_s28 + $0x5a] sm:$0xff] }
  0x56   : > { %3962 = vmatmul.mubr.msk.bf16.gmra.mrb[32].mxu1 %vm310_vm1, %v307_v61  ;;  %4132 = vmatmul.mubr.msk.bf16.gmra.mrb[12].mxu0 %vm310_vm1, %v4808_v62  ;;  %v218_v61 = vld [vmem:[%s4653_s28 + $0x98] sm:$0xff] }
  0x57   : > { %3967 = vmatprep.mubr.msk.bf16.mxu1 %vm310_vm1, %v235_v63  ;;  %4135 = vmatprep.mubr.msk.bf16.mxu0 %vm310_vm1, %v4810_v1  ;;  %v1792_v63 = vld [vmem:[%s4653_s28 + $0x124] sm:$0xff]  ;;  %v244_v6 = vpack.c.bf16 %v218_v61, %v217_v60  ;;  %v799_v60 = vld [vmem:[%s4653_s28 + $0x9a] sm:$0xff] }
  0x58   : > { %v4905_v7 = vpack.c.bf16 %v1793_v3, %v1792_v63  ;;  %v2119_v61 = vld [vmem:[%s4653_s28 + $0x13c] sm:$0xff]  ;;  %v801_v3 = vld [vmem:[%s4653_s28 + $0xaa] sm:$0xff] }
  0x59   : > { %v800_v63 = vld [vmem:[%s4653_s28 + $0xa2] sm:$0xff] }
  0x5e   : > { %3968 = vmatmul.mubr.msk.bf16.vlgmr.msra.gmra.mrb[0].mxu1 %vm310_vm1, %v236_v11  ;;  %4136 = vmatmul.mubr.msk.bf16.gmra.mrb[16].mxu0 %vm310_vm1, %v4826_v12  ;;  %v223_v11 = vld [vmem:[%s4653_s28 + $0xc0] sm:$0xff] }
  0x5f   : > { %3971 = vmatprep.mubr.msk.bf16.mxu1 %vm310_vm1, %v237_v13  ;;  %4139 = vmatprep.mubr.msk.bf16.mxu0 %vm310_vm1, %v4828_v14  ;;  %v224_v13 = vld [vmem:[%s4653_s28 + $0xc8] sm:$0xff] }
  0x60   : > { %4004 = vmatpush3.bf16.msra.mxu1 %v891_v15  ;;  %v246_v15 = vpack.c.bf16 %v222_v10, %v221_v9  ;;  %v247_v17 = vpack.c.bf16 %v224_v13, %v223_v11  ;;  %v803_v10 = vld [vmem:[%s4653_s28 + $0xba] sm:$0xff] }
  0x61   : > { %4562 = vmatprep.subr.msk.bf16.mxu1 %vm365_vm0, %v4836_v16  ;;  %v2412_v11 = vld [vmem:[%s4653_s28 + $0x35] sm:$0xff]  ;;  %v2413_v13 = vld [vmem:[%s4653_s28 + $0x3d] sm:$0xff] }
  0x62   : > { %v2447_v29 = vpack.c.bf16 %v2413_v13, %v2412_v11 }
  0x66   : > { %3972 = vmatmul.mubr.msk.bf16.gmra.mrb[4].mxu1 %vm310_vm1, %v238_v28  ;;  %4140 = vmatmul.mubr.msk.bf16.gmra.mrb[20].mxu0 %vm310_vm1, %v4853_v30  ;;  %v232_v28 = vld [vmem:[%s4653_s28 + $0x108] sm:$0xff] }
  0x67   : > { %3975 = vmatprep.mubr.msk.bf16.mxu1 %vm310_vm1, %v239_v31  ;;  %4143 = vmatprep.mubr.msk.bf16.mxu0 %vm310_vm1, %v4855_v32  ;;  %v251_v26 = vpack.c.bf16 %v232_v28, %v231_v24  ;;  %v2416_v24 = vld [vmem:[%s4653_s28 + $0x55] sm:$0xff]  ;;  %v2417_v28 = vld [vmem:[%s4653_s28 + $0x5d] sm:$0xff] }
  0x6e   : > { %3976 = vmatmul.mubr.msk.bf16.gmra.mrb[8].mxu1 %vm310_vm1, %v240_v42  ;;  %4144 = vmatmul.mubr.msk.bf16.gmra.mrb[24].mxu0 %vm310_vm1, %v4871_v43 }
  0x6f   : > { %3979 = vmatprep.mubr.msk.bf16.mxu1 %vm310_vm1, %v241_v44  ;;  %4147 = vmatprep.mubr.msk.bf16.mxu0 %vm310_vm1, %v4873_v45  ;;  %v1217_v44 = vsel %vm365_vm0, %v4836_v16, 0  ;;  %v788_v16 = vld [vmem:[%s4653_s28 + $0x42] sm:$0xff] }
  0x76   : > { %3980 = vmatmul.mubr.msk.bf16.gmra.mrb[12].mxu1 %vm310_vm1, %v242_v56  ;;  %4148 = vmatmul.mubr.msk.bf16.gmra.mrb[28].mxu0 %vm310_vm1, %v4889_v57 }
  0x77   : > { %3983 = vmatprep.mubr.msk.bf16.mxu1 %vm310_vm1, %v243_v58  ;;  %4151 = vmatprep.mubr.msk.bf16.mxu0 %vm310_vm1, %v4891_v59  ;;  %v5020_v58 = vpack.c.bf16 %v797_v55, %v796_v54  ;;  %v2426_v54 = vld [vmem:[%s4653_s28 + $0xa5] sm:$0xff]  ;;  %v2427_v55 = vld [vmem:[%s4653_s28 + $0xad] sm:$0xff] }
  0x7e   : > { %3984 = vmatmul.mubr.msk.bf16.gmra.mrb[16].mxu1 %vm310_vm1, %v244_v6  ;;  %4152 = vmatmul.mubr.msk.bf16.gmra.mrb[32].mxu0 %vm310_vm1, %v4905_v7 }
  0x7f   : > { %3987 = vmatprep.mubr.msk.bf16.mxu1 %vm310_vm1, %v245_v8  ;;  %4157 = vmatprep.mubr.msk.bf16.mxu0 %vm310_vm1, %v4745_v23  ;;  %v225_v23 = vld [vmem:[%s4653_s28 + $0xd0] sm:$0xff]  ;;  %v5040_v8 = vpack.c.bf16 %v801_v3, %v800_v63  ;;  %v2429_v63 = vld [vmem:[%s4653_s28 + $0xbd] sm:$0xff]  ;;  %v2430_v3 = vld [vmem:[%s4653_s28 + $0xc5] sm:$0xff] }
  0x80   : > { %v248_v21 = vpack.c.bf16 %v226_v27, %v225_v23  ;;  %v2415_v23 = vld [vmem:[%s4653_s28 + $0x4d] sm:$0xff] }
  0x86   : > { %3988 = vmatmul.mubr.msk.bf16.gmra.mrb[20].mxu1 %vm310_vm1, %v246_v15  ;;  %4158 = vmatmul.mubr.msk.bf16.vlgmr.msra.gmra.mrb[0].mxu0 %vm310_vm1, %v4747_v25  ;;  %v229_v25 = vld [vmem:[%s4653_s28 + $0xf0] sm:$0xff]  ;;  %v804_v15 = vld [vmem:[%s4653_s28 + $0xc2] sm:$0xff] }
  0x87   : > { %3991 = vmatprep.mubr.msk.bf16.mxu1 %vm310_vm1, %v247_v17  ;;  %4194 = vmatpush3.bf16.msra.mxu0 %v2521_v18  ;;  %v805_v17 = vld [vmem:[%s4653_s28 + $0xca] sm:$0xff] }
  0x88   : > { %4161 = vmatprep.mubr.msk.bf16.mxu0 %vm310_vm1, %v4772_v38  ;;  %4568 = vmatprep.subr.msk.bf16.mxu0 %vm365_vm0, %v4923_v19  ;;  %v230_v38 = vld [vmem:[%s4653_s28 + $0xf8] sm:$0xff]  ;;  %v2414_v18 = vld [vmem:[%s4653_s28 + $0x45] sm:$0xff]  ;;  %v5058_v20 = vpack.c.bf16 %v805_v17, %v804_v15  ;;  %v2439_v15 = vld [vmem:[%s4653_s28 + $0x10d] sm:$0xff] }
  0x89   : > { %v250_v31 = vpack.c.bf16 %v230_v38, %v229_v25  ;;  %v806_v25 = vld [vmem:[%s4653_s28 + $0xd2] sm:$0xff]  ;;  %v807_v38 = vld [vmem:[%s4653_s28 + $0xda] sm:$0xff] }
  0x8e   : > { %3992 = vmatmul.mubr.msk.bf16.gmra.mrb[24].mxu1 %vm310_vm1, %v248_v21  ;;  %4162 = vmatmul.mubr.msk.bf16.gmra.mrb[4].mxu0 %vm310_vm1, %v4774_v40  ;;  %v233_v40 = vld [vmem:[%s4653_s28 + $0x110] sm:$0xff]  ;;  %v2448_v21 = vpack.c.bf16 %v2415_v23, %v2414_v18  ;;  %v2442_v23 = vld [vmem:[%s4653_s28 + $0x125] sm:$0xff] }
  0x8f   : > { %3995 = vmatprep.mubr.msk.bf16.mxu1 %vm310_vm1, %v249_v22  ;;  %4165 = vmatprep.mubr.msk.bf16.mxu0 %vm310_vm1, %v4790_v50  ;;  %v780_v50 = vld [vmem:[%s4653_s28 + $0x2] sm:$0xff]  ;;  %v252_v35 = vpack.c.bf16 %v234_v33, %v233_v40  ;;  %v2847_v22 = vsel %vm365_vm0, %v4923_v19, 0  ;;  %v2419_v40 = vld [vmem:[%s4653_s28 + $0x6d] sm:$0xff]  ;;  %v5076_v33 = vpack.c.bf16 %v807_v38, %v806_v25 }
  0x90   : > { %v816_v36 = vpack.c.bf16 %v781_v34, %v780_v50  ;;  %v808_v19 = vld [vmem:[%s4653_s28 + $0xe2] sm:$0xff]  ;;  %v2449_v50 = vpack.c.bf16 %v2417_v28, %v2416_v24  ;;  %v2737_v38 = vld [vmem:[%s4653_s28 + $0x2e] sm:$0xff] }
  0x91   : > { %v2736_v25 = vld [vmem:[%s4653_s28 + $0x26] sm:$0xff] }
  0x92   : > { %v2772_v28 = vpack.c.bf16 %v2737_v38, %v2736_v25  ;;  %v2764_v25 = vld [vmem:[%s4653_s28 + $0x106] sm:$0xff]  ;;  %v2765_v38 = vld [vmem:[%s4653_s28 + $0x10e] sm:$0xff] }
  0x96   : > { %3996 = vmatmul.mubr.msk.bf16.gmra.mrb[28].mxu1 %vm310_vm1, %v250_v31  ;;  %4166 = vmatmul.mubr.msk.bf16.gmra.mrb[8].mxu0 %vm310_vm1, %v4792_v52  ;;  %v782_v52 = vld [vmem:[%s4653_s28 + $0x12] sm:$0xff]  ;;  %v809_v31 = vld [vmem:[%s4653_s28 + $0xea] sm:$0xff] }
  0x97   : > { %3999 = vmatprep.mubr.msk.bf16.mxu1 %vm310_vm1, %v251_v26  ;;  %4169 = vmatprep.mubr.msk.bf16.mxu0 %vm310_vm1, %v4808_v62  ;;  %v784_v62 = vld [vmem:[%s4653_s28 + $0x22] sm:$0xff]  ;;  %v4966_v41 = vpack.c.bf16 %v783_v37, %v782_v52  ;;  %v5078_v34 = vpack.c.bf16 %v809_v31, %v808_v19  ;;  %v811_v52 = vld [vmem:[%s4653_s28 + $0xfa] sm:$0xff]  ;;  %v2741_v31 = vld [vmem:[%s4653_s28 + $0x4e] sm:$0xff] }
  0x98   : > { %v4968_v42 = vpack.c.bf16 %v785_v39, %v784_v62  ;;  %v2418_v26 = vld [vmem:[%s4653_s28 + $0x65] sm:$0xff]  ;;  %v2420_v37 = vld [vmem:[%s4653_s28 + $0x75] sm:$0xff]  ;;  %v2421_v62 = vld [vmem:[%s4653_s28 + $0x7d] sm:$0xff] }
  0x99   : > { %v812_v39 = vld [vmem:[%s4653_s28 + $0x102] sm:$0xff] }
  0x9a   : > { %v2740_v19 = vld [vmem:[%s4653_s28 + $0x46] sm:$0xff] }
  0x9e   : > { %4000 = vmatmul.mubr.msk.bf16.gmra.mrb[32].mxu1 %vm310_vm1, %v252_v35  ;;  %4170 = vmatmul.mubr.msk.bf16.gmra.mrb[12].mxu0 %vm310_vm1, %v4810_v1  ;;  %v786_v1 = vld [vmem:[%s4653_s28 + $0x32] sm:$0xff]  ;;  %v2450_v35 = vpack.c.bf16 %v2419_v40, %v2418_v26  ;;  %v2774_v40 = vpack.c.bf16 %v2741_v31, %v2740_v19  ;;  %v1466_v19 = vld [vmem:[%s4653_s28 + $0x123] sm:$0xff] }
  0x9f   : > { %4005 = vmatprep.mubr.msk.bf16.mxu1 %vm310_vm1, %v816_v36  ;;  %4173 = vmatprep.mubr.msk.bf16.mxu0 %vm310_vm1, %v4826_v12  ;;  %v787_v12 = vld [vmem:[%s4653_s28 + $0x3a] sm:$0xff]  ;;  %v810_v36 = vld [vmem:[%s4653_s28 + $0xf2] sm:$0xff] }
  0xa0   : > { %v4986_v47 = vpack.c.bf16 %v787_v12, %v786_v1  ;;  %v2422_v1 = vld [vmem:[%s4653_s28 + $0x85] sm:$0xff]  ;;  %v2423_v12 = vld [vmem:[%s4653_s28 + $0x8d] sm:$0xff] }
  0xa1   : > { %v1467_v31 = vld [vmem:[%s4653_s28 + $0x12b] sm:$0xff] }
  0xa6   : > { %4006 = vmatmul.mubr.msk.bf16.vlgmr.msra.gmra.mrb[0].mxu1 %vm310_vm1, %v4966_v41  ;;  %4174 = vmatmul.mubr.msk.bf16.gmra.mrb[16].mxu0 %vm310_vm1, %v4828_v14  ;;  %v4988_v14 = vpack.c.bf16 %v789_v46, %v788_v16  ;;  %v5094_v16 = vpack.c.bf16 %v811_v52, %v810_v36  ;;  %v2451_v46 = vpack.c.bf16 %v2421_v62, %v2420_v37  ;;  %v2748_v37 = vld [vmem:[%s4653_s28 + $0x86] sm:$0xff]  ;;  %v2749_v62 = vld [vmem:[%s4653_s28 + $0x8e] sm:$0xff] }
  0xa7   : > { %4009 = vmatprep.mubr.msk.bf16.mxu1 %vm310_vm1, %v4968_v42  ;;  %4177 = vmatprep.mubr.msk.bf16.mxu0 %vm310_vm1, %v4853_v30  ;;  %v790_v30 = vld [vmem:[%s4653_s28 + $0x52] sm:$0xff] }
  0xa8   : > { %4042 = vmatpush3.bf16.msra.mxu1 %v1217_v44  ;;  %v5002_v51 = vpack.c.bf16 %v791_v48, %v790_v30  ;;  %v813_v44 = vld [vmem:[%s4653_s28 + $0x10a] sm:$0xff]  ;;  %v2452_v48 = vpack.c.bf16 %v2423_v12, %v2422_v1  ;;  %v2750_v12 = vld [vmem:[%s4653_s28 + $0x96] sm:$0xff] }
  0xa9   : > { %4564 = vmatprep.subr.msk.bf16.mxu1 %vm365_vm0, %v4625_v0  ;;  %v792_v0 = vld [vmem:[%s4653_s28 + $0x62] sm:$0xff]  ;;  %v5096_v30 = vpack.c.bf16 %v813_v44, %v812_v39  ;;  %v2778_v44 = vpack.c.bf16 %v2749_v62, %v2748_v37  ;;  %v1141_v1 = vld [vmem:[%s4653_s28 + $0x12a] sm:$0xff]  ;;  %v4588_v37 = vmov 0.0  }
  0xaa   : > { %v5004_v53 = vpack.c.bf16 %v793_v49, %v792_v0  ;;  %v814_v0 = vld [vmem:[%s4653_s28 + $0x112] sm:$0xff]  ;;  %v815_v49 = vld [vmem:[%s4653_s28 + $0x11a] sm:$0xff]  ;;  %3322 = vst.msk [vmem:[%s5263_s18] sm:$0xff] %vm3285_vm3, %v4588_v37  ;;  %3323 = vst.msk [vmem:[%s5263_s18 + $0x8] sm:$0xff] %vm3285_vm3, %v4588_v37 }
  0xab   : > { %3324 = vst.msk [vmem:[%s5263_s18 + $0x10] sm:$0xff] %vm3285_vm3, %v4588_v37  ;;  %3325 = vst.msk [vmem:[%s5263_s18 + $0x18] sm:$0xff] %vm3285_vm3, %v4588_v37 }
  0xac   : > { %3335 = vst.msk [vmem:[%s5263_s18 + $0x60] sm:$0x3f] %vm3334_vm2, %v4588_v37 }
  0xad   : > { %3326 = vst.msk [vmem:[%s5263_s18 + $0x20] sm:$0xff] %vm3285_vm3, %v4588_v37  ;;  %3327 = vst.msk [vmem:[%s5263_s18 + $0x28] sm:$0xff] %vm3285_vm3, %v4588_v37 }
  0xae   : > { %4010 = vmatmul.mubr.msk.bf16.gmra.mrb[4].mxu1 %vm310_vm1, %v4986_v47  ;;  %4178 = vmatmul.mubr.msk.bf16.gmra.mrb[20].mxu0 %vm310_vm1, %v4855_v32  ;;  %v794_v32 = vld [vmem:[%s4653_s28 + $0x72] sm:$0xff]  ;;  %3328 = vst.msk [vmem:[%s5263_s18 + $0x30] sm:$0xff] %vm3285_vm3, %v4588_v37  ;;  %3329 = vst.msk [vmem:[%s5263_s18 + $0x38] sm:$0xff] %vm3285_vm3, %v4588_v37 }
  0xaf   : > { %4013 = vmatprep.mubr.msk.bf16.mxu1 %vm310_vm1, %v4988_v14  ;;  %4181 = vmatprep.mubr.msk.bf16.mxu0 %vm310_vm1, %v4871_v43  ;;  %v795_v43 = vld [vmem:[%s4653_s28 + $0x7a] sm:$0xff]  ;;  %3330 = vst.msk [vmem:[%s5263_s18 + $0x40] sm:$0xff] %vm3285_vm3, %v4588_v37  ;;  %3331 = vst.msk [vmem:[%s5263_s18 + $0x48] sm:$0xff] %vm3285_vm3, %v4588_v37 }
  0xb0   : > { %v5018_v56 = vpack.c.bf16 %v795_v43, %v794_v32  ;;  %v2424_v32 = vld [vmem:[%s4653_s28 + $0x95] sm:$0xff]  ;;  %v2425_v43 = vld [vmem:[%s4653_s28 + $0x9d] sm:$0xff]  ;;  %3332 = vst.msk [vmem:[%s5263_s18 + $0x50] sm:$0xff] %vm3285_vm3, %v4588_v37  ;;  %3333 = vst.msk [vmem:[%s5263_s18 + $0x58] sm:$0xff] %vm3285_vm3, %v4588_v37 }
  0xb6   : > { %4014 = vmatmul.mubr.msk.bf16.gmra.mrb[8].mxu1 %vm310_vm1, %v5002_v51  ;;  %4182 = vmatmul.mubr.msk.bf16.gmra.mrb[24].mxu0 %vm310_vm1, %v4873_v45  ;;  %v798_v45 = vld [vmem:[%s4653_s28 + $0x92] sm:$0xff] }
  0xb7   : > { %4017 = vmatprep.mubr.msk.bf16.mxu1 %vm310_vm1, %v5004_v53  ;;  %4185 = vmatprep.mubr.msk.bf16.mxu0 %vm310_vm1, %v4889_v57  ;;  %v2118_v57 = vld [vmem:[%s4653_s28 + $0x134] sm:$0xff]  ;;  %v5038_v5 = vpack.c.bf16 %v799_v60, %v798_v45  ;;  %v5110_v45 = vpack.c.bf16 %v815_v49, %v814_v0  ;;  %v2453_v60 = vpack.c.bf16 %v2425_v43, %v2424_v32 }
  0xb8   : > { %v2137_v6 = vpack.c.bf16 %v2119_v61, %v2118_v57  ;;  %v2454_v57 = vpack.c.bf16 %v2427_v55, %v2426_v54  ;;  %v2428_v61 = vld [vmem:[%s4653_s28 + $0xb5] sm:$0xff]  ;;  %v1454_v55 = vld [vmem:[%s4653_s28 + $0xc3] sm:$0xff] }
  0xb9   : > { %v2753_v0 = vld [vmem:[%s4653_s28 + $0xae] sm:$0xff] }
  0xbe   : > { %4018 = vmatmul.mubr.msk.bf16.gmra.mrb[12].mxu1 %vm310_vm1, %v5018_v56  ;;  %4186 = vmatmul.mubr.msk.bf16.gmra.mrb[28].mxu0 %vm310_vm1, %v4891_v59  ;;  %v2411_v59 = vld [vmem:[%s4653_s28 + $0x2d] sm:$0xff] }
  0xbf   : > { %4021 = vmatprep.mubr.msk.bf16.mxu1 %vm310_vm1, %v5020_v58  ;;  %4189 = vmatprep.mubr.msk.bf16.mxu0 %vm310_vm1, %v4905_v7  ;;  %v2446_v9 = vpack.c.bf16 %v2411_v59, %v2410_v4  ;;  %v802_v7 = vld [vmem:[%s4653_s28 + $0xb2] sm:$0xff]  ;;  %v2455_v59 = vpack.c.bf16 %v2429_v63, %v2428_v61  ;;  %v1457_v63 = vld [vmem:[%s4653_s28 + $0xdb] sm:$0xff] }
  0xc0   : > { %v5056_v27 = vpack.c.bf16 %v803_v10, %v802_v7  ;;  %v2431_v4 = vld [vmem:[%s4653_s28 + $0xcd] sm:$0xff]  ;;  %v2434_v7 = vld [vmem:[%s4653_s28 + $0xe5] sm:$0xff] }
  0xc1   : > { %v2435_v10 = vld [vmem:[%s4653_s28 + $0xed] sm:$0xff] }
  0xc2   : > { %v2458_v13 = vpack.c.bf16 %v2435_v10, %v2434_v7  ;;  %v1456_v61 = vld [vmem:[%s4653_s28 + $0xd3] sm:$0xff]  ;;  %v1458_v7 = vld [vmem:[%s4653_s28 + $0xe3] sm:$0xff]  ;;  %v1459_v10 = vld [vmem:[%s4653_s28 + $0xeb] sm:$0xff] }
  0xc6   : > { %4022 = vmatmul.mubr.msk.bf16.gmra.mrb[16].mxu1 %vm310_vm1, %v5038_v5  ;;  %4190 = vmatmul.mubr.msk.bf16.gmra.mrb[32].mxu0 %vm310_vm1, %v2137_v6  ;;  %v2456_v6 = vpack.c.bf16 %v2431_v4, %v2430_v3  ;;  %v2756_v3 = vld [vmem:[%s4653_s28 + $0xc6] sm:$0xff]  ;;  %v2757_v4 = vld [vmem:[%s4653_s28 + $0xce] sm:$0xff] }
  0xc7   : > { %4025 = vmatprep.mubr.msk.bf16.mxu1 %vm310_vm1, %v5040_v8  ;;  %4195 = vmatprep.mubr.msk.bf16.mxu0 %vm310_vm1, %v2446_v9  ;;  %v2433_v9 = vld [vmem:[%s4653_s28 + $0xdd] sm:$0xff] }
  0xce   : > { %4026 = vmatmul.mubr.msk.bf16.gmra.mrb[20].mxu1 %vm310_vm1, %v5056_v27  ;;  %4196 = vmatmul.mubr.msk.bf16.vlgmr.msra.gmra.mrb[0].mxu0 %vm310_vm1, %v2447_v29  ;;  %v2443_v29 = vld [vmem:[%s4653_s28 + $0x12d] sm:$0xff] }
  0xcf   : > { %4029 = vmatprep.mubr.msk.bf16.mxu1 %vm310_vm1, %v5058_v20  ;;  %4232 = vmatpush3.bf16.msra.mxu0 %v2847_v22  ;;  %v2462_v22 = vpack.c.bf16 %v2443_v29, %v2442_v23  ;;  %v1462_v23 = vld [vmem:[%s4653_s28 + $0x103] sm:$0xff]  ;;  %v1463_v29 = vld [vmem:[%s4653_s28 + $0x10b] sm:$0xff] }
  0xd0   : > { %4199 = vmatprep.mubr.msk.bf16.mxu0 %vm310_vm1, %v2448_v21 }
  0xd6   : > { %4030 = vmatmul.mubr.msk.bf16.gmra.mrb[24].mxu1 %vm310_vm1, %v5076_v33  ;;  %4200 = vmatmul.mubr.msk.bf16.gmra.mrb[4].mxu0 %vm310_vm1, %v2449_v50  ;;  %v2744_v50 = vld [vmem:[%s4653_s28 + $0x66] sm:$0xff] }
  0xd7   : > { %4033 = vmatprep.mubr.msk.bf16.mxu1 %vm310_vm1, %v5078_v34  ;;  %4203 = vmatprep.mubr.msk.bf16.mxu0 %vm310_vm1, %v2450_v35  ;;  %v2745_v35 = vld [vmem:[%s4653_s28 + $0x6e] sm:$0xff] }
  0xd8   : > { %v2776_v52 = vpack.c.bf16 %v2745_v35, %v2744_v50  ;;  %v1485_v50 = vpack.c.bf16 %v1467_v31, %v1466_v19 }
  0xde   : > { %4034 = vmatmul.mubr.msk.bf16.gmra.mrb[28].mxu1 %vm310_vm1, %v5094_v16  ;;  %4204 = vmatmul.mubr.msk.bf16.gmra.mrb[8].mxu0 %vm310_vm1, %v2451_v46  ;;  %v1452_v46 = vld [vmem:[%s4653_s28 + $0xb3] sm:$0xff] }
  0xdf   : > { %4037 = vmatprep.mubr.msk.bf16.mxu1 %vm310_vm1, %v5096_v30  ;;  %4207 = vmatprep.mubr.msk.bf16.mxu0 %vm310_vm1, %v2452_v48  ;;  %v1453_v48 = vld [vmem:[%s4653_s28 + $0xbb] sm:$0xff] }
  0xe0   : > { %v1478_v43 = vpack.c.bf16 %v1453_v48, %v1452_v46 }
  0xe6   : > { %4038 = vmatmul.mubr.msk.bf16.gmra.mrb[32].mxu1 %vm310_vm1, %v5110_v45  ;;  %4208 = vmatmul.mubr.msk.bf16.gmra.mrb[12].mxu0 %vm310_vm1, %v2453_v60  ;;  %v2754_v60 = vld [vmem:[%s4653_s28 + $0xb6] sm:$0xff] }
  0xe7   : > { %4043 = vmatprep.mubr.msk.bf16.mxu1 %vm310_vm1, %v4966_v41  ;;  %4211 = vmatprep.mubr.msk.bf16.mxu0 %vm310_vm1, %v2454_v57  ;;  %v2432_v41 = vld [vmem:[%s4653_s28 + $0xd5] sm:$0xff]  ;;  %v2755_v57 = vld [vmem:[%s4653_s28 + $0xbe] sm:$0xff] }
  0xe8   : > { %v2457_v11 = vpack.c.bf16 %v2433_v9, %v2432_v41  ;;  %v1480_v41 = vpack.c.bf16 %v1457_v63, %v1456_v61  ;;  %v2782_v9 = vpack.c.bf16 %v2757_v4, %v2756_v3  ;;  %v3107_v63 = vld [vmem:[%s5739_s3 + $0x10] sm:$0xff]  ;;  %v3105_v3 = vld [vmem:[%s5739_s3] sm:$0xff]  ;;  %v3108_v4 = vld [vmem:[%s5739_s3 + $0x18] sm:$0xff] }
  0xee   : > { %4044 = vmatmul.mubr.msk.bf16.vlgmr.msra.gmra.mrb[0].mxu1 %vm310_vm1, %v4968_v42  ;;  %4212 = vmatmul.mubr.msk.bf16.gmra.mrb[16].mxu0 %vm310_vm1, %v2455_v59  ;;  %v2437_v42 = vld [vmem:[%s4653_s28 + $0xfd] sm:$0xff] }
  0xef   : > { %4047 = vmatprep.mubr.msk.bf16.mxu1 %vm310_vm1, %v4986_v47  ;;  %4215 = vmatprep.mubr.msk.bf16.mxu0 %vm310_vm1, %v2456_v6  ;;  %v2438_v47 = vld [vmem:[%s4653_s28 + $0x105] sm:$0xff]  ;;  %v2781_v6 = vpack.c.bf16 %v2755_v57, %v2754_v60 }
  0xf0   : > { %4270 = vmatpush3.bf16.msra.mxu1 %v4635_v2  ;;  %v2436_v2 = vld [vmem:[%s4653_s28 + $0xf5] sm:$0xff]  ;;  %v2460_v18 = vpack.c.bf16 %v2439_v15, %v2438_v47  ;;  %v2760_v47 = vld [vmem:[%s4653_s28 + $0xe6] sm:$0xff] }
  0xf1   : > { %v2459_v17 = vpack.c.bf16 %v2437_v42, %v2436_v2  ;;  %v1460_v2 = vld [vmem:[%s4653_s28 + $0xf3] sm:$0xff]  ;;  %v1461_v42 = vld [vmem:[%s4653_s28 + $0xfb] sm:$0xff] }
  0xf2   : > { %v2761_v15 = vld [vmem:[%s4653_s28 + $0xee] sm:$0xff] }
  0xf6   : > { %4048 = vmatmul.mubr.msk.bf16.gmra.mrb[4].mxu1 %vm310_vm1, %v4988_v14  ;;  %4216 = vmatmul.mubr.msk.bf16.gmra.mrb[20].mxu0 %vm310_vm1, %v2457_v11  ;;  %v2440_v14 = vld [vmem:[%s4653_s28 + $0x115] sm:$0xff] }
  0xf7   : > { %4051 = vmatprep.mubr.msk.bf16.mxu1 %vm310_vm1, %v5002_v51  ;;  %4219 = vmatprep.mubr.msk.bf16.mxu0 %vm310_vm1, %v2458_v13  ;;  %v2441_v51 = vld [vmem:[%s4653_s28 + $0x11d] sm:$0xff] }
  0xf8   : > { %v2461_v21 = vpack.c.bf16 %v2441_v51, %v2440_v14  ;;  %v2758_v11 = vld [vmem:[%s4653_s28 + $0xd6] sm:$0xff]  ;;  %v2759_v13 = vld [vmem:[%s4653_s28 + $0xde] sm:$0xff]  ;;  %v1482_v14 = vpack.c.bf16 %v1461_v42, %v1460_v2  ;;  %v2784_v51 = vpack.c.bf16 %v2761_v15, %v2760_v47 }
  0xfe   : > { %4052 = vmatmul.mubr.msk.bf16.gmra.mrb[8].mxu1 %vm310_vm1, %v5004_v53  ;;  %4220 = vmatmul.mubr.msk.bf16.gmra.mrb[24].mxu0 %vm310_vm1, %v2459_v17  ;;  %v2444_v53 = vld [vmem:[%s4653_s28 + $0x135] sm:$0xff]  ;;  %v1481_v17 = vpack.c.bf16 %v1459_v10, %v1458_v7  ;;  %v3177_v7 = vsub.f32 1.0, %v3105_v3 }
  0xff   : > { %4055 = vmatprep.mubr.msk.bf16.mxu1 %vm310_vm1, %v5018_v56  ;;  %4223 = vmatprep.mubr.msk.bf16.mxu0 %vm310_vm1, %v2460_v18  ;;  %v2445_v56 = vld [vmem:[%s4653_s28 + $0x13d] sm:$0xff]  ;;  %v2783_v18 = vpack.c.bf16 %v2759_v13, %v2758_v11  ;;  %v3180_v13 = vsub.f32 1.0, %v3108_v4 }
 0x100   : > { %v2463_v24 = vpack.c.bf16 %v2445_v56, %v2444_v53  ;;  %v1464_v53 = vld [vmem:[%s4653_s28 + $0x113] sm:$0xff]  ;;  %v1465_v56 = vld [vmem:[%s4653_s28 + $0x11b] sm:$0xff] }
 0x106   : > { %4056 = vmatmul.mubr.msk.bf16.gmra.mrb[12].mxu1 %vm310_vm1, %v5020_v58  ;;  %4224 = vmatmul.mubr.msk.bf16.gmra.mrb[28].mxu0 %vm310_vm1, %v2461_v21  ;;  %v2738_v58 = vld [vmem:[%s4653_s28 + $0x36] sm:$0xff] }
 0x107   : > { %4059 = vmatprep.mubr.msk.bf16.mxu1 %vm310_vm1, %v5038_v5  ;;  %4227 = vmatprep.mubr.msk.bf16.mxu0 %vm310_vm1, %v2462_v22  ;;  %v2739_v5 = vld [vmem:[%s4653_s28 + $0x3e] sm:$0xff]  ;;  %v2762_v21 = vld [vmem:[%s4653_s28 + $0xf6] sm:$0xff] }
 0x108   : > { %v2773_v26 = vpack.c.bf16 %v2739_v5, %v2738_v58  ;;  %v2763_v22 = vld [vmem:[%s4653_s28 + $0xfe] sm:$0xff]  ;;  %v1484_v58 = vpack.c.bf16 %v1465_v56, %v1464_v53  ;;  %v2786_v5 = vpack.c.bf16 %v2765_v38, %v2764_v25  ;;  %v3216_v56 = vmul.f32 1e+30, %v3180_v13 }
 0x109   : > { %v3109_v25 = vld [vmem:[%s5739_s3 + $0x20] sm:$0xff] }
 0x10e   : > { %4060 = vmatmul.mubr.msk.bf16.gmra.mrb[16].mxu1 %vm310_vm1, %v5040_v8  ;;  %4228 = vmatmul.mubr.msk.bf16.gmra.mrb[32].mxu0 %vm310_vm1, %v2463_v24  ;;  %v2742_v8 = vld [vmem:[%s4653_s28 + $0x56] sm:$0xff]  ;;  %v1483_v24 = vpack.c.bf16 %v1463_v29, %v1462_v23  ;;  %v3213_v23 = vmul.f32 1e+30, %v3177_v7 }
 0x10f   : > { %4063 = vmatprep.mubr.msk.bf16.mxu1 %vm310_vm1, %v5056_v27  ;;  %4233 = vmatprep.mubr.msk.bf16.mxu0 %vm310_vm1, %v2772_v28  ;;  %v2743_v27 = vld [vmem:[%s4653_s28 + $0x5e] sm:$0xff]  ;;  %v2785_v28 = vpack.c.bf16 %v2763_v22, %v2762_v21  ;;  %v3111_v21 = vld [vmem:[%s5739_s3 + $0x30] sm:$0xff] }
 0x110   : > { %v2775_v36 = vpack.c.bf16 %v2743_v27, %v2742_v8  ;;  %v2768_v8 = vld [vmem:[%s4653_s28 + $0x126] sm:$0xff]  ;;  %v2769_v27 = vld [vmem:[%s4653_s28 + $0x12e] sm:$0xff]  ;;  %v3183_v31 = vsub.f32 1.0, %v3111_v21 }
 0x116   : > { %4064 = vmatmul.mubr.msk.bf16.gmra.mrb[20].mxu1 %vm310_vm1, %v5058_v20  ;;  %4234 = vmatmul.mubr.msk.bf16.vlgmr.msra.gmra.mrb[0].mxu0 %vm310_vm1, %v2773_v26  ;;  %v2746_v20 = vld [vmem:[%s4653_s28 + $0x76] sm:$0xff] }
 0x117   : > { %4067 = vmatprep.mubr.msk.bf16.mxu1 %vm310_vm1, %v5076_v33  ;;  %4237 = vmatprep.mubr.msk.bf16.mxu0 %vm310_vm1, %v2774_v40  ;;  %v2747_v33 = vld [vmem:[%s4653_s28 + $0x7e] sm:$0xff]  ;;  %v2766_v26 = vld [vmem:[%s4653_s28 + $0x116] sm:$0xff] }
 0x118   : > { %v2777_v39 = vpack.c.bf16 %v2747_v33, %v2746_v20  ;;  %v2767_v40 = vld [vmem:[%s4653_s28 + $0x11e] sm:$0xff] }
 0x119   : > { %v2787_v35 = vpack.c.bf16 %v2767_v40, %v2766_v26  ;;  %v2771_v20 = vld [vmem:[%s4653_s28 + $0x13e] sm:$0xff]  ;;  %v3110_v26 = vld [vmem:[%s5739_s3 + $0x28] sm:$0xff]  ;;  %v5356_v40 = vld [vmem:[%s5739_s3 + $0x50] sm:$0xff] }
 0x11e   : > { %4068 = vmatmul.mubr.msk.bf16.gmra.mrb[24].mxu1 %vm310_vm1, %v5078_v34  ;;  %4238 = vmatmul.mubr.msk.bf16.gmra.mrb[4].mxu0 %vm310_vm1, %v2775_v36  ;;  %v1140_v34 = vld [vmem:[%s4653_s28 + $0x122] sm:$0xff]  ;;  %v2788_v36 = vpack.c.bf16 %v2769_v27, %v2768_v8 }
 0x11f   : > { %4071 = vmatprep.mubr.msk.bf16.mxu1 %vm310_vm1, %v5094_v16  ;;  %4241 = vmatprep.mubr.msk.bf16.mxu0 %vm310_vm1, %v2776_v52  ;;  %v2751_v16 = vld [vmem:[%s4653_s28 + $0x9e] sm:$0xff]  ;;  %v1159_v49 = vpack.c.bf16 %v1141_v1, %v1140_v34  ;;  %v2770_v52 = vld [vmem:[%s4653_s28 + $0x136] sm:$0xff] }
 0x120   : > { %v2779_v32 = vpack.c.bf16 %v2751_v16, %v2750_v12  ;;  %v2789_v33 = vpack.c.bf16 %v2771_v20, %v2770_v52 }
 0x126   : > { %4072 = vmatmul.mubr.msk.bf16.gmra.mrb[28].mxu1 %vm310_vm1, %v5096_v30  ;;  %4242 = vmatmul.mubr.msk.bf16.gmra.mrb[8].mxu0 %vm310_vm1, %v2777_v39  ;;  %v2752_v30 = vld [vmem:[%s4653_s28 + $0xa6] sm:$0xff] }
 0x127   : > { %4075 = vmatprep.mubr.msk.bf16.mxu1 %vm310_vm1, %v5110_v45  ;;  %4245 = vmatprep.mubr.msk.bf16.mxu0 %vm310_vm1, %v2778_v44  ;;  %v2780_v54 = vpack.c.bf16 %v2753_v0, %v2752_v30  ;;  %v1455_v45 = vld [vmem:[%s4653_s28 + $0xcb] sm:$0xff] }
 0x128   : > { %v1479_v59 = vpack.c.bf16 %v1455_v45, %v1454_v55 }
 0x12e   : > { %4076 = vmatmul.mubr.msk.bf16.gmra.mrb[32].mxu1 %vm310_vm1, %v1159_v49  ;;  %4246 = vmatmul.mubr.msk.bf16.gmra.mrb[12].mxu0 %vm310_vm1, %v2779_v32 }
 0x12f   : > { %4101 = vmatprep.mubr.msk.bf16.mxu1 %vm310_vm1, %v1478_v43  ;;  %4249 = vmatprep.mubr.msk.bf16.mxu0 %vm310_vm1, %v2780_v54 }
 0x136   : > { %4102 = vmatmul.mubr.msk.bf16.vlgmr.msra.gmra.mrb[20].mxu1 %vm310_vm1, %v1479_v59  ;;  %4250 = vmatmul.mubr.msk.bf16.gmra.mrb[16].mxu0 %vm310_vm1, %v2781_v6  ;;  %v3179_v59 = vsub.f32 1.0, %v3107_v63  ;;  %v3106_v6 = vld [vmem:[%s5739_s3 + $0x8] sm:$0xff] }
 0x137   : > { %4105 = vmatprep.mubr.msk.bf16.mxu1 %vm310_vm1, %v1480_v41  ;;  %4253 = vmatprep.mubr.msk.bf16.mxu0 %vm310_vm1, %v2782_v9  ;;  %v5335_v9 = vld [vmem:[%s5738_s2] ss:$0 sm:$0xff]  ;;  %v3178_v47 = vsub.f32 1.0, %v3106_v6 }
 0x13e   : > { %4106 = vmatmul.mubr.msk.bf16.gmra.mrb[24].mxu1 %vm310_vm1, %v1481_v17  ;;  %4254 = vmatmul.mubr.msk.bf16.gmra.mrb[20].mxu0 %vm310_vm1, %v2783_v18  ;;  %v3215_v17 = vmul.f32 1e+30, %v3179_v59  ;;  %v3219_v59 = vmul.f32 1e+30, %v3183_v31 }
 0x13f   : > { %4109 = vmatprep.mubr.msk.bf16.mxu1 %vm310_vm1, %v1482_v14  ;;  %4257 = vmatprep.mubr.msk.bf16.mxu0 %vm310_vm1, %v2784_v51 }
 0x146   : > { %4110 = vmatmul.mubr.msk.bf16.gmra.mrb[28].mxu1 %vm310_vm1, %v1483_v24  ;;  %4258 = vmatmul.mubr.msk.bf16.gmra.mrb[24].mxu0 %vm310_vm1, %v2785_v28  ;;  %v3214_v28 = vmul.f32 1e+30, %v3178_v47 }
 0x147   : > { %4113 = vmatprep.mubr.msk.bf16.mxu1 %vm310_vm1, %v1484_v58  ;;  %4261 = vmatprep.mubr.msk.bf16.mxu0 %vm310_vm1, %v2786_v5  ;;  %v3112_v58 = vld [vmem:[%s5739_s3 + $0x38] sm:$0xff] }
 0x148   : > { %v3184_v37 = vsub.f32 1.0, %v3112_v58 }
 0x14a   : > { %v3220_v47 = vmul.f32 1e+30, %v3184_v37 }
 0x14e   : > { %4114 = vmatmul.mubr.msk.bf16.gmra.mrb[32].mxu1 %vm310_vm1, %v1485_v50  ;;  %4262 = vmatmul.mubr.msk.bf16.gmra.mrb[28].mxu0 %vm310_vm1, %v2787_v35  ;;  %v3181_v35 = vsub.f32 1.0, %v3109_v25 }
 0x14f   : > { %4265 = vmatprep.mubr.msk.bf16.mxu0 %vm310_vm1, %v2788_v36  ;;  %v5361_v36 = vld [vmem:[%s5739_s3 + $0x40] sm:$0xff] }
 0x150   : > { %v3185_v7 = vsub.f32 1.0, %v5361_v36 }
 0x156   : > { %4266 = vmatmul.mubr.msk.bf16.gmra.mrb[32].mxu0 %vm310_vm1, %v2789_v33 }
 0x1c1   : > { %v4045_v62 = vpop.f32.mrb[0].mxu1 }
 0x1c2   : > { %v1253_v39 = vpop.f32.mrb[1].mxu1 }
 0x1c3   : > { %v4046_v44 = vpop.f32.mrb[2].mxu1 }
 0x1c4   : > { %v1256_v34 = vpop.f32.mrb[3].mxu1 }
 0x1c9   : > { %v4049_v1 = vpop.f32.mrb[4].mxu1 }
 0x1ca   : > { %v5290_v12 = vpop.f32.mrb[5].mxu1 }
 0x1cb   : > { %v5292_v16 = vpop.f32.mrb[6].mxu1 }
 0x1cc   : > { %v5294_v46 = vpop.f32.mrb[7].mxu1 }
 0x1d1   : > { %v5296_v48 = vpop.f32.mrb[8].mxu1 }
 0x1d2   : > { %v5298_v30 = vpop.f32.mrb[9].mxu1 }
 0x1d3   : > { %v5300_v0 = vpop.f32.mrb[10].mxu1 }
 0x1d4   : > { %v5302_v49 = vpop.f32.mrb[11].mxu1 }
 0x1d9   : > { %v5304_v32 = vpop.f32.mrb[12].mxu1 }
 0x1da   : > { %v5306_v43 = vpop.f32.mrb[13].mxu1 }
 0x1db   : > { %v5308_v54 = vpop.f32.mrb[14].mxu1 }
 0x1dc   : > { %v5310_v55 = vpop.f32.mrb[15].mxu1 }
 0x1e1   : > { %v5312_v45 = vpop.f32.mrb[16].mxu1 }
 0x1e2   : > { %v5314_v60 = vpop.f32.mrb[17].mxu1 }
 0x1e3   : > { %v5316_v57 = vpop.f32.mrb[18].mxu1 }
 0x1e4   : > { %v5318_v61 = vpop.f32.mrb[19].mxu1 }
 0x1e9   : > { %v4235_v41 = vpop.f32.mrb[0].mxu0 }
 0x1ea   : > { %v4271_v10 = vadd.f32 %v4235_v41, %v4045_v62  ;;  %v2883_v11 = vpop.f32.mrb[1].mxu0  ;;  %v5367_v62 = vld [vmem:[%s5739_s3 + $0x58] sm:$0xff] }
 0x1eb   : > { %v4272_v2 = vadd.f32 %v2883_v11, %v1253_v39  ;;  %v4236_v42 = vpop.f32.mrb[2].mxu0  ;;  %v3188_v13 = vsub.f32 1.0, %v5367_v62 }
 0x1ec   : > { %v3071_v15 = vadd.f32 %v4271_v10, %v5335_v9  ;;  %v4273_v18 = vadd.f32 %v4236_v42, %v4046_v44  ;;  %v2886_v14 = vpop.f32.mrb[3].mxu0  ;;  %v3217_v10 = vmul.f32 1e+30, %v3181_v35  ;;  %v5427_v35 = vld [vmem:[%s5739_s3 + $0x80] sm:$0xff] }
 0x1ed   : > { %v3069_v51 = vadd.f32 %v4272_v2, %v5335_v9  ;;  %v4274_v29 = vadd.f32 %v2886_v14, %v1256_v34  ;;  %v5388_v2 = vld [vmem:[%s5739_s3 + $0x70] sm:$0xff] }
 0x1ee   : > { %v3143_v22 = vmul.f32 %v3107_v63, %v3071_v15  ;;  %v3072_v53 = vadd.f32 %v4273_v18, %v5335_v9  ;;  %v3182_v63 = vsub.f32 1.0, %v3110_v26 }
 0x1ef   : > { %v3141_v38 = vmul.f32 %v3105_v3, %v3069_v51  ;;  %v3070_v24 = vadd.f32 %v4274_v29, %v5335_v9  ;;  %v3187_v3 = vsub.f32 1.0, %v5356_v40 }
 0x1f0   : > { %v3251_v5 = vsub.f32 %v3143_v22, %v3215_v17  ;;  %v3144_v19 = vmul.f32 %v3108_v4, %v3072_v53  ;;  %v5395_v17 = vld [vmem:[%s5739_s3 + $0x60] sm:$0xff]  ;;  %v3218_v14 = vmul.f32 1e+30, %v3182_v63  ;;  %v5403_v22 = vmul.f32 1e+30, %v3185_v7 }
 0x1f1   : > { %v3249_v8 = vsub.f32 %v3141_v38, %v3213_v23  ;;  %v3142_v27 = vmul.f32 %v3106_v6, %v3070_v24  ;;  %v4239_v50 = vpop.f32.mrb[4].mxu0  ;;  %v3223_v51 = vmul.f32 1e+30, %v3187_v3  ;;  %v5401_v23 = vld [vmem:[%s5739_s3 + $0x78] sm:$0xff]  ;;  %v3191_v53 = vsub.f32 1.0, %v5388_v2 }
 0x1f2   : > { %3288 = vst.msk [vmem:[#allocation2 + $0x10] sm:$0xff] %vm3285_vm3, %v3251_v5  ;;  %v3252_v52 = vsub.f32 %v3144_v19, %v3216_v56  ;;  %v4275_v20 = vadd.f32 %v4239_v50, %v4049_v1  ;;  %v2899_v33 = vpop.f32.mrb[5].mxu0  ;;  %v5375_v1 = vld [vmem:[%s5739_s3 + $0x48] sm:$0xff]  ;;  %v5416_v5 = vmul.f32 1e+30, %v3188_v13  ;;  %v3192_v50 = vsub.f32 1.0, %v5401_v23 }
 0x1f3   : > { %3286 = vst.msk [vmem:[#allocation2] sm:$0xff] %vm3285_vm3, %v3249_v8  ;;  %v3250_v39 = vsub.f32 %v3142_v27, %v3214_v28  ;;  %v4276_v44 = vadd.f32 %v2899_v33, %v5290_v12  ;;  %v4240_v34 = vpop.f32.mrb[6].mxu0  ;;  %v3186_v15 = vsub.f32 1.0, %v5375_v1  ;;  %v5409_v56 = vld [vmem:[%s5739_s3 + $0x68] sm:$0xff]  ;;  %v5436_v63 = vmul.f32 1e+30, %v3191_v53 }
 0x1f4   : > { %3289 = vst.msk [vmem:[#allocation2 + $0x18] sm:$0xff] %vm3285_vm3, %v3252_v52  ;;  %v3075_v4 = vadd.f32 %v4275_v20, %v5335_v9  ;;  %v4277_v6 = vadd.f32 %v4240_v34, %v5292_v16  ;;  %v2902_v41 = vpop.f32.mrb[7].mxu0  ;;  %v3190_v33 = vsub.f32 1.0, %v5409_v56 }
 0x1f5   : > { %3287 = vst.msk [vmem:[#allocation2 + $0x8] sm:$0xff] %vm3285_vm3, %v3250_v39  ;;  %v3073_v12 = vadd.f32 %v4276_v44, %v5335_v9  ;;  %v4278_v11 = vadd.f32 %v2902_v41, %v5294_v46  ;;  %v5421_v27 = vmul.f32 1e+30, %v3186_v15  ;;  %v5446_v41 = vld [vmem:[%s5739_s3 + $0x98] sm:$0xff] }
 0x1f6   : > { %v3147_v42 = vmul.f32 %v3111_v21, %v3075_v4  ;;  %v3076_v16 = vadd.f32 %v4277_v6, %v5335_v9  ;;  %v3193_v6 = vsub.f32 1.0, %v5427_v35 }
 0x1f7   : > { %v3145_v18 = vmul.f32 %v3109_v25, %v3073_v12  ;;  %v3074_v46 = vadd.f32 %v4278_v11, %v5335_v9  ;;  %v5414_v25 = vld [vmem:[%s5739_s3 + $0x90] sm:$0xff]  ;;  %v5456_v11 = vld [vmem:[%s5739_s3 + $0x88] sm:$0xff] }
 0x1f8   : > { %v3255_v29 = vsub.f32 %v3147_v42, %v3219_v59  ;;  %v3148_v21 = vmul.f32 %v3112_v58, %v3076_v16  ;;  %v3189_v58 = vsub.f32 1.0, %v5395_v17  ;;  %v5459_v42 = vmul.f32 1e+30, %v3190_v33 }
 0x1f9   : > { %v3253_v38 = vsub.f32 %v3145_v18, %v3217_v10  ;;  %v3146_v24 = vmul.f32 %v3110_v26, %v3074_v46  ;;  %v4243_v28 = vpop.f32.mrb[8].mxu0  ;;  %v5451_v10 = vmul.f32 1e+30, %v3192_v50  ;;  %v3196_v46 = vsub.f32 1.0, %v5446_v41 }
 0x1fa   : > { %3292 = vst.msk [vmem:[#allocation2 + $0x30] sm:$0xff] %vm3285_vm3, %v3255_v29  ;;  %v3256_v19 = vsub.f32 %v3148_v21, %v3220_v47  ;;  %v4279_v31 = vadd.f32 %v4243_v28, %v5296_v48  ;;  %v2915_v8 = vpop.f32.mrb[9].mxu0  ;;  %v3195_v48 = vsub.f32 1.0, %v5414_v25  ;;  %v5440_v59 = vmul.f32 1e+30, %v3189_v58 }
 0x1fb   : > { %3290 = vst.msk [vmem:[#allocation2 + $0x20] sm:$0xff] %vm3285_vm3, %v3253_v38  ;;  %v3254_v26 = vsub.f32 %v3146_v24, %v3218_v14  ;;  %v4280_v52 = vadd.f32 %v2915_v8, %v5298_v30  ;;  %v4244_v20 = vpop.f32.mrb[10].mxu0  ;;  %v5477_v53 = vmul.f32 1e+30, %v3193_v6  ;;  %v3194_v38 = vsub.f32 1.0, %v5456_v11 }
 0x1fc   : > { %v3336_v37 = vld [vmem:[#allocation2] ss:$2 sm:$0xff]  ;;  %v3338_v39 = vld [vmem:[#allocation2 + $0x1] ss:$2 sm:$0xff]  ;;  %3293 = vst.msk [vmem:[#allocation2 + $0x38] sm:$0xff] %vm3285_vm3, %v3256_v19  ;;  %v3079_v44 = vadd.f32 %v4279_v31, %v5335_v9  ;;  %v4281_v34 = vadd.f32 %v4244_v20, %v5300_v0  ;;  %v2918_v4 = vpop.f32.mrb[11].mxu0 }
 0x1fd   : > { %v3339_v3 = vmax.f32 %v3336_v37, %v3338_v39  ;;  %3291 = vst.msk [vmem:[#allocation2 + $0x28] sm:$0xff] %vm3285_vm3, %v3254_v26  ;;  %v3077_v30 = vadd.f32 %v4280_v52, %v5335_v9  ;;  %v4282_v12 = vadd.f32 %v2918_v4, %v5302_v49  ;;  %v5461_v16 = vmul.f32 1e+30, %v3195_v48  ;;  %v3341_v47 = vld [vmem:[#allocation2 + $0x2] ss:$2 sm:$0xff] }
 0x1fe   : > { %v3151_v7 = vmul.f32 %v5356_v40, %v3079_v44  ;;  %v3080_v0 = vadd.f32 %v4281_v34, %v5335_v9  ;;  %v5466_v40 = vld [vmem:[%s5739_s3 + $0xb0] sm:$0xff]  ;;  %v5495_v52 = vmul.f32 1e+30, %v3196_v46  ;;  %v5500_v20 = vld [vmem:[%s5739_s3 + $0xa8] sm:$0xff]  ;;  %v5502_v39 = vmul.f32 1e+30, %v3194_v38 }
 0x1ff   : > { %v3149_v13 = vmul.f32 %v5361_v36, %v3077_v30  ;;  %v3078_v18 = vadd.f32 %v4282_v12, %v5335_v9  ;;  %v5474_v36 = vld [vmem:[%s5739_s3 + $0xa0] sm:$0xff]  ;;  %v3342_v14 = vmax.f32 %v3339_v3, %v3341_v47  ;;  %v3199_v58 = vsub.f32 1.0, %v5466_v40 }
 0x200   : > { %v3259_v49 = vsub.f32 %v3151_v7, %v3223_v51  ;;  %v3152_v15 = vmul.f32 %v5367_v62, %v3080_v0  ;;  %v3197_v50 = vsub.f32 1.0, %v5474_v36 }
 0x201   : > { %v3257_v29 = vsub.f32 %v3149_v13, %v5403_v22  ;;  %v4247_v21 = vpop.f32.mrb[12].mxu0  ;;  %v3150_v24 = vmul.f32 %v5375_v1, %v3078_v18  ;;  %v5488_v22 = vld [vmem:[%s5739_s3 + $0xb8] sm:$0xff]  ;;  %v5508_v6 = vmul.f32 1e+30, %v3199_v58 }
 0x202   : > { %v3344_v51 = vld [vmem:[#allocation2 + $0x12] ss:$2 sm:$0xff]  ;;  %3296 = vst.msk [vmem:[#allocation2 + $0x50] sm:$0xff] %vm3285_vm3, %v3259_v49  ;;  %v3260_v62 = vsub.f32 %v3152_v15, %v5416_v5  ;;  %v4283_v28 = vadd.f32 %v4247_v21, %v5304_v32  ;;  %v3354_v8 = vld [vmem:[#allocation2 + $0x13] ss:$2 sm:$0xff]  ;;  %v2931_v37 = vpop.f32.mrb[13].mxu0 }
 0x203   : > { %v3345_v19 = vmax.f32 %v3342_v14, %v3344_v51  ;;  %v3353_v31 = vld [vmem:[#allocation2 + $0x12] ss:$2 sm:$0xff]  ;;  %3294 = vst.msk [vmem:[#allocation2 + $0x40] sm:$0xff] %vm3285_vm3, %v3257_v29  ;;  %v3347_v26 = vld [vmem:[#allocation2 + $0x13] ss:$2 sm:$0xff]  ;;  %v3258_v32 = vsub.f32 %v3150_v24, %v5421_v27  ;;  %v3200_v44 = vsub.f32 1.0, %v5488_v22  ;;  %v4284_v30 = vadd.f32 %v2931_v37, %v5306_v43 }
 0x204   : > { %v3355_v5 = vmax.f32 %v3353_v31, %v3354_v8  ;;  %3297 = vst.msk [vmem:[#allocation2 + $0x58] sm:$0xff] %vm3285_vm3, %v3260_v62  ;;  %v3083_v1 = vadd.f32 %v4283_v28, %v5335_v9  ;;  %v3356_v48 = vld [vmem:[#allocation2 + $0x14] ss:$2 sm:$0xff]  ;;  %v4248_v4 = vpop.f32.mrb[14].mxu0  ;;  %v3359_v0 = vld [vmem:[#allocation2 + $0x24] ss:$2 sm:$0xff] }
 0x205   : > { %v3348_v33 = vmax.f32 %v3345_v19, %v3347_v26  ;;  %v3350_v34 = vld [vmem:[#allocation2 + $0x14] ss:$2 sm:$0xff]  ;;  %3295 = vst.msk [vmem:[#allocation2 + $0x48] sm:$0xff] %vm3285_vm3, %v3258_v32  ;;  %v4285_v12 = vadd.f32 %v4248_v4, %v5308_v54  ;;  %v2934_v13 = vpop.f32.mrb[15].mxu0  ;;  %v5511_v47 = vmul.f32 1e+30, %v3197_v50  ;;  %v3081_v46 = vadd.f32 %v4284_v30, %v5335_v9 }
 0x206   : > { %v3357_v3 = vmax.f32 %v3355_v5, %v3356_v48  ;;  %v3155_v27 = vmul.f32 %v5388_v2, %v3083_v1  ;;  %v3198_v49 = vsub.f32 1.0, %v5500_v20  ;;  %v4286_v2 = vadd.f32 %v2934_v13, %v5310_v55  ;;  %v3362_v14 = vld [vmem:[#allocation2 + $0x25] ss:$2 sm:$0xff]  ;;  %v3365_v24 = vld [vmem:[#allocation2 + $0x26] ss:$2 sm:$0xff] }
 0x207   : > { %v3351_v7 = vmax.f32 %v3348_v33, %v3350_v34  ;;  %v3084_v29 = vadd.f32 %v4285_v12, %v5335_v9  ;;  %v5522_v38 = vmul.f32 1e+30, %v3200_v44 }
 0x208   : > { %v3360_v15 = vmax.f32 %v3357_v3, %v3359_v0  ;;  %v3263_v18 = vsub.f32 %v3155_v27, %v5436_v63  ;;  %v3153_v63 = vmul.f32 %v5395_v17, %v3081_v46  ;;  %v3082_v62 = vadd.f32 %v4286_v2, %v5335_v9  ;;  %v5534_v17 = vld [vmem:[%s5739_s3 + $0xd0] sm:$0xff] }
 0x209   : > { %v4103_v43 = vpop.f32.mrb[20].mxu1  ;;  %3352 = vst.msk [vmem:[%s5263_s18 + $0xc] sm:$0xff] %vm3285_vm3, %v3351_v7  ;;  %v4251_v21 = vpop.f32.mrb[16].mxu0  ;;  %v3156_v19 = vmul.f32 %v5401_v23, %v3084_v29  ;;  %v5546_v27 = vmul.f32 1e+30, %v3198_v49  ;;  %v3203_v12 = vsub.f32 1.0, %v5534_v17 }
 0x20a   : > { %v5520_v54 = vpop.f32.mrb[21].mxu1  ;;  %v3363_v51 = vmax.f32 %v3360_v15, %v3362_v14  ;;  %3300 = vst.msk [vmem:[#allocation2 + $0x70] sm:$0xff] %vm3285_vm3, %v3263_v18  ;;  %v4287_v55 = vadd.f32 %v4251_v21, %v5312_v45  ;;  %v3377_v28 = vld [vmem:[#allocation2 + $0x36] ss:$2 sm:$0xff]  ;;  %v3378_v58 = vld [vmem:[#allocation2 + $0x37] ss:$2 sm:$0xff]  ;;  %v3261_v50 = vsub.f32 %v3153_v63, %v5440_v59  ;;  %v3154_v26 = vmul.f32 %v5409_v56, %v3082_v62 }
 0x20b   : > { %v3379_v8 = vmax.f32 %v3377_v28, %v3378_v58  ;;  %v2947_v5 = vpop.f32.mrb[17].mxu0  ;;  %v4104_v32 = vpop.f32.mrb[22].mxu1  ;;  %v3368_v1 = vld [vmem:[#allocation2 + $0x36] ss:$2 sm:$0xff]  ;;  %v3264_v33 = vsub.f32 %v3156_v19, %v5451_v10  ;;  %v3371_v10 = vld [vmem:[#allocation2 + $0x37] ss:$2 sm:$0xff] }
 0x20c   : > { %v3366_v31 = vmax.f32 %v3363_v51, %v3365_v24  ;;  %v3380_v45 = vld [vmem:[#allocation2 + $0x38] ss:$2 sm:$0xff]  ;;  %v3087_v48 = vadd.f32 %v4287_v55, %v5335_v9  ;;  %v4288_v23 = vadd.f32 %v2947_v5, %v5314_v60  ;;  %3298 = vst.msk [vmem:[#allocation2 + $0x60] sm:$0xff] %vm3285_vm3, %v3261_v50  ;;  %v3262_v44 = vsub.f32 %v3154_v26, %v5459_v42  ;;  %v4252_v34 = vpop.f32.mrb[18].mxu0  ;;  %v1662_v3 = vpop.f32.mrb[23].mxu1 }
 0x20d   : > { %v5542_v59 = vld [vmem:[%s5739_s3 + $0xc0] sm:$0xff]  ;;  %v3381_v37 = vmax.f32 %v3379_v8, %v3380_v45  ;;  %v3383_v30 = vld [vmem:[#allocation2 + $0x48] ss:$2 sm:$0xff]  ;;  %3301 = vst.msk [vmem:[#allocation2 + $0x78] sm:$0xff] %vm3285_vm3, %v3264_v33  ;;  %v4289_v7 = vadd.f32 %v4252_v34, %v5316_v57  ;;  %v2950_v0 = vpop.f32.mrb[19].mxu0 }
 0x20e   : > { %v3369_v56 = vmax.f32 %v3366_v31, %v3368_v1  ;;  %v3159_v60 = vmul.f32 %v5414_v25, %v3087_v48  ;;  %v3085_v4 = vadd.f32 %v4288_v23, %v5335_v9  ;;  %3299 = vst.msk [vmem:[#allocation2 + $0x68] sm:$0xff] %vm3285_vm3, %v3262_v44  ;;  %v4290_v42 = vadd.f32 %v2950_v0, %v5318_v61  ;;  %v5561_v25 = vld [vmem:[%s5739_s3 + $0xd8] sm:$0xff]  ;;  %v3386_v57 = vld [vmem:[#allocation2 + $0x49] ss:$2 sm:$0xff] }
 0x20f   : > { %v3384_v15 = vmax.f32 %v3381_v37, %v3383_v30  ;;  %v3201_v18 = vsub.f32 1.0, %v5542_v59  ;;  %v3374_v46 = vld [vmem:[#allocation2 + $0x38] ss:$2 sm:$0xff]  ;;  %v3088_v29 = vadd.f32 %v4289_v7, %v5335_v9  ;;  %v3204_v50 = vsub.f32 1.0, %v5561_v25  ;;  %v5590_v48 = vld [vmem:[%s5739_s3 + $0xc8] sm:$0xff] }
 0x210   : > { %v3372_v13 = vmax.f32 %v3369_v56, %v3371_v10  ;;  %v3267_v2 = vsub.f32 %v3159_v60, %v5461_v16  ;;  %v3157_v14 = vmul.f32 %v5427_v35, %v3085_v4  ;;  %v3086_v62 = vadd.f32 %v4290_v42, %v5335_v9  ;;  %v3389_v58 = vld [vmem:[#allocation2 + $0x4a] ss:$2 sm:$0xff] }
 0x211   : > { %v5555_v49 = vpop.f32.mrb[24].mxu1  ;;  %v4255_v21 = vpop.f32.mrb[20].mxu0  ;;  %v3387_v63 = vmax.f32 %v3384_v15, %v3386_v57  ;;  %v3160_v35 = vmul.f32 %v5446_v41, %v3088_v29  ;;  %v5585_v33 = vmul.f32 1e+30, %v3203_v12  ;;  %v5595_v56 = vmul.f32 1e+30, %v3201_v18 }
 0x212   : > { %v5566_v61 = vpop.f32.mrb[25].mxu1  ;;  %v3375_v51 = vmax.f32 %v3372_v13, %v3374_v46  ;;  %v4291_v55 = vadd.f32 %v4255_v21, %v4103_v43  ;;  %v2963_v24 = vpop.f32.mrb[21].mxu0  ;;  %3304 = vst.msk [vmem:[#allocation2 + $0x90] sm:$0xff] %vm3285_vm3, %v3267_v2  ;;  %v3265_v16 = vsub.f32 %v3157_v14, %v5477_v53  ;;  %v3158_v26 = vmul.f32 %v5456_v11, %v3086_v62  ;;  %v5619_v7 = vld [vmem:[%s5739_s3 + $0xf8] sm:$0xff] }
 0x213   : > { %v5569_v28 = vpop.f32.mrb[26].mxu1  ;;  %v4292_v19 = vadd.f32 %v2963_v24, %v5520_v54  ;;  %v4256_v31 = vpop.f32.mrb[22].mxu0  ;;  %v3390_v43 = vmax.f32 %v3387_v63, %v3389_v58  ;;  %v3268_v41 = vsub.f32 %v3160_v35, %v5495_v52  ;;  %v5600_v52 = vld [vmem:[%s5739_s3 + $0xf0] sm:$0xff]  ;;  %v3208_v63 = vsub.f32 1.0, %v5619_v7 }
 0x214   : > { %v5575_v8 = vpop.f32.mrb[27].mxu1  ;;  %3376 = vst.msk [vmem:[%s5263_s18 + $0x16] sm:$0xff] %vm3285_vm3, %v3375_v51  ;;  %v3091_v5 = vadd.f32 %v4291_v55, %v5335_v9  ;;  %v4293_v1 = vadd.f32 %v4256_v31, %v4104_v32  ;;  %v2966_v45 = vpop.f32.mrb[23].mxu0  ;;  %3302 = vst.msk [vmem:[#allocation2 + $0x80] sm:$0xff] %vm3285_vm3, %v3265_v16  ;;  %v3266_v11 = vsub.f32 %v3158_v26, %v5502_v39  ;;  %v3207_v42 = vsub.f32 1.0, %v5600_v52 }
 0x215   : > { %v3089_v53 = vadd.f32 %v4292_v19, %v5335_v9  ;;  %v4294_v54 = vadd.f32 %v2966_v45, %v1662_v3  ;;  %v3392_v37 = vld [vmem:[#allocation2 + $0x5a] ss:$2 sm:$0xff]  ;;  %3305 = vst.msk [vmem:[#allocation2 + $0x98] sm:$0xff] %vm3285_vm3, %v3268_v41  ;;  %v5605_v3 = vmul.f32 1e+30, %v3204_v50 }
 0x216   : > { %v3163_v23 = vmul.f32 %v5466_v40, %v3091_v5  ;;  %v3092_v32 = vadd.f32 %v4293_v1, %v5335_v9  ;;  %v5610_v40 = vld [vmem:[%s5739_s3 + $0xe0] sm:$0xff]  ;;  %v3393_v39 = vmax.f32 %v3390_v43, %v3392_v37  ;;  %3303 = vst.msk [vmem:[#allocation2 + $0x88] sm:$0xff] %vm3285_vm3, %v3266_v11  ;;  %v3407_v55 = vld [vmem:[#allocation2 + $0x6c] ss:$2 sm:$0xff]  ;;  %v5645_v43 = vmul.f32 1e+30, %v3207_v42 }
 0x217   : > { %v3161_v44 = vmul.f32 %v5474_v36, %v3089_v53  ;;  %v3090_v34 = vadd.f32 %v4294_v54, %v5335_v9  ;;  %v3401_v10 = vld [vmem:[#allocation2 + $0x5a] ss:$2 sm:$0xff]  ;;  %v3402_v30 = vld [vmem:[#allocation2 + $0x5b] ss:$2 sm:$0xff]  ;;  %v3202_v36 = vsub.f32 1.0, %v5590_v48  ;;  %v3205_v2 = vsub.f32 1.0, %v5610_v40 }
 0x218   : > { %v3271_v60 = vsub.f32 %v3163_v23, %v5508_v6  ;;  %v3164_v4 = vmul.f32 %v5488_v22, %v3092_v32  ;;  %v3395_v0 = vld [vmem:[#allocation2 + $0x5b] ss:$2 sm:$0xff]  ;;  %v3403_v12 = vmax.f32 %v3401_v10, %v3402_v30  ;;  %v3404_v46 = vld [vmem:[#allocation2 + $0x5c] ss:$2 sm:$0xff]  ;;  %v5656_v54 = vmul.f32 1e+30, %v3208_v63 }
 0x219   : > { %v3269_v13 = vsub.f32 %v3161_v44, %v5511_v47  ;;  %v3162_v15 = vmul.f32 %v5500_v20, %v3090_v34  ;;  %v3396_v18 = vmax.f32 %v3393_v39, %v3395_v0  ;;  %v4111_v6 = vpop.f32.mrb[28].mxu1  ;;  %v4259_v57 = vpop.f32.mrb[24].mxu0  ;;  %v3398_v14 = vld [vmem:[#allocation2 + $0x5c] ss:$2 sm:$0xff]  ;;  %v5638_v16 = vmul.f32 1e+30, %v3202_v36 }
 0x21a   : > { %3308 = vst.msk [vmem:[#allocation2 + $0xb0] sm:$0xff] %vm3285_vm3, %v3271_v60  ;;  %v3272_v22 = vsub.f32 %v3164_v4, %v5522_v38  ;;  %v3405_v29 = vmax.f32 %v3403_v12, %v3404_v46  ;;  %v4295_v20 = vadd.f32 %v4259_v57, %v5555_v49  ;;  %v1691_v21 = vpop.f32.mrb[29].mxu1  ;;  %v2979_v51 = vpop.f32.mrb[25].mxu0  ;;  %v5634_v38 = vld [vmem:[%s5739_s3 + $0xe8] sm:$0xff]  ;;  %v5651_v1 = vmul.f32 1e+30, %v3205_v2 }
 0x21b   : > { %3306 = vst.msk [vmem:[#allocation2 + $0xa0] sm:$0xff] %vm3285_vm3, %v3269_v13  ;;  %v3270_v47 = vsub.f32 %v3162_v15, %v5546_v27  ;;  %v3399_v62 = vmax.f32 %v3396_v18, %v3398_v14  ;;  %v4296_v24 = vadd.f32 %v2979_v51, %v5566_v61  ;;  %v4112_v58 = vpop.f32.mrb[30].mxu1  ;;  %v4260_v27 = vpop.f32.mrb[26].mxu0  ;;  %v3410_v26 = vld [vmem:[#allocation2 + $0x6d] ss:$2 sm:$0xff]  ;;  %v3206_v45 = vsub.f32 1.0, %v5634_v38 }
 0x21c   : > { %3309 = vst.msk [vmem:[#allocation2 + $0xb8] sm:$0xff] %vm3285_vm3, %v3272_v22  ;;  %v3408_v49 = vmax.f32 %v3405_v29, %v3407_v55  ;;  %v3095_v35 = vadd.f32 %v4295_v20, %v5335_v9  ;;  %v4297_v19 = vadd.f32 %v4260_v27, %v5569_v28  ;;  %v5643_v31 = vpop.f32.mrb[31].mxu1  ;;  %v2982_v50 = vpop.f32.mrb[27].mxu0  ;;  %v3413_v11 = vld [vmem:[#allocation2 + $0x6e] ss:$2 sm:$0xff]  ;;  %v5670_v4 = vld [vmem:[%s5739_s3 + $0x100] sm:$0xff] }
 0x21d   : > { %3307 = vst.msk [vmem:[#allocation2 + $0xa8] sm:$0xff] %vm3285_vm3, %v3270_v47  ;;  %3400 = vst.msk [vmem:[%s5263_s18 + $0x20] sm:$0xff] %vm3285_vm3, %v3399_v62  ;;  %v3093_v61 = vadd.f32 %v4296_v24, %v5335_v9  ;;  %v4298_v5 = vadd.f32 %v2982_v50, %v5575_v8  ;;  %v3425_v23 = vld [vmem:[#allocation2 + $0x7e] ss:$2 sm:$0xff]  ;;  %v3426_v32 = vld [vmem:[#allocation2 + $0x7f] ss:$2 sm:$0xff] }
 0x21e   : > { %v3411_v41 = vmax.f32 %v3408_v49, %v3410_v26  ;;  %v3167_v53 = vmul.f32 %v5534_v17, %v3095_v35  ;;  %v3096_v28 = vadd.f32 %v4297_v19, %v5335_v9  ;;  %v3427_v8 = vmax.f32 %v3425_v23, %v3426_v32  ;;  %v5665_v17 = vld [vmem:[%s5739_s3 + $0x110] sm:$0xff]  ;;  %v3428_v36 = vld [vmem:[#allocation2 + $0x80] ss:$2 sm:$0xff]  ;;  %v3419_v14 = vld [vmem:[#allocation2 + $0x7f] ss:$2 sm:$0xff] }
 0x21f   : > { %v3165_v37 = vmul.f32 %v5542_v59, %v3093_v61  ;;  %v3094_v44 = vadd.f32 %v4298_v5, %v5335_v9  ;;  %v3416_v59 = vld [vmem:[#allocation2 + $0x7e] ss:$2 sm:$0xff]  ;;  %v3211_v29 = vsub.f32 1.0, %v5665_v17  ;;  %v3434_v55 = vld [vmem:[#allocation2 + $0x91] ss:$2 sm:$0xff] }
 0x220   : > { %v3414_v34 = vmax.f32 %v3411_v41, %v3413_v11  ;;  %v3275_v39 = vsub.f32 %v3167_v53, %v5585_v33  ;;  %v3168_v10 = vmul.f32 %v5561_v25, %v3096_v28  ;;  %v3429_v42 = vmax.f32 %v3427_v8, %v3428_v36  ;;  %v3431_v2 = vld [vmem:[#allocation2 + $0x90] ss:$2 sm:$0xff]  ;;  %v3422_v24 = vld [vmem:[#allocation2 + $0x80] ss:$2 sm:$0xff] }
 0x221   : > { %v4115_v30 = vpop.f32.mrb[32].mxu1  ;;  %v4263_v60 = vpop.f32.mrb[28].mxu0  ;;  %v3273_v0 = vsub.f32 %v3165_v37, %v5595_v56  ;;  %v3166_v33 = vmul.f32 %v5590_v48, %v3094_v44  ;;  %v5688_v62 = vld [vmem:[%s5739_s3 + $0x118] sm:$0xff]  ;;  %v3247_v8 = vmul.f32 1e+30, %v3211_v29 }
 0x222   : > { %v4299_v12 = vadd.f32 %v4263_v60, %v4111_v6  ;;  %v1707_v25 = vpop.f32.mrb[33].mxu1  ;;  %v2995_v13 = vpop.f32.mrb[29].mxu0  ;;  %v3417_v15 = vmax.f32 %v3414_v34, %v3416_v59  ;;  %3312 = vst.msk [vmem:[#allocation2 + $0xd0] sm:$0xff] %vm3285_vm3, %v3275_v39  ;;  %v3276_v18 = vsub.f32 %v3168_v10, %v5605_v3  ;;  %v3432_v20 = vmax.f32 %v3429_v42, %v3431_v2  ;;  %v3437_v5 = vld [vmem:[#allocation2 + $0x92] ss:$2 sm:$0xff] }
 0x223   : > { %v4300_v46 = vadd.f32 %v2995_v13, %v1691_v21  ;;  %v5676_v22 = vpop.f32.mrb[34].mxu1  ;;  %v4264_v57 = vpop.f32.mrb[30].mxu0  ;;  %3310 = vst.msk [vmem:[#allocation2 + $0xc0] sm:$0xff] %vm3285_vm3, %v3273_v0  ;;  %v3274_v56 = vsub.f32 %v3166_v33, %v5638_v16  ;;  %v3209_v21 = vsub.f32 1.0, %v5670_v4  ;;  %v3212_v28 = vsub.f32 1.0, %v5688_v62 }
 0x224   : > { %v3099_v48 = vadd.f32 %v4299_v12, %v5335_v9  ;;  %v4301_v6 = vadd.f32 %v4264_v57, %v4112_v58  ;;  %v3420_v47 = vmax.f32 %v3417_v15, %v3419_v14  ;;  %v3449_v51 = vld [vmem:[#allocation2 + $0xa2] ss:$2 sm:$0xff]  ;;  %v3450_v63 = vld [vmem:[#allocation2 + $0xa3] ss:$2 sm:$0xff]  ;;  %3313 = vst.msk [vmem:[#allocation2 + $0xd8] sm:$0xff] %vm3285_vm3, %v3276_v18  ;;  %v1710_v49 = vpop.f32.mrb[35].mxu1  ;;  %v3435_v50 = vmax.f32 %v3432_v20, %v3434_v55 }
 0x225   : > { %v3097_v3 = vadd.f32 %v4300_v46, %v5335_v9  ;;  %v3451_v58 = vmax.f32 %v3449_v51, %v3450_v63  ;;  %3311 = vst.msk [vmem:[#allocation2 + $0xc8] sm:$0xff] %vm3285_vm3, %v3274_v56  ;;  %v2998_v35 = vpop.f32.mrb[31].mxu0  ;;  %v3452_v11 = vld [vmem:[#allocation2 + $0xa4] ss:$2 sm:$0xff]  ;;  %v3245_v59 = vmul.f32 1e+30, %v3209_v21 }
 0x226   : > { %v3171_v27 = vmul.f32 %v5600_v52, %v3099_v48  ;;  %v3100_v16 = vadd.f32 %v4301_v6, %v5335_v9  ;;  %v3423_v19 = vmax.f32 %v3420_v47, %v3422_v24  ;;  %v4302_v61 = vadd.f32 %v2998_v35, %v5643_v31  ;;  %v3138_v31 = vld [vmem:[%s5739_s3 + $0x108] sm:$0xff] }
 0x227   : > { %v3169_v26 = vmul.f32 %v5610_v40, %v3097_v3  ;;  %v3438_v52 = vmax.f32 %v3435_v50, %v3437_v5  ;;  %v3242_v40 = vmul.f32 1e+30, %v3206_v45  ;;  %v3443_v36 = vld [vmem:[#allocation2 + $0xa3] ss:$2 sm:$0xff]  ;;  %v3248_v13 = vmul.f32 1e+30, %v3212_v28 }
 0x228   : > { %v3279_v41 = vsub.f32 %v3171_v27, %v5645_v43  ;;  %v3172_v53 = vmul.f32 %v5619_v7, %v3100_v16  ;;  %3424 = vst.msk [vmem:[%s5263_s18 + $0x2a] sm:$0xff] %vm3285_vm3, %v3423_v19  ;;  %v3098_v32 = vadd.f32 %v4302_v61, %v5335_v9  ;;  %v3440_v43 = vld [vmem:[#allocation2 + $0xa2] ss:$2 sm:$0xff]  ;;  %v3453_v7 = vmax.f32 %v3451_v58, %v3452_v11 }
 0x229   : > { %v3277_v23 = vsub.f32 %v3169_v26, %v5651_v1  ;;  %v4267_v37 = vpop.f32.mrb[32].mxu0  ;;  %v3441_v1 = vmax.f32 %v3438_v52, %v3440_v43  ;;  %v3446_v57 = vld [vmem:[#allocation2 + $0xa4] ss:$2 sm:$0xff] }
 0x22a   : > { %3316 = vst.msk [vmem:[#allocation2 + $0xf0] sm:$0xff] %vm3285_vm3, %v3279_v41  ;;  %v3280_v44 = vsub.f32 %v3172_v53, %v5656_v54  ;;  %v4303_v34 = vadd.f32 %v4267_v37, %v4115_v30  ;;  %v3011_v39 = vpop.f32.mrb[33].mxu0  ;;  %v3455_v10 = vld [vmem:[#allocation2 + $0xb4] ss:$2 sm:$0xff]  ;;  %v3170_v45 = vmul.f32 %v5634_v38, %v3098_v32  ;;  %v3210_v54 = vsub.f32 1.0, %v3138_v31 }
 0x22b   : > { %3314 = vst.msk [vmem:[#allocation2 + $0xe0] sm:$0xff] %vm3285_vm3, %v3277_v23  ;;  %v4304_v60 = vadd.f32 %v3011_v39, %v1707_v25  ;;  %v3456_v0 = vmax.f32 %v3453_v7, %v3455_v10  ;;  %v4268_v12 = vpop.f32.mrb[34].mxu0  ;;  %v3444_v30 = vmax.f32 %v3441_v1, %v3443_v36  ;;  %v3458_v15 = vld [vmem:[#allocation2 + $0xb5] ss:$2 sm:$0xff]  ;;  %v3461_v48 = vld [vmem:[#allocation2 + $0xb6] ss:$2 sm:$0xff] }
 0x22c   : > { %3317 = vst.msk [vmem:[#allocation2 + $0xf8] sm:$0xff] %vm3285_vm3, %v3280_v44  ;;  %v3103_v33 = vadd.f32 %v4303_v34, %v5335_v9  ;;  %v3278_v42 = vsub.f32 %v3170_v45, %v3242_v40  ;;  %v4305_v46 = vadd.f32 %v4268_v12, %v5676_v22  ;;  %v3473_v25 = vld [vmem:[#allocation2 + $0xc6] ss:$2 sm:$0xff]  ;;  %v3474_v2 = vld [vmem:[#allocation2 + $0xc7] ss:$2 sm:$0xff]  ;;  %v3014_v20 = vpop.f32.mrb[35].mxu0 }
 0x22d   : > { %v3101_v18 = vadd.f32 %v4304_v60, %v5335_v9  ;;  %v3459_v38 = vmax.f32 %v3456_v0, %v3458_v15  ;;  %v3447_v56 = vmax.f32 %v3444_v30, %v3446_v57  ;;  %v3475_v6 = vmax.f32 %v3473_v25, %v3474_v2  ;;  %v3476_v63 = vld [vmem:[#allocation2 + $0xc8] ss:$2 sm:$0xff]  ;;  %v3467_v35 = vld [vmem:[#allocation2 + $0xc7] ss:$2 sm:$0xff] }
 0x22e   : > { %v3175_v14 = vmul.f32 %v5665_v17, %v3103_v33  ;;  %3315 = vst.msk [vmem:[#allocation2 + $0xe8] sm:$0xff] %vm3285_vm3, %v3278_v42  ;;  %v3104_v47 = vadd.f32 %v4305_v46, %v5335_v9  ;;  %v4306_v3 = vadd.f32 %v3014_v20, %v1710_v49  ;;  %v3464_v21 = vld [vmem:[#allocation2 + $0xc6] ss:$2 sm:$0xff]  ;;  %v3246_v16 = vmul.f32 1e+30, %v3210_v54 }
 0x22f   : > { %v3173_v29 = vmul.f32 %v5670_v4, %v3101_v18  ;;  %v3462_v51 = vmax.f32 %v3459_v38, %v3461_v48  ;;  %3448 = vst.msk [vmem:[%s5263_s18 + $0x34] sm:$0xff] %vm3285_vm3, %v3447_v56  ;;  %v3477_v55 = vmax.f32 %v3475_v6, %v3476_v63  ;;  %v3470_v5 = vld [vmem:[#allocation2 + $0xc8] ss:$2 sm:$0xff] }
 0x230   : > { %v3283_v22 = vsub.f32 %v3175_v14, %v3247_v8  ;;  %v3176_v17 = vmul.f32 %v5688_v62, %v3104_v47  ;;  %v3102_v4 = vadd.f32 %v4306_v3, %v5335_v9 }
 0x231   : > { %v3281_v24 = vsub.f32 %v3173_v29, %v3245_v59  ;;  %v3465_v58 = vmax.f32 %v3462_v51, %v3464_v21 }
 0x232   : > { %v3479_v27 = vld [vmem:[#allocation2 + $0xd8] ss:$2 sm:$0xff]  ;;  %3320 = vst.msk [vmem:[#allocation2 + $0x110] sm:$0xff] %vm3285_vm3, %v3283_v22  ;;  %v3284_v49 = vsub.f32 %v3176_v17, %v3248_v13  ;;  %v3482_v26 = vld [vmem:[#allocation2 + $0xd9] ss:$2 sm:$0xff]  ;;  %v3174_v61 = vmul.f32 %v3138_v31, %v3102_v4 }
 0x233   : > { %v3480_v19 = vmax.f32 %v3477_v55, %v3479_v27  ;;  %3318 = vst.msk [vmem:[#allocation2 + $0x100] sm:$0xff] %vm3285_vm3, %v3281_v24  ;;  %v3468_v50 = vmax.f32 %v3465_v58, %v3467_v35 }
 0x234   : > { %3321 = vst.msk [vmem:[#allocation2 + $0x118] sm:$0xff] %vm3285_vm3, %v3284_v49  ;;  %v3282_v28 = vsub.f32 %v3174_v61, %v3246_v16 }
 0x235   : > { %v3483_v41 = vmax.f32 %v3480_v19, %v3482_v26  ;;  %v3471_v62 = vmax.f32 %v3468_v50, %v3470_v5  ;;  %v3485_v53 = vld [vmem:[#allocation2 + $0xda] ss:$2 sm:$0xff]  ;;  %v3497_v9 = vld [vmem:[#allocation2 + $0xea] ss:$2 sm:$0xff]  ;;  %v3498_v11 = vld [vmem:[#allocation2 + $0xeb] ss:$2 sm:$0xff] }
 0x236   : > { %v3488_v23 = vld [vmem:[#allocation2 + $0xea] ss:$2 sm:$0xff]  ;;  %3319 = vst.msk [vmem:[#allocation2 + $0x108] sm:$0xff] %vm3285_vm3, %v3282_v28  ;;  %v3491_v40 = vld [vmem:[#allocation2 + $0xeb] ss:$2 sm:$0xff]  ;;  %v3499_v37 = vmax.f32 %v3497_v9, %v3498_v11 }
 0x237   : > { %v3486_v52 = vmax.f32 %v3483_v41, %v3485_v53  ;;  %3472 = vst.msk [vmem:[%s5263_s18 + $0x3e] sm:$0xff] %vm3285_vm3, %v3471_v62  ;;  %v3494_v43 = vld [vmem:[#allocation2 + $0xec] ss:$2 sm:$0xff] }
 0x238   : > { %v3500_v44 = vld [vmem:[#allocation2 + $0xec] ss:$2 sm:$0xff] }
 0x239   : > { %v3489_v32 = vmax.f32 %v3486_v52, %v3488_v23  ;;  %v3501_v34 = vmax.f32 %v3499_v37, %v3500_v44 }
 0x23b   : > { %v3492_v31 = vmax.f32 %v3489_v32, %v3491_v40  ;;  %v3518_v12 = vld [vmem:[#allocation2 + $0x110] ss:$2 sm:$0xff] }
 0x23d   : > { %v3495_v7 = vmax.f32 %v3492_v31, %v3494_v43  ;;  %v3503_v8 = vld [vmem:[#allocation2 + $0xfc] ss:$2 sm:$0xff]  ;;  %v3506_v1 = vld [vmem:[#allocation2 + $0xfd] ss:$2 sm:$0xff] }
 0x23e   : > { %v3504_v39 = vmax.f32 %v3501_v34, %v3503_v8  ;;  %v3509_v45 = vld [vmem:[#allocation2 + $0xfe] ss:$2 sm:$0xff]  ;;  %v3512_v59 = vld [vmem:[#allocation2 + $0x10e] ss:$2 sm:$0xff]  ;;  %v3515_v0 = vld [vmem:[#allocation2 + $0x10f] ss:$2 sm:$0xff] }
 0x23f   : > { %3496 = vst.msk [vmem:[%s5263_s18 + $0x48] sm:$0xff] %vm3285_vm3, %v3495_v7 }
 0x240   : > { %v3507_v10 = vmax.f32 %v3504_v39, %v3506_v1 }
 0x242   : > { %v3510_v60 = vmax.f32 %v3507_v10, %v3509_v45 }
 0x244   : > { %v3513_v36 = vmax.f32 %v3510_v60, %v3512_v59 }
 0x246   : > { %v3516_v33 = vmax.f32 %v3513_v36, %v3515_v0 }
 0x248   : > { %v3519_v13 = vmax.f32 %v3516_v33, %v3518_v12 }
 0x24a   : > { %3520 = vst.msk [vmem:[%s5263_s18 + $0x52] sm:$0xff] %vm3285_vm3, %v3519_v13 }
 0x24b PF: > { %s14_s15 = sadd.s32 1, %s4586_s15  }
 0x24c   : > { %p11_p4 = scmp.ge.s32.totalorder %s14_s15, 4  }
 0x24e   :  { %13 = sbr.rel (!%p11_p4) target bundleno = 1 (0x1), region = 121 }

</bundles_post_ra>
